<compile_context>
chip_gen: v6e
topology: v6e:2x2x1
jax: 0.10.0
libtpu: 0.0.40
codegen_flags: <defaults>
</compile_context>

<pallas_src>
import jax
import jax.numpy as jnp
from jax.experimental import pallas as pl
from jax.experimental.pallas import tpu as pltpu

HIDDEN = 256            # hardcoded by the module (Conv1d(1, 256, 1))
EMBED_DIM = 256         # embedding_dim default


def f0_encoder_kernel(x_ref, w1_ref, b1_ref, w2_ref, b2_ref, o_ref):
    # x_ref:  (1, 1, tile_t)        f0 values, lane-dense along T
    # w1_ref: (HIDDEN, 1)   f32     c1 weight as a column
    # b1_ref: (HIDDEN, 1)   f32     c1 bias as a column
    # w2_ref: (EMBED, HIDDEN) bf16  c2 weight (out, in)
    # b2_ref: (EMBED, 1)    f32     c2 bias as a column
    # o_ref:  (1, EMBED, tile_t)    output tile in NCW layout
    x = x_ref[0]                                          # (1, tile_t) f32
    # c1: single input channel -> outer-product broadcast + bias (VPU, f32).
    h = w1_ref[...] * x + b1_ref[...]                     # (HIDDEN, tile_t)
    h = jnp.sin(h)                                        # keep sin in f32
    # c2: pointwise conv over channels -> bf16 MXU matmul, f32 accumulate.
    y = jnp.dot(w2_ref[...], h.astype(jnp.bfloat16),
                preferred_element_type=jnp.float32)       # (EMBED, tile_t)
    o_ref[0] = (y + b2_ref[...]).astype(o_ref.dtype)


def f0_encoder(x_ncw, w1, b1, w2, b2, *, tile_t=512):
    """x_ncw: (B, 1, T) float32.  Returns (B, EMBED_DIM, T) float32."""
    B, Cin, T = x_ncw.shape
    assert Cin == 1

    # --- tile sizing: lane-dense multiples of 128, padded T for any length ---
    tile_t = max(128, (int(tile_t) // 128) * 128)
    t_pad_128 = pl.cdiv(T, 128) * 128
    tile_t = min(tile_t, t_pad_128)
    T_pad = pl.cdiv(T, tile_t) * tile_t
    if T_pad != T:
        x_ncw = jnp.pad(x_ncw, ((0, 0), (0, 0), (0, T_pad - T)))

    # --- weight layout prep (no per-element transposes of activations) ---
    w1_col = w1.reshape(HIDDEN, 1)                        # (HIDDEN, 1) f32
    b1_col = b1.reshape(HIDDEN, 1)                        # (HIDDEN, 1) f32
    w2_mat = w2.reshape(EMBED_DIM, HIDDEN).astype(jnp.bfloat16)   # (E, H) bf16
    b2_col = b2.reshape(EMBED_DIM, 1)                     # (EMBED, 1) f32

    grid = (B, T_pad // tile_t)

    out = pl.pallas_call(
        f0_encoder_kernel,
        out_shape=jax.ShapeDtypeStruct((B, EMBED_DIM, T_pad), jnp.float32),
        grid_spec=pltpu.PrefetchScalarGridSpec(
            num_scalar_prefetch=0,
            grid=grid,
            in_specs=[
                pl.BlockSpec((1, 1, tile_t), lambda b, t: (b, 0, t)),     # x
                pl.BlockSpec((HIDDEN, 1), lambda b, t: (0, 0)),           # w1
                pl.BlockSpec((HIDDEN, 1), lambda b, t: (0, 0)),           # b1
                pl.BlockSpec((EMBED_DIM, HIDDEN), lambda b, t: (0, 0)),   # w2
                pl.BlockSpec((EMBED_DIM, 1), lambda b, t: (0, 0)),        # b2
            ],
            out_specs=pl.BlockSpec((1, EMBED_DIM, tile_t),
                                   lambda b, t: (b, 0, t)),
        ),
        compiler_params=pltpu.CompilerParams(
            dimension_semantics=("parallel", "parallel")),
    )(x_ncw, w1_col, b1_col, w2_mat, b2_col)

    if T_pad != T:
        out = out[:, :, :T]
    return out


def init_params(key):
    k1, k2, k3, k4 = jax.random.split(key, 4)
    # c1.weight ~ Normal(0, 0.3), shape (256, 1, 1) like PyTorch Conv1d
    w1 = 0.3 * jax.random.normal(k1, (HIDDEN, 1, 1), jnp.float32)
    b1 = jax.random.uniform(k2, (HIDDEN,), jnp.float32, -0.1, 0.1)
    fan_in = HIDDEN
    bound = 1.0 / jnp.sqrt(fan_in)
    w2 = jax.random.uniform(k3, (EMBED_DIM, HIDDEN, 1), jnp.float32, -bound, bound)
    b2 = jax.random.uniform(k4, (EMBED_DIM,), jnp.float32, -bound, bound)
    return w1, b1, w2, b2


def reference(x_ncw, w1, b1, w2, b2):
    # Pure-JAX f32 reference of the PyTorch forward (1x1 convs = linear maps).
    x = x_ncw[:, 0, :]                                   # (B, T)
    h = x[:, None, :] * w1.reshape(1, HIDDEN, 1) + b1.reshape(1, HIDDEN, 1)
    h = jnp.sin(h)                                       # (B, 256, T)
    y = jnp.einsum("ec,bct->bet", w2.reshape(EMBED_DIM, HIDDEN), h)
    return y + b2.reshape(1, EMBED_DIM, 1)


if __name__ == "__main__":
    key = jax.random.PRNGKey(0)
    kx, kp = jax.random.split(key)

    B, T = 2, 16
    x = jax.random.normal(kx, (B, 1, T), jnp.float32)    # f0 contour (B, 1, T)
    w1, b1, w2, b2 = init_params(kp)

    out = f0_encoder(x, w1, b1, w2, b2)
    out = jax.block_until_ready(out)

    ref = reference(x, w1, b1, w2, b2)
    assert out.shape == (B, EMBED_DIM, T), out.shape
    # bf16 MXU matmul (f32 accumulate) -> loosened tolerance vs f32 reference.
    assert jnp.allclose(out, ref, atol=2e-2, rtol=2e-2), float(
        jnp.max(jnp.abs(out - ref)))

    print("KERNEL_OK")
</pallas_src>

<mosaic_0001>
module attributes {stable_mosaic.version = 11 : i64} {
  func.func @f0_encoder_kernel(%arg0: i32, %arg1: i32, %arg2: memref<1x1x128xf32, #tpu.memory_space<vmem>>, %arg3: memref<256x1xf32, #tpu.memory_space<vmem>>, %arg4: memref<256x1xf32, #tpu.memory_space<vmem>>, %arg5: memref<256x256xbf16, #tpu.memory_space<vmem>>, %arg6: memref<256x1xf32, #tpu.memory_space<vmem>>, %arg7: memref<1x256x128xf32, #tpu.memory_space<vmem>>) attributes {dimension_semantics = [#tpu.dimension_semantics<parallel>, #tpu.dimension_semantics<parallel>], iteration_bounds = array<i64: 2, 1>, scalar_prefetch = 0 : i64, scratch_operands = 0 : i64, tpu.core_type = #tpu.core_type<tc>, window_params = [{transform_indices = @transform_0, window_bounds = array<i64: 1, 1, 128>}, {pipeline_mode = #tpu.pipeline_mode<synchronous>, transform_indices = @transform_1, window_bounds = array<i64: 256, 1>}, {pipeline_mode = #tpu.pipeline_mode<synchronous>, transform_indices = @transform_2, window_bounds = array<i64: 256, 1>}, {pipeline_mode = #tpu.pipeline_mode<synchronous>, transform_indices = @transform_3, window_bounds = array<i64: 256, 256>}, {pipeline_mode = #tpu.pipeline_mode<synchronous>, transform_indices = @transform_4, window_bounds = array<i64: 256, 1>}, {transform_indices = @transform_5, window_bounds = array<i64: 1, 256, 128>}]} {
    %c0 = arith.constant 0 : index
    %c0_0 = arith.constant 0 : index
    %c0_1 = arith.constant 0 : index
    %0 = vector.load %arg2[%c0, %c0_0, %c0_1] : memref<1x1x128xf32, #tpu.memory_space<vmem>>, vector<1x1x128xf32>
    %1 = vector.shape_cast %0 : vector<1x1x128xf32> to vector<1x128xf32>
    %c0_2 = arith.constant 0 : index
    %c0_3 = arith.constant 0 : index
    %2 = vector.load %arg3[%c0_2, %c0_3] : memref<256x1xf32, #tpu.memory_space<vmem>>, vector<256x1xf32>
    %3 = vector.broadcast %2 : vector<256x1xf32> to vector<256x128xf32>
    %4 = vector.broadcast %1 : vector<1x128xf32> to vector<256x128xf32>
    %5 = arith.mulf %3, %4 : vector<256x128xf32>
    %c0_4 = arith.constant 0 : index
    %c0_5 = arith.constant 0 : index
    %6 = vector.load %arg4[%c0_4, %c0_5] : memref<256x1xf32, #tpu.memory_space<vmem>>, vector<256x1xf32>
    %7 = vector.broadcast %6 : vector<256x1xf32> to vector<256x128xf32>
    %8 = arith.addf %5, %7 : vector<256x128xf32>
    %9 = math.sin %8 : vector<256x128xf32>
    %c0_6 = arith.constant 0 : index
    %c0_7 = arith.constant 0 : index
    %10 = vector.load %arg5[%c0_6, %c0_7] : memref<256x256xbf16, #tpu.memory_space<vmem>>, vector<256x256xbf16>
    %11 = arith.truncf %9 : vector<256x128xf32> to vector<256x128xbf16>
    %cst = arith.constant dense<0.000000e+00> : vector<256x128xf32>
    %12 = tpu.matmul %10, %11, %cst {dimension_numbers = #tpu.dot_dimension_numbers<[1], [0], [0], [1], [0, 0, 1, 1], [], []>} : vector<256x256xbf16>, vector<256x128xbf16>, vector<256x128xf32> -> vector<256x128xf32>
    %c0_8 = arith.constant 0 : index
    %c0_9 = arith.constant 0 : index
    %13 = vector.load %arg6[%c0_8, %c0_9] : memref<256x1xf32, #tpu.memory_space<vmem>>, vector<256x1xf32>
    %14 = vector.broadcast %13 : vector<256x1xf32> to vector<256x128xf32>
    %15 = arith.addf %12, %14 : vector<256x128xf32>
    %c0_10 = arith.constant 0 : index
    %c0_11 = arith.constant 0 : index
    %c0_12 = arith.constant 0 : index
    %16 = vector.load %arg7[%c0_10, %c0_11, %c0_12] : memref<1x256x128xf32, #tpu.memory_space<vmem>>, vector<1x256x128xf32>
    %17 = vector.shape_cast %16 : vector<1x256x128xf32> to vector<256x128xf32>
    %18 = vector.shape_cast %15 : vector<256x128xf32> to vector<1x256x128xf32>
    tpu.vector_store %arg7[%c0_10, %c0_11, %c0_12], %18 {strides = array<i32>} : memref<1x256x128xf32, #tpu.memory_space<vmem>>, vector<1x256x128xf32>,
    return
  }
  func.func @transform_0(%arg0: i32, %arg1: i32) -> (i32, i32, i32) {
    %c0_i32 = arith.constant 0 : i32
    %c0_i32_0 = arith.constant 0 : i32
    return %arg0, %c0_i32, %arg1 : i32, i32, i32
  }
  func.func @transform_1(%arg0: i32, %arg1: i32) -> (i32, i32) {
    %c0_i32 = arith.constant 0 : i32
    %c0_i32_0 = arith.constant 0 : i32
    %c0_i32_1 = arith.constant 0 : i32
    return %c0_i32, %c0_i32_0 : i32, i32
  }
  func.func @transform_2(%arg0: i32, %arg1: i32) -> (i32, i32) {
    %c0_i32 = arith.constant 0 : i32
    %c0_i32_0 = arith.constant 0 : i32
    %c0_i32_1 = arith.constant 0 : i32
    return %c0_i32, %c0_i32_0 : i32, i32
  }
  func.func @transform_3(%arg0: i32, %arg1: i32) -> (i32, i32) {
    %c0_i32 = arith.constant 0 : i32
    %c0_i32_0 = arith.constant 0 : i32
    %c0_i32_1 = arith.constant 0 : i32
    return %c0_i32, %c0_i32_0 : i32, i32
  }
  func.func @transform_4(%arg0: i32, %arg1: i32) -> (i32, i32) {
    %c0_i32 = arith.constant 0 : i32
    %c0_i32_0 = arith.constant 0 : i32
    %c0_i32_1 = arith.constant 0 : i32
    return %c0_i32, %c0_i32_0 : i32, i32
  }
  func.func @transform_5(%arg0: i32, %arg1: i32) -> (i32, i32, i32) {
    %c0_i32 = arith.constant 0 : i32
    %c0_i32_0 = arith.constant 0 : i32
    return %arg0, %c0_i32, %arg1 : i32, i32, i32
  }
}

</mosaic_0001>

<bundles_post_ra>
// kernel: tpu_custom_call.1
= control target key start
LH: loop header
LB: loop body
LE: loop exit
PB: predicated region body
PF: predicated region fallthrough
CT: control target
= control target key end

     0   :  { %10 = vsyncpa [#allocation3], 0  ;;  %s9121_s0 = inlined_call_operand.vmem [shape: f32[2,1,128], index: 0, kind: input, shape index: {}]   ;;  %s9122_s1 = inlined_call_operand.vmem [shape: f32[256,1], index: 1, kind: input, shape index: {}]   ;;  %s9123_s2 = inlined_call_operand.vmem [shape: f32[256,1], index: 2, kind: input, shape index: {}]   ;;  %s9124_s3 = inlined_call_operand.vmem [shape: bf16[256,256], index: 3, kind: input, shape index: {}]   ;;  %s9125_s4 = inlined_call_operand.vmem [shape: f32[256,1], index: 4, kind: input, shape index: {}]   ;;  %s9126_s5 = inlined_call_operand.hbm [shape: f32[2,256,128], index: 5, kind: output, shape index: {}]  }
   0x1   :  { %12 = vsyncpa [#allocation3 + $0x1], 0  ;;  %s5499_s18 = smov 0   ;;  %s5501_s19 = smov 0  }
   0x2   :  { %s5503_s20 = smov 0   ;;  %s5505_s21 = smov 0  }
   0x3   :  { %s5507_s22 = smov 0   ;;  %s5509_s23 = smov 0  }
   0x4 LB: > { %s4706_s24 = sadd.s32 4294967295, %s5457_s23   ;;  %s4707_s25 = sadd.s32 4294967294, %s5457_s23   ;;  %s5457_s23 = sphi %s5509_s23, %s18_s23   ;;  %s5453_s22 = sphi %s5507_s22, %s9743_s22   ;;  %s5449_s21 = sphi %s5505_s21, %s9742_s21   ;;  %s5445_s20 = sphi %s5503_s20, %s9741_s20   ;;  %s5441_s19 = sphi %s5501_s19, %s9740_s19   ;;  %s5437_s18 = sphi %s5499_s18, %s9739_s18  }
   0x5   : > { %s30_s26 = sadd.s32 1, %s5453_s22  ;;  %s151_s27 = sadd.s32 1, %s5445_s20 }
   0x6   : > { %p32_p0 = scmp.ge.s32.totalorder %s30_s26, 2  ;;  %p161_p1 = scmp.ne.s32.totalorder %s5445_s20, %s5441_s19 }
   0x7   : > { %p162_p2 = scmp.eq.s32.totalorder %s4706_s24, 1  ;;  %p167_p3 = scmp.ne.s32.totalorder %s5441_s19, %s5437_s18 }
   0x8   : > { %s9745_s26 = smov (%p32_p0, %s30_s26), 0  ;;  %p168_p5 = scmp.eq.s32.totalorder %s4707_s25, 1 }
   0x9   : > { %p5539_p4 = por %p162_p2, %p161_p1  ;;  %s146_s29 = ssub.s32 %s5453_s22, %s9745_s26 }
   0xa   : > { %p4710_p6 = scmp.ge.s32.totalorder %s5457_s23, 1  ;;  %p149_p7 = scmp.eq.s32.totalorder %s146_s29, 0 }
   0xb   : > { %p5546_p8 = por %p168_p5, %p167_p3  ;;  %p207_p9 = scmp.lt.s32.totalorder %s5457_s23, 3 }
   0xc   : > { %s5552_s6 = scalar_select %p149_p7, %s5445_s20, %s151_s27  }
   0xd   : > { %p208_p10 = pnand %p4710_p6, %p207_p9 }
   0xf   : > { %211 = sbr.rel (%p208_p10) target bundleno = 1277 (0x4fd), region = 40 }
  0x14   : > { %v274_v0 = vld [vmem:[%s9122_s1 + $0xf0] sm:$0xff]  ;;  %v5459_v2 = vmov 0   ;;  %v275_v3 = vld [vmem:[%s9122_s1 + $0xf8] sm:$0xff]  ;;  %v272_v9 = vld [vmem:[%s9122_s1 + $0xe0] sm:$0xff]  ;;  %p236_p11 = scmp.lt.s32.totalorder %s5449_s21, 1  ;;  %s233_s15 = sand.u32 1, %s5441_s19  }
  0x15   : > { %v258_v1 = vld [vmem:[%s9122_s1 + $0x70] sm:$0xff]  ;;  %5200 = vset.pattern.permute.xlu1 %v5459_v2  ;;  %5199 = vset.pattern.permute.xlu0 %v5459_v2  ;;  %v259_v4 = vld [vmem:[%s9122_s1 + $0x78] sm:$0xff]  ;;  %v273_v10 = vld [vmem:[%s9122_s1 + $0xe8] sm:$0xff]  ;;  %s4711_s16 = sshll.u32 %s233_s15, 8  ;;  %s4878_s25 = sshll.u32 %s5449_s21, 12 }
  0x16   : > { %428 = vperm.xlu0 %5199, %v274_v0   ;;  %348 = vperm.xlu1 %5200, %v258_v1   ;;  %v504_v5 = vld [vmem:[%s9123_s2 + $0xf0] sm:$0xff]  ;;  %v505_v6 = vld [vmem:[%s9123_s2 + $0xf8] sm:$0xff]  ;;  %v257_v11 = vld [vmem:[%s9122_s1 + $0x68] sm:$0xff]  ;;  %s237_s11 = scalar_select %p236_p11, %s5449_s21, 1 }
  0x17   : > { %v488_v7 = vld [vmem:[%s9123_s2 + $0x70] sm:$0xff]  ;;  %v489_v8 = vld [vmem:[%s9123_s2 + $0x78] sm:$0xff]  ;;  %v256_v12 = vld [vmem:[%s9122_s1 + $0x60] sm:$0xff]  ;;  %s9019_s17 = scalar_lea.vmem [#allocation2], %s4711_s16  ;;  %s9067_s8 = scalar_lea.hbm %s9126_s5, %s4878_s25 }
  0x18   : > { %v503_v13 = vld [vmem:[%s9123_s2 + $0xe8] sm:$0xff]  ;;  %v502_v14 = vld [vmem:[%s9123_s2 + $0xe0] sm:$0xff]  ;;  %v271_v17 = vld [vmem:[%s9122_s1 + $0xd8] sm:$0xff]  ;;  %s5751_s24 = scalar_lea.vmem %s9121_s0, %s237_s11  ;;  %s4634_s27 = sshll.u32 %s9019_s17, 4  ;;  %s9069_s27 = int_to_ptr.vmem [resolvable:$true] %s4634_s27 }
  0x19   : > { %v487_v15 = vld [vmem:[%s9123_s2 + $0x68] sm:$0xff]  ;;  %v486_v16 = vld [vmem:[%s9123_s2 + $0x60] sm:$0xff]  ;;  %v270_v18 = vld [vmem:[%s9122_s1 + $0xd0] sm:$0xff]  ;;  %s9076_s21 = scalar_lea.sflag [#allocation3], %s233_s15  ;;  %s5381_s9 = scalar_lea.vmem %s9069_s27, 4096 }
  0x1a   : > { %433 = vperm.xlu0 %5199, %v275_v3   ;;  %353 = vperm.xlu1 %5200, %v259_v4   ;;  %v255_v19 = vld [vmem:[%s9122_s1 + $0x58] sm:$0xff]  ;;  %v254_v20 = vld [vmem:[%s9122_s1 + $0x50] sm:$0xff]  ;;  %v269_v25 = vld [vmem:[%s9122_s1 + $0xc8] sm:$0xff]  ;;  %p5382_p12 = scmp.ne.s32.totalorder %s9069_s27, %s5381_s9  ;;  %s5466_s10 = smov [#allocation2]  }
  0x1b   : > { %v501_v21 = vld [vmem:[%s9123_s2 + $0xd8] sm:$0xff]  ;;  %v500_v22 = vld [vmem:[%s9123_s2 + $0xd0] sm:$0xff]  ;;  %v268_v26 = vld [vmem:[%s9122_s1 + $0xc0] sm:$0xff]  ;;  %s5385_s11 = sshll.u32 %s5466_s10, 4  ;;  %s5386_s11 = int_to_ptr.vmem [resolvable:$false] %s5385_s11 }
  0x1c   : > { %v485_v23 = vld [vmem:[%s9123_s2 + $0x58] sm:$0xff]  ;;  %v484_v24 = vld [vmem:[%s9123_s2 + $0x50] sm:$0xff]  ;;  %v253_v27 = vld [vmem:[%s9122_s1 + $0x48] sm:$0xff]  ;;  %p5383_p13 = pnand %p5382_p12, %p5539_p4  ;;  %p5388_p1 = scmp.lt.s32.totalorder %s9069_s27, %s5386_s11 }
  0x1d   : > { %v252_v28 = vld [vmem:[%s9122_s1 + $0x40] sm:$0xff]  ;;  %v499_v29 = vld [vmem:[%s9123_s2 + $0xc8] sm:$0xff]  ;;  %v267_v33 = vld [vmem:[%s9122_s1 + $0xb8] sm:$0xff] }
  0x1e   : > { %658 = vperm.xlu0 %5199, %v504_v5   ;;  %663 = vperm.xlu1 %5200, %v505_v6   ;;  %v498_v30 = vld [vmem:[%s9123_s2 + $0xc0] sm:$0xff]  ;;  %v483_v31 = vld [vmem:[%s9123_s2 + $0x48] sm:$0xff]  ;;  %v266_v34 = vld [vmem:[%s9122_s1 + $0xb0] sm:$0xff]  ;;  %p5384_p0 = pneg %p5383_p13 }
  0x1f   : > { %v482_v32 = vld [vmem:[%s9123_s2 + $0x40] sm:$0xff]  ;;  %v251_v35 = vld [vmem:[%s9122_s1 + $0x38] sm:$0xff]  ;;  %v250_v36 = vld [vmem:[%s9122_s1 + $0x30] sm:$0xff] }
  0x20   : > { %v497_v37 = vld [vmem:[%s9123_s2 + $0xb8] sm:$0xff]  ;;  %v496_v38 = vld [vmem:[%s9123_s2 + $0xb0] sm:$0xff]  ;;  %v265_v41 = vld [vmem:[%s9122_s1 + $0xa8] sm:$0xff] }
  0x21   : > { %v481_v39 = vld [vmem:[%s9123_s2 + $0x38] sm:$0xff]  ;;  %v480_v40 = vld [vmem:[%s9123_s2 + $0x30] sm:$0xff]  ;;  %v264_v42 = vld [vmem:[%s9122_s1 + $0xa0] sm:$0xff] }
  0x22   : > { %578 = vperm.xlu0 %5199, %v488_v7   ;;  %583 = vperm.xlu1 %5200, %v489_v8   ;;  %v249_v43 = vld [vmem:[%s9122_s1 + $0x28] sm:$0xff]  ;;  %v248_v44 = vld [vmem:[%s9122_s1 + $0x20] sm:$0xff]  ;;  %v263_v49 = vld [vmem:[%s9122_s1 + $0x98] sm:$0xff] }
  0x23   : > { %v495_v45 = vld [vmem:[%s9123_s2 + $0xa8] sm:$0xff]  ;;  %v494_v46 = vld [vmem:[%s9123_s2 + $0xa0] sm:$0xff]  ;;  %v262_v50 = vld [vmem:[%s9122_s1 + $0x90] sm:$0xff] }
  0x24   : > { %v479_v47 = vld [vmem:[%s9123_s2 + $0x28] sm:$0xff]  ;;  %v478_v48 = vld [vmem:[%s9123_s2 + $0x20] sm:$0xff]  ;;  %v247_v51 = vld [vmem:[%s9122_s1 + $0x18] sm:$0xff] }
  0x25   : > { %v246_v52 = vld [vmem:[%s9122_s1 + $0x10] sm:$0xff]  ;;  %v493_v53 = vld [vmem:[%s9123_s2 + $0x98] sm:$0xff]  ;;  %v261_v57 = vld [vmem:[%s9122_s1 + $0x88] sm:$0xff] }
  0x26   : > { %418 = vperm.xlu0 %5199, %v272_v9   ;;  %423 = vperm.xlu1 %5200, %v273_v10   ;;  %v492_v54 = vld [vmem:[%s9123_s2 + $0x90] sm:$0xff]  ;;  %v477_v55 = vld [vmem:[%s9123_s2 + $0x18] sm:$0xff]  ;;  %v260_v58 = vld [vmem:[%s9122_s1 + $0x80] sm:$0xff] }
  0x27   : > { %v476_v56 = vld [vmem:[%s9123_s2 + $0x10] sm:$0xff]  ;;  %v245_v59 = vld [vmem:[%s9122_s1 + $0x8] sm:$0xff]  ;;  %v244_v60 = vld [vmem:[%s9122_s1] sm:$0xff] }
  0x28   : > { %v491_v61 = vld [vmem:[%s9123_s2 + $0x88] sm:$0xff]  ;;  %v490_v62 = vld [vmem:[%s9123_s2 + $0x80] sm:$0xff]  ;;  %v4077_v8 = vld [vmem:[%s9125_s4 + $0x18] sm:$0xff] }
  0x29   : > { %v475_v63 = vld [vmem:[%s9123_s2 + $0x8] sm:$0xff]  ;;  %v474_v0 = vld [vmem:[%s9123_s2] sm:$0xff]  ;;  %v4076_v9 = vld [vmem:[%s9125_s4 + $0x10] sm:$0xff] }
  0x2a   : > { %343 = vperm.xlu1 %5200, %v257_v11   ;;  %338 = vperm.xlu0 %5199, %v256_v12   ;;  %v4075_v3 = vld [vmem:[%s9125_s4 + $0x8] sm:$0xff]  ;;  %v4074_v4 = vld [vmem:[%s9125_s4] sm:$0xff] }
  0x2b   : > { %v5760_v5 = vld [vmem:[%s5751_s24] ss:$0 sm:$0xff] }
  0x2e   : > { %653 = vperm.xlu1 %5200, %v503_v13   ;;  %648 = vperm.xlu0 %5199, %v502_v14  }
  0x32   : > { %573 = vperm.xlu1 %5200, %v487_v15   ;;  %568 = vperm.xlu0 %5199, %v486_v16   ;;  %v4079_v16 = vld [vmem:[%s9125_s4 + $0x28] sm:$0xff] }
  0x36   : > { %413 = vperm.xlu1 %5200, %v271_v17   ;;  %408 = vperm.xlu0 %5199, %v270_v18   ;;  %v4078_v17 = vld [vmem:[%s9125_s4 + $0x20] sm:$0xff] }
  0x3a   : > { %333 = vperm.xlu1 %5200, %v255_v19   ;;  %328 = vperm.xlu0 %5199, %v254_v20  }
  0x3e   : > { %643 = vperm.xlu1 %5200, %v501_v21   ;;  %638 = vperm.xlu0 %5199, %v500_v22  }
  0x42   : > { %563 = vperm.xlu1 %5200, %v485_v23   ;;  %558 = vperm.xlu0 %5199, %v484_v24  }
  0x46   : > { %403 = vperm.xlu1 %5200, %v269_v25   ;;  %398 = vperm.xlu0 %5199, %v268_v26  }
  0x4a   : > { %323 = vperm.xlu1 %5200, %v253_v27   ;;  %318 = vperm.xlu0 %5199, %v252_v28  }
  0x4e   : > { %633 = vperm.xlu1 %5200, %v499_v29   ;;  %628 = vperm.xlu0 %5199, %v498_v30   ;;  %v4081_v30 = vld [vmem:[%s9125_s4 + $0x38] sm:$0xff] }
  0x52   : > { %553 = vperm.xlu1 %5200, %v483_v31   ;;  %548 = vperm.xlu0 %5199, %v482_v32   ;;  %v4080_v31 = vld [vmem:[%s9125_s4 + $0x30] sm:$0xff] }
  0x56   : > { %393 = vperm.xlu1 %5200, %v267_v33   ;;  %388 = vperm.xlu0 %5199, %v266_v34  }
  0x5a   : > { %313 = vperm.xlu1 %5200, %v251_v35   ;;  %308 = vperm.xlu0 %5199, %v250_v36  }
  0x5e   : > { %623 = vperm.xlu1 %5200, %v497_v37   ;;  %618 = vperm.xlu0 %5199, %v496_v38  }
  0x62   : > { %543 = vperm.xlu1 %5200, %v481_v39   ;;  %538 = vperm.xlu0 %5199, %v480_v40   ;;  %v4083_v39 = vld [vmem:[%s9125_s4 + $0x48] sm:$0xff] }
  0x66   : > { %383 = vperm.xlu1 %5200, %v265_v41   ;;  %378 = vperm.xlu0 %5199, %v264_v42  }
  0x6a   : > { %303 = vperm.xlu1 %5200, %v249_v43   ;;  %298 = vperm.xlu0 %5199, %v248_v44   ;;  %v4082_v44 = vld [vmem:[%s9125_s4 + $0x40] sm:$0xff] }
  0x6e   : > { %613 = vperm.xlu1 %5200, %v495_v45   ;;  %608 = vperm.xlu0 %5199, %v494_v46  }
  0x72   : > { %533 = vperm.xlu1 %5200, %v479_v47   ;;  %528 = vperm.xlu0 %5199, %v478_v48  }
  0x76   : > { %373 = vperm.xlu1 %5200, %v263_v49   ;;  %368 = vperm.xlu0 %5199, %v262_v50  }
  0x7a   : > { %293 = vperm.xlu1 %5200, %v247_v51   ;;  %288 = vperm.xlu0 %5199, %v246_v52  }
  0x7e   : > { %603 = vperm.xlu1 %5200, %v493_v53   ;;  %598 = vperm.xlu0 %5199, %v492_v54  }
  0x82   : > { %523 = vperm.xlu1 %5200, %v477_v55   ;;  %518 = vperm.xlu0 %5199, %v476_v56   ;;  %v4085_v55 = vld [vmem:[%s9125_s4 + $0x58] sm:$0xff] }
  0x86   : > { %363 = vperm.xlu1 %5200, %v261_v57   ;;  %358 = vperm.xlu0 %5199, %v260_v58   ;;  %v9145_v57 = vmov 683565275  }
  0x8a   : > { %283 = vperm.xlu1 %5200, %v245_v59   ;;  %278 = vperm.xlu0 %5199, %v244_v60  }
  0x8e   : > { %593 = vperm.xlu1 %5200, %v491_v61   ;;  %588 = vperm.xlu0 %5199, %v490_v62   ;;  %v4084_v61 = vld [vmem:[%s9125_s4 + $0x50] sm:$0xff]  ;;  %v9143_v62 = vmov 2475754826  }
  0x91   : > { %v429_v1 = vpop.permute.xlu0 %428  ;;  %v349_v2 = vpop.permute.xlu1 %348 }
  0x92   : > { %513 = vperm.xlu1 %5200, %v475_v63   ;;  %508 = vperm.xlu0 %5199, %v474_v0   ;;  %v472_v10 = vmul.f32 %v5760_v5, %v429_v1  ;;  %v456_v18 = vmul.f32 %v5760_v5, %v349_v2  ;;  %v9136_v0 = vmov 2131351028   ;;  %v9134_v2 = vmov 2102212464  }
  0x95   : > { %v434_v6 = vpop.permute.xlu0 %433  ;;  %v354_v7 = vpop.permute.xlu1 %353 }
  0x96   : > { %4113 = vperm.xlu1 %5200, %v4075_v3   ;;  %4108 = vperm.xlu0 %5199, %v4074_v4   ;;  %v473_v11 = vmul.f32 %v5760_v5, %v434_v6  ;;  %v457_v32 = vmul.f32 %v5760_v5, %v354_v7  ;;  %v9140_v4 = vmov 920167782  }
  0x99   : > { %v659_v12 = vpop.permute.xlu0 %658  ;;  %v664_v13 = vpop.permute.xlu1 %663 }
  0x9a   : > { %v5770_v14 = vadd.f32 %v659_v12, %v472_v10  ;;  %v5772_v15 = vadd.f32 %v664_v13, %v473_v11  ;;  %4123 = vperm.xlu1 %5200, %v4077_v8   ;;  %4118 = vperm.xlu0 %5199, %v4076_v9   ;;  %v9138_v12 = vmov 1326507024  }
  0x9c   : > { %v9130_v19 = vand.u32 2147483647, %v5770_v14  ;;  %v3821_v20 = vand.u32 2139095040, %v5770_v14  ;;  %v9129_v21 = vand.u32 2147483647, %v5772_v15  ;;  %v3925_v22 = vand.u32 2139095040, %v5772_v15 }
  0x9d   : > { %v579_v23 = vpop.permute.xlu0 %578  ;;  %v584_v29 = vpop.permute.xlu1 %583 }
  0x9e   : > { %v3822_v24 = vshrl.u32 %v3821_v20, 23  ;;  %v3825_v25 = vand.u32 8388607, %v9130_v19  ;;  %v5787_v26 = vadd.f32 %v579_v23, %v456_v18  ;;  %4133 = vperm.xlu1 %5200, %v4079_v16   ;;  %4128 = vperm.xlu0 %5199, %v4078_v17   ;;  %v3926_v27 = vshrl.u32 %v3925_v22, 23  ;;  %v4087_v16 = vld [vmem:[%s9125_s4 + $0x68] sm:$0xff]  ;;  %v4086_v23 = vld [vmem:[%s9125_s4 + $0x60] sm:$0xff] }
  0x9f   : > { %v3929_v28 = vand.u32 8388607, %v9129_v21  ;;  %v5799_v38 = vadd.f32 %v584_v29, %v457_v32 }
  0xa0   : > { %9349 = vst [vmem:[#allocation5_spill] sm:$0xff] %v5787_v26  ;;  %v4833_v33 = vadd.s32 4294967169, %v3822_v24  ;;  %v4837_v34 = vadd.s32 4294967169, %v3926_v27  ;;  %v2157_v35 = vand.u32 2139095040, %v5787_v26  ;;  %v3826_v36 = vor.u32 8388608, %v3825_v25 }
  0xa1   : > { %v3930_v40 = vor.u32 8388608, %v3929_v28  ;;  %v9128_v42 = vand.u32 2147483647, %v5787_v26  ;;  %v2261_v54 = vand.u32 2139095040, %v5799_v38 }
  0xa2   : > { %v3828_v37 = vadd.s32 1, %v4833_v33  ;;  %4143 = vperm.xlu1 %5200, %v4081_v30   ;;  %4138 = vperm.xlu0 %5199, %v4080_v31   ;;  %v3932_v41 = vadd.s32 1, %v4837_v34  ;;  %v2158_v43 = vshrl.u32 %v2157_v35, 23  ;;  %v5810_v49 = vshll.u32 %v3826_v36, 8  ;;  %v4089_v35 = vld [vmem:[%s9125_s4 + $0x78] sm:$0xff] }
  0xa3   : > { %v5814_v52 = vshll.u32 %v3930_v40, 8  ;;  %v5818_v53 = vand.u32 8388607, %v9128_v42 }
  0xa4   : > { %vm3829_vm0 = vcmp.gt.s32.totalorder %v3828_v37, 0  ;;  %vm3933_vm1 = vcmp.gt.s32.totalorder %v3932_v41, 0  ;;  %v4769_v46 = vadd.s32 4294967169, %v2158_v43 }
  0xa5   : > { %v3830_v45 = vsel %vm3829_vm0, %v3828_v37, 0  ;;  %v3934_v50 = vsel %vm3933_vm1, %v3932_v41, 0  ;;  %v4088_v41 = vld [vmem:[%s9125_s4 + $0x70] sm:$0xff] }
  0xa6   : > { %v5808_v47 = vshrl.u32 %v3830_v45, 5  ;;  %v3832_v48 = vand.u32 31, %v3830_v45  ;;  %4153 = vperm.xlu1 %5200, %v4083_v39   ;;  %4148 = vperm.xlu0 %5199, %v4082_v44   ;;  %v5812_v51 = vshrl.u32 %v3934_v50, 5  ;;  %v5825_v59 = vand.u32 31, %v3934_v50 }
  0xa7   : > { %v5827_v60 = vadd.s32 1, %v4769_v46 }
  0xa8   : > { %v3833_v56 = vsub.s32 32, %v3832_v48  ;;  %v3835_v58 = vshll.u32 %v9145_v57, %v3832_v48  ;;  %v3838_v63 = vshll.u32 %v9143_v62, %v3832_v48  ;;  %v3841_v1 = vshll.u32 %v9136_v0, %v3832_v48 }
  0xa9   : > { %v3844_v3 = vshll.u32 %v9134_v2, %v3832_v48  ;;  %v3847_v6 = vshll.u32 %v9140_v4, %v3832_v48  ;;  %vm3850_vm2 = vcmp.lt.s32.totalorder %v5808_v47, 1  ;;  %vm3851_vm3 = vcmp.lt.s32.totalorder %v5808_v47, 2 }
  0xaa   : > { %v3836_v7 = vshrl.u32 %v9143_v62, %v3833_v56  ;;  %v3839_v8 = vshrl.u32 %v9136_v0, %v3833_v56  ;;  %v3842_v9 = vshrl.u32 %v9134_v2, %v3833_v56  ;;  %4163 = vperm.xlu1 %5200, %v4085_v55   ;;  %v3834_v10 = vshrl.u32 %v9145_v57, %v3833_v56 }
  0xab   : > { %v3845_v11 = vshrl.u32 %v9140_v4, %v3833_v56  ;;  %v3848_v13 = vshrl.u32 %v9138_v12, %v3833_v56  ;;  %4158 = vperm.xlu0 %5199, %v4084_v61   ;;  %v3937_v22 = vsub.s32 32, %v5825_v59  ;;  %vm3852_vm4 = vcmp.lt.s32.totalorder %v5808_v47, 3 }
  0xac   : > { %v3837_v17 = vor.u32 %v3836_v7, %v3835_v58  ;;  %v3840_v18 = vor.u32 %v3839_v8, %v3838_v63  ;;  %v3843_v20 = vor.u32 %v3842_v9, %v3841_v1  ;;  %vm3853_vm5 = vcmp.lt.s32.totalorder %v5808_v47, 4  ;;  %v4091_v1 = vld [vmem:[%s9125_s4 + $0x88] sm:$0xff]  ;;  %v4090_v9 = vld [vmem:[%s9125_s4 + $0x80] sm:$0xff] }
  0xad   : > { %v3846_v24 = vor.u32 %v3845_v11, %v3844_v3  ;;  %v3849_v25 = vor.u32 %v3848_v13, %v3847_v6  ;;  %v3939_v34 = vshll.u32 %v9145_v57, %v5825_v59  ;;  %v3940_v39 = vshrl.u32 %v9143_v62, %v3937_v22 }
  0xae   : > { %v3854_v27 = vsel %vm3850_vm2, %v3834_v10, %v3837_v17  ;;  %v3855_v28 = vsel %vm3853_vm5, %v3843_v20, 2102212464  ;;  %v3858_v29 = vsel %vm3850_vm2, %v3837_v17, %v3840_v18  ;;  %v3862_v30 = vsel %vm3850_vm2, %v3840_v18, %v3843_v20  ;;  %4173 = vperm.xlu1 %5200, %v4087_v16  }
  0xaf   : > { %v3856_v31 = vsel %vm3852_vm4, %v3840_v18, %v3855_v28  ;;  %v3859_v32 = vsel %vm3853_vm5, %v3846_v24, 920167782  ;;  %v3863_v33 = vsel %vm3853_vm5, %v3849_v25, 1326507024  ;;  %4168 = vperm.xlu0 %5199, %v4086_v23   ;;  %v3942_v40 = vshll.u32 %v9143_v62, %v5825_v59 }
  0xb0   : > { %v3860_v36 = vsel %vm3852_vm4, %v3843_v20, %v3859_v32  ;;  %v3864_v37 = vsel %vm3852_vm4, %v3846_v24, %v3863_v33  ;;  %v3857_v43 = vsel %vm3851_vm3, %v3854_v27, %v3856_v31  ;;  %v3943_v46 = vshrl.u32 %v9136_v0, %v3937_v22 }
  0xb1   : > { %v3861_v44 = vsel %vm3851_vm3, %v3858_v29, %v3860_v36  ;;  %v3865_v45 = vsel %vm3851_vm3, %v3862_v30, %v3864_v37  ;;  %v3941_v58 = vor.u32 %v3940_v39, %v3939_v34  ;;  %v3945_v63 = vshll.u32 %v9136_v0, %v5825_v59 }
  0xb2   : > { %v5878_v48 = vmul.u32.u64.low %v5810_v49, %v3865_v45  ;;  %v5879_v50 = vmul.u32.u64.high %v5810_v49, %v3865_v45, %v5878_v48  ;;  %v5882_v55 = vmul.u32.u64.low %v5810_v49, %v3861_v44  ;;  %v5883_v56 = vmul.u32.u64.high %v5810_v49, %v3861_v44, %v5882_v55  ;;  %4183 = vperm.xlu1 %5200, %v4089_v35  }
  0xb3   : > { %v3944_v61 = vor.u32 %v3943_v46, %v3942_v40  ;;  %v3946_v47 = vshrl.u32 %v9134_v2, %v3937_v22  ;;  %4178 = vperm.xlu0 %5199, %v4088_v41   ;;  %v3938_v3 = vshrl.u32 %v9145_v57, %v3937_v22  ;;  %v3948_v6 = vshll.u32 %v9134_v2, %v5825_v59 }
  0xb4   : > { %v3949_v7 = vshrl.u32 %v9140_v4, %v3937_v22  ;;  %v3952_v8 = vshrl.u32 %v9138_v12, %v3937_v22  ;;  %v3873_v10 = vmul.u32 %v5810_v49, %v3857_v43  ;;  %v3951_v13 = vshll.u32 %v9140_v4, %v5825_v59 }
  0xb5   : > { %v3947_v11 = vor.u32 %v3946_v47, %v3945_v63  ;;  %vm3954_vm6 = vcmp.lt.s32.totalorder %v5812_v51, 1  ;;  %vm3875_vm7 = vc.u32 %v5879_v50, %v5882_v55  ;;  %v3876_v16 = vadd.s32 1, %v5883_v56 }
  0xb6   : > { %v3950_v17 = vor.u32 %v3949_v7, %v3948_v6  ;;  %vm3955_vm8 = vcmp.lt.s32.totalorder %v5812_v51, 2  ;;  %4193 = vperm.xlu1 %5200, %v4091_v1   ;;  %v3953_v18 = vor.u32 %v3952_v8, %v3951_v13  ;;  %vm3956_vm9 = vcmp.lt.s32.totalorder %v5812_v51, 3 }
  0xb7   : > { %vm3957_vm10 = vcmp.lt.s32.totalorder %v5812_v51, 4  ;;  %v3962_v49 = vsel %vm3954_vm6, %v3941_v58, %v3944_v61  ;;  %4188 = vperm.xlu0 %5199, %v4090_v9   ;;  %v3877_v59 = vsel %vm3875_vm7, %v3876_v16, %v5883_v56  ;;  %v3966_v23 = vsel %vm3954_vm6, %v3944_v61, %v3947_v11 }
  0xb8   : > { %v3959_v20 = vsel %vm3957_vm10, %v3947_v11, 2102212464  ;;  %v3963_v22 = vsel %vm3957_vm10, %v3950_v17, 920167782  ;;  %v3878_v24 = vadd.s32 %v3877_v59, %v3873_v10  ;;  %v3958_v25 = vsel %vm3954_vm6, %v3938_v3, %v3941_v58 }
  0xb9   : > { %v3964_v27 = vsel %vm3956_vm9, %v3947_v11, %v3963_v22  ;;  %v3967_v28 = vsel %vm3957_vm10, %v3953_v18, 1326507024  ;;  %v3960_v29 = vsel %vm3956_vm9, %v3944_v61, %v3959_v20  ;;  %vm2165_vm11 = vcmp.gt.s32.totalorder %v5827_v60, 0 }
  0xba   : > { %v3965_v30 = vsel %vm3955_vm8, %v3962_v49, %v3964_v27  ;;  %v3968_v31 = vsel %vm3956_vm9, %v3950_v17, %v3967_v28  ;;  %v3879_v32 = vadd.s32 536870912, %v3878_v24  ;;  %v2166_v39 = vsel %vm2165_vm11, %v5827_v60, 0 }
  0xbb   : > { %v3969_v33 = vsel %vm3955_vm8, %v3966_v23, %v3968_v31  ;;  %v5923_v34 = vmul.u32.u64.low %v5814_v52, %v3965_v30  ;;  %v5924_v35 = vmul.u32.u64.high %v5814_v52, %v3965_v30, %v5923_v34  ;;  %v2262_v40 = vshrl.u32 %v2261_v54, 23 }
  0xbc   : > { %v5928_v36 = vmul.u32.u64.low %v5814_v52, %v3969_v33  ;;  %v5929_v37 = vmul.u32.u64.high %v5814_v52, %v3969_v33, %v5928_v36  ;;  %v5934_v41 = vshrl.u32 %v3879_v32, 30  ;;  %v3961_v43 = vsel %vm3955_vm8, %v3958_v25, %v3960_v29 }
  0xbd   : > { %v2168_v44 = vand.u32 31, %v2166_v39  ;;  %v3980_v46 = vadd.s32 1, %v5924_v35  ;;  %v2162_v48 = vor.u32 8388608, %v5818_v53  ;;  %v3977_v58 = vmul.u32 %v5814_v52, %v3961_v43 }
  0xbe   : > { %v3881_v45 = vshll.u32 %v5934_v41, 30  ;;  %vm3979_vm12 = vc.u32 %v5929_v37, %v5923_v34  ;;  %v2167_v60 = vshrl.u32 %v2166_v39, 5  ;;  %v4773_v54 = vadd.s32 4294967169, %v2262_v40 }
  0xbf   : > { %v2169_v56 = vsub.s32 32, %v2168_v44  ;;  %v3981_v51 = vsel %vm3979_vm12, %v3980_v46, %v5924_v35  ;;  %v2171_v63 = vshll.u32 %v9145_v57, %v2168_v44  ;;  %v2174_v1 = vshll.u32 %v9143_v62, %v2168_v44  ;;  %v4092_v46 = vld [vmem:[%s9125_s4 + $0x90] sm:$0xff] }
  0xc0   : > { %v5944_v61 = vsub.s32 %v3878_v24, %v3881_v45  ;;  %v2177_v3 = vshll.u32 %v9136_v0, %v2168_v44  ;;  %v3982_v6 = vadd.s32 %v3981_v51, %v3977_v58  ;;  %v2180_v8 = vshll.u32 %v9134_v2, %v2168_v44  ;;  %v4093_v45 = vld [vmem:[%s9125_s4 + $0x98] sm:$0xff]  ;;  %4198 = vperm.xlu0 %5199, %v4092_v46  }
  0xc1   : > { %v2172_v47 = vshrl.u32 %v9143_v62, %v2169_v56  ;;  %v2175_v53 = vshrl.u32 %v9136_v0, %v2169_v56  ;;  %v2178_v52 = vshrl.u32 %v9134_v2, %v2169_v56  ;;  %v2181_v9 = vshrl.u32 %v9140_v4, %v2169_v56  ;;  %4203 = vperm.xlu1 %5200, %v4093_v45  }
  0xc2   : > { %v2183_v13 = vshll.u32 %v9140_v4, %v2168_v44  ;;  %v2184_v16 = vshrl.u32 %v9138_v12, %v2169_v56  ;;  %v3884_v17 = vsub.s32 0, %v5944_v61  ;;  %vm2186_vm13 = vcmp.lt.s32.totalorder %v2167_v60, 1 }
  0xc3   : > { %v2173_v7 = vor.u32 %v2172_v47, %v2171_v63  ;;  %v2176_v10 = vor.u32 %v2175_v53, %v2174_v1  ;;  %v2179_v11 = vor.u32 %v2178_v52, %v2177_v3  ;;  %v2182_v18 = vor.u32 %v2181_v9, %v2180_v8  ;;  %v424_v3 = vpop.permute.xlu1 %423 }
  0xc4   : > { %v2185_v49 = vor.u32 %v2184_v16, %v2183_v13  ;;  %vm2189_vm14 = vcmp.lt.s32.totalorder %v2167_v60, 4  ;;  %v2202_v59 = vshll.u32 %v2162_v48, 8  ;;  %v3983_v20 = vadd.s32 536870912, %v3982_v6 }
  0xc5   : > { %v2191_v22 = vsel %vm2189_vm14, %v2179_v11, 2102212464  ;;  %v2194_v23 = vsel %vm2186_vm13, %v2173_v7, %v2176_v10  ;;  %v2268_v24 = vadd.s32 1, %v4773_v54  ;;  %v2170_v25 = vshrl.u32 %v9145_v57, %v2169_v56 }
  0xc6   : > { %vm2188_vm15 = vcmp.lt.s32.totalorder %v2167_v60, 3  ;;  %v2195_v27 = vsel %vm2189_vm14, %v2182_v18, 920167782  ;;  %v2198_v28 = vsel %vm2186_vm13, %v2176_v10, %v2179_v11  ;;  %v4834_v29 = vmin.u32 %v3884_v17, %v5944_v61 }
  0xc7   : > { %vm2187_vm0 = vcmp.lt.s32.totalorder %v2167_v60, 2  ;;  %v2196_v30 = vsel %vm2188_vm15, %v2179_v11, %v2195_v27  ;;  %v2199_v31 = vsel %vm2189_vm14, %v2185_v49, 1326507024  ;;  %v2190_v32 = vsel %vm2186_vm13, %v2170_v25, %v2173_v7 }
  0xc8   : > { %v2192_v33 = vsel %vm2188_vm15, %v2176_v10, %v2191_v22  ;;  %v2197_v35 = vsel %vm2187_vm0, %v2194_v23, %v2196_v30  ;;  %v2200_v36 = vsel %vm2188_vm15, %v2182_v18, %v2199_v31  ;;  %v5960_v39 = vshrl.u32 %v3983_v20, 30  ;;  %v5992_v22 = vpop.permute.xlu1 %343 }
  0xc9   : > { %v2201_v40 = vsel %vm2187_vm0, %v2198_v28, %v2200_v36  ;;  %v5962_v43 = vmul.u32.u64.low %v2202_v59, %v2197_v35  ;;  %v5963_v44 = vmul.u32.u64.high %v2202_v59, %v2197_v35, %v5962_v43  ;;  %v2193_v58 = vsel %vm2187_vm0, %v2190_v32, %v2192_v33 }
  0xca   : > { %v5972_v48 = vmul.u32.u64.low %v2202_v59, %v2201_v40  ;;  %v5973_v56 = vmul.u32.u64.high %v2202_v59, %v2201_v40, %v5972_v48  ;;  %vm2269_vm1 = vcmp.gt.s32.totalorder %v2268_v24, 0  ;;  %v3886_v54 = vclz %v4834_v29  ;;  %v419_v29 = vpop.permute.xlu0 %418 }
  0xcb   : > { %v2270_v60 = vsel %vm2269_vm1, %v2268_v24, 0  ;;  %v3985_v51 = vshll.u32 %v5960_v39, 30  ;;  %v2212_v63 = vadd.s32 1, %v5963_v44  ;;  %v9127_v47 = vand.u32 2147483647, %v5799_v38 }
  0xcc   : > { %v2209_v1 = vmul.u32 %v2202_v59, %v2193_v58  ;;  %vm2211_vm2 = vc.u32 %v5973_v56, %v5962_v43  ;;  %v2272_v53 = vand.u32 31, %v2270_v60  ;;  %v4835_v9 = vadd.s32 4294967294, %v3886_v54 }
  0xcd   : > { %v2213_v52 = vsel %vm2211_vm2, %v2212_v63, %v5963_v44  ;;  %v5981_v10 = vsub.s32 %v3982_v6, %v3985_v51  ;;  %v2265_v11 = vand.u32 8388607, %v9127_v47  ;;  %v2271_v24 = vshrl.u32 %v2270_v60, 5  ;;  %v654_v60 = vpop.permute.xlu1 %653 }
  0xce   : > { %v2214_v7 = vadd.s32 %v2213_v52, %v2209_v1  ;;  %v2273_v8 = vsub.s32 32, %v2272_v53  ;;  %v2275_v49 = vshll.u32 %v9145_v57, %v2272_v53  ;;  %v2278_v59 = vshll.u32 %v9143_v62, %v2272_v53 }
  0xcf   : > { %vm4836_vm3 = vcmp.lt.s32.totalorder %v4835_v9, 0  ;;  %v3988_v6 = vsub.s32 0, %v5981_v10  ;;  %v2266_v23 = vor.u32 8388608, %v2265_v11  ;;  %v2281_v28 = vshll.u32 %v9136_v0, %v2272_v53 }
  0xd0   : > { %v2215_v13 = vadd.s32 536870912, %v2214_v7  ;;  %v2276_v16 = vshrl.u32 %v9143_v62, %v2273_v8  ;;  %v2279_v17 = vshrl.u32 %v9136_v0, %v2273_v8  ;;  %v2282_v20 = vshrl.u32 %v9134_v2, %v2273_v8 }
  0xd1   : > { %v2284_v30 = vshll.u32 %v9134_v2, %v2272_v53  ;;  %v2285_v31 = vshrl.u32 %v9140_v4, %v2273_v8  ;;  %v2287_v32 = vshll.u32 %v9140_v4, %v2272_v53  ;;  %v2288_v33 = vshrl.u32 %v9138_v12, %v2273_v8 }
  0xd2   : > { %v5987_v18 = vshrl.u32 %v2215_v13, 30  ;;  %v2277_v25 = vor.u32 %v2276_v16, %v2275_v49  ;;  %v2280_v27 = vor.u32 %v2279_v17, %v2278_v59  ;;  %v2283_v36 = vor.u32 %v2282_v20, %v2281_v28 }
  0xd3   : > { %v6001_v40 = vsel %vm4836_vm3, 0, %v4835_v9  ;;  %v2286_v44 = vor.u32 %v2285_v31, %v2284_v30  ;;  %v2289_v45 = vor.u32 %v2288_v33, %v2287_v32  ;;  %v471_v46 = vmul.f32 %v5760_v5, %v424_v3  ;;  %v339_v9 = vpop.permute.xlu0 %338 }
  0xd4   : > { %9350 = vst [vmem:[#allocation6_spill] sm:$0xff] %v5987_v18  ;;  %v2217_v35 = vshll.u32 %v5987_v18, 30  ;;  %v4838_v48 = vmin.u32 %v3988_v6, %v5981_v10  ;;  %vm2290_vm4 = vcmp.lt.s32.totalorder %v2271_v24, 1  ;;  %vm2293_vm5 = vcmp.lt.s32.totalorder %v2271_v24, 4 }
  0xd5   : > { %v2306_v58 = vshll.u32 %v2266_v23, 8  ;;  %v2274_v54 = vshrl.u32 %v9145_v57, %v2273_v8  ;;  %vm2292_vm6 = vcmp.lt.s32.totalorder %v2271_v24, 3  ;;  %v2298_v51 = vsel %vm2290_vm4, %v2277_v25, %v2280_v27 }
  0xd6   : > { %v2299_v63 = vsel %vm2293_vm5, %v2286_v44, 920167782  ;;  %v6007_v1 = vsub.s32 %v2214_v7, %v2217_v35  ;;  %vm2291_vm7 = vcmp.lt.s32.totalorder %v2271_v24, 2  ;;  %v2295_v53 = vsel %vm2293_vm5, %v2283_v36, 2102212464 }
  0xd7   : > { %v2300_v52 = vsel %vm2292_vm6, %v2283_v36, %v2299_v63  ;;  %v2302_v11 = vsel %vm2290_vm4, %v2280_v27, %v2283_v36  ;;  %v2303_v13 = vsel %vm2293_vm5, %v2289_v45, 1326507024  ;;  %v6011_v16 = vadd.f32 %v654_v60, %v471_v46  ;;  %v649_v35 = vpop.permute.xlu0 %648 }
  0xd8   : > { %v2301_v3 = vsel %vm2291_vm7, %v2298_v51, %v2300_v52  ;;  %v3990_v17 = vclz %v4838_v48  ;;  %v2294_v8 = vsel %vm2290_vm4, %v2274_v54, %v2277_v25  ;;  %v2304_v49 = vsel %vm2292_vm6, %v2286_v44, %v2303_v13 }
  0xd9   : > { %9351 = vst [vmem:[#allocation7_spill] sm:$0xff] %v6011_v16  ;;  %v2296_v59 = vsel %vm2292_vm6, %v2280_v27, %v2295_v53  ;;  %v2305_v20 = vsel %vm2291_vm7, %v2302_v11, %v2304_v49  ;;  %v6015_v7 = vmul.u32.u64.low %v2306_v58, %v2301_v3  ;;  %v6016_v6 = vmul.u32.u64.high %v2306_v58, %v2301_v3, %v6015_v7 }
  0xda   : > { %v3894_v23 = vsub.s32 4294967266, %v6001_v40  ;;  %v2220_v28 = vsub.s32 0, %v6007_v1  ;;  %v6021_v30 = vmul.u32.u64.low %v2306_v58, %v2305_v20  ;;  %v6022_v31 = vmul.u32.u64.high %v2306_v58, %v2305_v20, %v6021_v30 }
  0xdb   : > { %v3717_v32 = vand.u32 2139095040, %v6011_v16  ;;  %v4839_v33 = vadd.s32 4294967294, %v3990_v17  ;;  %v2297_v25 = vsel %vm2291_vm7, %v2294_v8, %v2296_v59  ;;  %v3890_v27 = vsub.s32 32, %v6001_v40  ;;  %v574_v59 = vpop.permute.xlu1 %573 }
  0xdc   : > { %v2316_v36 = vadd.s32 1, %v6016_v6  ;;  %v470_v44 = vmul.f32 %v5760_v5, %v419_v29  ;;  %v3874_v46 = vadd.s32 %v5882_v55, %v5879_v50  ;;  %v3895_v48 = vadd.s32 127, %v3894_v23 }
  0xdd   : > { %v3718_v45 = vshrl.u32 %v3717_v32, 23  ;;  %v4770_v60 = vmin.u32 %v2220_v28, %v6007_v1  ;;  %v2313_v54 = vmul.u32 %v2306_v58, %v2297_v25  ;;  %vm2315_vm8 = vc.u32 %v6022_v31, %v6015_v7 }
  0xde   : > { %v6034_v51 = vadd.f32 %v649_v35, %v470_v44  ;;  %vm4840_vm9 = vcmp.lt.s32.totalorder %v4839_v33, 0  ;;  %v2317_v63 = vsel %vm2315_vm8, %v2316_v36, %v6016_v6  ;;  %v3892_v53 = vshrl.u32 %v3874_v46, %v3890_v27 }
  0xdf   : > { %v4829_v24 = vadd.s32 4294967169, %v3718_v45  ;;  %v6037_v52 = vadd.s32 %v2317_v63, %v2313_v54  ;;  %v3891_v50 = vshll.u32 %v5944_v61, %v6001_v40  ;;  %v3896_v55 = vshll.u32 %v3895_v48, 23 }
  0xe0   : > { %9352 = vst [vmem:[#allocation8_spill] sm:$0xff] %v6034_v51  ;;  %v2222_v3 = vclz %v4770_v60  ;;  %v6041_v11 = vsel %vm4840_vm9, 0, %v4839_v33  ;;  %v9132_v58 = vand.u32 2147483647, %v6011_v16  ;;  %v3613_v13 = vand.u32 2139095040, %v6034_v51 }
  0xe1   : > { %v3724_v29 = vadd.s32 1, %v4829_v24  ;;  %v2319_v17 = vadd.s32 536870912, %v6037_v52  ;;  %v455_v8 = vmul.f32 %v5760_v5, %v5992_v22  ;;  %v6048_v20 = vor.u32 %v3892_v53, %v3891_v50 }
  0xe2   : > { %v6052_v61 = vadd.s32 %v5923_v34, %v5929_v37  ;;  %v6055_v40 = vmul.f32 %v5760_v5, %v339_v9  ;;  %v6057_v23 = vor.u32 4788187, %v3896_v55  ;;  %v3994_v28 = vsub.s32 32, %v6041_v11 }
  0xe3   : > { %vm3725_vm10 = vcmp.gt.s32.totalorder %v3724_v29, 0  ;;  %v3998_v30 = vsub.s32 4294967266, %v6041_v11  ;;  %v6061_v32 = vadd.s32 4294967294, %v2222_v3  ;;  %v3721_v22 = vand.u32 8388607, %v9132_v58 }
  0xe4   : > { %v3726_v49 = vsel %vm3725_vm10, %v3724_v29, 0  ;;  %v3614_v25 = vshrl.u32 %v3613_v13, 23  ;;  %v6065_v35 = vadd.f32 %v574_v59, %v455_v8  ;;  %v6067_v34 = vshrl.u32 %v2319_v17, 30  ;;  %v4094_v59 = vld [vmem:[%s9125_s4 + $0xa0] sm:$0xff] }
  0xe5   : > { %v3728_v6 = vand.u32 31, %v3726_v49  ;;  %v3727_v5 = vshrl.u32 %v3726_v49, 5  ;;  %v3722_v24 = vor.u32 8388608, %v3721_v22  ;;  %v9131_v29 = vand.u32 2147483647, %v6034_v51  ;;  %v4095_v49 = vld [vmem:[%s9125_s4 + $0xa8] sm:$0xff]  ;;  %4208 = vperm.xlu0 %5199, %v4094_v59  }
  0xe6   : > { %9353 = vst [vmem:[#allocation9_spill] sm:$0xff] %v6065_v35  ;;  %9354 = vst [vmem:[#allocation10_spill] sm:$0xff] %v6067_v34  ;;  %v4825_v13 = vadd.s32 4294967169, %v3614_v25  ;;  %v2321_v17 = vshll.u32 %v6067_v34, 30  ;;  %4213 = vperm.xlu1 %5200, %v4095_v49   ;;  %v4097_v49 = vld [vmem:[%s9125_s4 + $0xb8] sm:$0xff]  ;;  %vm4772_vm0 = vcmp.lt.s32.totalorder %v6061_v32, 0 }
  0xe7   : > { %v3729_v33 = vsub.s32 32, %v3728_v6  ;;  %v3731_v37 = vshll.u32 %v9145_v57, %v3728_v6  ;;  %v3734_v9 = vshll.u32 %v9143_v62, %v3728_v6  ;;  %v3737_v44 = vshll.u32 %v9136_v0, %v3728_v6 }
  0xe8   : > { %v3740_v45 = vshll.u32 %v9134_v2, %v3728_v6  ;;  %v3743_v60 = vshll.u32 %v9140_v4, %v3728_v6  ;;  %vm3746_vm11 = vcmp.lt.s32.totalorder %v3727_v5, 1  ;;  %vm3749_vm12 = vcmp.lt.s32.totalorder %v3727_v5, 4 }
  0xe9   : > { %v3732_v27 = vshrl.u32 %v9143_v62, %v3729_v33  ;;  %v3735_v36 = vshrl.u32 %v9136_v0, %v3729_v33  ;;  %v3738_v46 = vshrl.u32 %v9134_v2, %v3729_v33  ;;  %v3741_v48 = vshrl.u32 %v9140_v4, %v3729_v33 }
  0xea   : > { %v3744_v54 = vshrl.u32 %v9138_v12, %v3729_v33  ;;  %v3730_v8 = vshrl.u32 %v9145_v57, %v3729_v33  ;;  %vm3748_vm13 = vcmp.lt.s32.totalorder %v3727_v5, 3  ;;  %vm3747_vm14 = vcmp.lt.s32.totalorder %v3727_v5, 2  ;;  %4223 = vperm.xlu1 %5200, %v4097_v49   ;;  %v4099_v5 = vld [vmem:[%s9125_s4 + $0xc8] sm:$0xff] }
  0xeb   : > { %v3733_v63 = vor.u32 %v3732_v27, %v3731_v37  ;;  %v3736_v53 = vor.u32 %v3735_v36, %v3734_v9  ;;  %v3739_v50 = vor.u32 %v3738_v46, %v3737_v44  ;;  %v3742_v55 = vor.u32 %v3741_v48, %v3740_v45 }
  0xec   : > { %v3745_v3 = vor.u32 %v3744_v54, %v3743_v60  ;;  %v3762_v33 = vshll.u32 %v3722_v24, 8  ;;  %v3620_v45 = vadd.s32 1, %v4825_v13  ;;  %v6100_v24 = vsub.s32 %v6037_v52, %v2321_v17 }
  0xed   : > { %v3751_v6 = vsel %vm3749_vm12, %v3739_v50, 2102212464  ;;  %v3754_v22 = vsel %vm3746_vm11, %v3733_v63, %v3736_v53  ;;  %v3755_v37 = vsel %vm3749_vm12, %v3742_v55, 920167782  ;;  %v3758_v9 = vsel %vm3746_vm11, %v3736_v53, %v3739_v50 }
  0xee   : > { %v3756_v25 = vsel %vm3748_vm13, %v3739_v50, %v3755_v37  ;;  %v3750_v27 = vsel %vm3746_vm11, %v3730_v8, %v3733_v63  ;;  %v3759_v44 = vsel %vm3749_vm12, %v3745_v3, 1326507024  ;;  %v3752_v46 = vsel %vm3748_vm13, %v3736_v53, %v3751_v6  ;;  %v4096_v50 = vld [vmem:[%s9125_s4 + $0xb0] sm:$0xff]  ;;  %4233 = vperm.xlu1 %5200, %v4099_v5  }
  0xef   : > { %v3757_v36 = vsel %vm3747_vm14, %v3754_v22, %v3756_v25  ;;  %v3760_v48 = vsel %vm3748_vm13, %v3742_v55, %v3759_v44  ;;  %v3617_v53 = vand.u32 8388607, %v9131_v29  ;;  %vm3621_vm15 = vcmp.gt.s32.totalorder %v3620_v45, 0  ;;  %4218 = vperm.xlu0 %5199, %v4096_v50  }
  0xf0   : > { %v6089_v60 = vmul.u32.u64.low %v3762_v33, %v3757_v36  ;;  %v6090_v54 = vmul.u32.u64.high %v3762_v33, %v3757_v36, %v6089_v60  ;;  %v3761_v63 = vsel %vm3747_vm14, %v3758_v9, %v3760_v48  ;;  %v3622_v13 = vsel %vm3621_vm15, %v3620_v45, 0 }
  0xf1   : > { %v6105_v55 = vmul.u32.u64.low %v3762_v33, %v3761_v63  ;;  %v6106_v3 = vmul.u32.u64.high %v3762_v33, %v3761_v63, %v6105_v55  ;;  %v2053_v8 = vand.u32 2139095040, %v6065_v35  ;;  %v3898_v59 = vand.u32 2147483647, %v6057_v23 }
  0xf2   : > { %v3900_v6 = vcvt.s32.f32 %v6048_v20  ;;  %v3753_v52 = vsel %vm3747_vm14, %v3750_v27, %v3752_v46  ;;  %v3624_v17 = vand.u32 31, %v3622_v13  ;;  %v3995_v22 = vshll.u32 %v5981_v10, %v6041_v11  ;;  %v4098_v27 = vld [vmem:[%s9125_s4 + $0xc0] sm:$0xff] }
  0xf3   : > { %v6117_v37 = vshrl.u32 %v6052_v61, %v3994_v28  ;;  %v6121_v25 = vadd.s32 127, %v3998_v30  ;;  %v3772_v9 = vadd.s32 1, %v6090_v54  ;;  %v2324_v36 = vsub.s32 0, %v6100_v24  ;;  %4228 = vperm.xlu0 %5199, %v4098_v27  }
  0xf4   : > { %v3618_v61 = vor.u32 8388608, %v3617_v53  ;;  %v3625_v28 = vsub.s32 32, %v3624_v17  ;;  %v3769_v30 = vmul.u32 %v3762_v33, %v3753_v52  ;;  %vm3771_vm1 = vc.u32 %v6106_v3, %v6089_v60 }
  0xf5   : > { %v3627_v44 = vshll.u32 %v9145_v57, %v3624_v17  ;;  %v2054_v45 = vshrl.u32 %v2053_v8, 23  ;;  %v3773_v46 = vsel %vm3771_vm1, %v3772_v9, %v6090_v54  ;;  %v3630_v49 = vshll.u32 %v9143_v62, %v3624_v17 }
  0xf6   : > { %v3628_v48 = vshrl.u32 %v9143_v62, %v3625_v28  ;;  %v3631_v50 = vshrl.u32 %v9136_v0, %v3625_v28  ;;  %v3774_v63 = vadd.s32 %v3773_v46, %v3769_v30  ;;  %v3623_v53 = vshrl.u32 %v3622_v13, 5 }
  0xf7   : > { %v3633_v55 = vshll.u32 %v9136_v0, %v3624_v17  ;;  %v3634_v33 = vshrl.u32 %v9134_v2, %v3625_v28  ;;  %v3636_v27 = vshll.u32 %v9134_v2, %v3624_v17  ;;  %v3637_v8 = vshrl.u32 %v9140_v4, %v3625_v28 }
  0xf8   : > { %v3629_v52 = vor.u32 %v3628_v48, %v3627_v44  ;;  %v3632_v5 = vor.u32 %v3631_v50, %v3630_v49  ;;  %v4000_v54 = vshll.u32 %v6121_v25, 23  ;;  %v6147_v9 = vsel %vm4772_vm0, 0, %v6061_v32 }
  0xf9   : > { %v3775_v47 = vadd.s32 536870912, %v3774_v63  ;;  %v3635_v30 = vor.u32 %v3634_v33, %v3633_v55  ;;  %v3638_v13 = vor.u32 %v3637_v8, %v3636_v27  ;;  %v3639_v46 = vshll.u32 %v9140_v4, %v3624_v17 }
  0xfa   : > { %v3640_v42 = vshrl.u32 %v9138_v12, %v3625_v28  ;;  %v3658_v44 = vshll.u32 %v3618_v61, 8  ;;  %v4774_v48 = vmin.u32 %v2324_v36, %v6100_v24  ;;  %vm3642_vm2 = vcmp.lt.s32.totalorder %v3623_v53, 1 }
  0xfb   : > { %v6152_v49 = vshrl.u32 %v3775_v47, 30  ;;  %v4765_v50 = vadd.s32 4294967169, %v2054_v45  ;;  %v3626_v25 = vshrl.u32 %v9145_v57, %v3625_v28  ;;  %vm3645_vm3 = vcmp.lt.s32.totalorder %v3623_v53, 4 }
  0xfc   : > { %v3641_v21 = vor.u32 %v3640_v42, %v3639_v46  ;;  %v3650_v32 = vsel %vm3642_vm2, %v3629_v52, %v3632_v5  ;;  %vm3644_vm4 = vcmp.lt.s32.totalorder %v3623_v53, 3  ;;  %v3647_v33 = vsel %vm3645_vm3, %v3635_v30, 2102212464 }
  0xfd   : > { %9355 = vst [vmem:[#allocation11_spill] sm:$0xff] %v6152_v49  ;;  %v3777_v55 = vshll.u32 %v6152_v49, 30  ;;  %v3651_v17 = vsel %vm3645_vm3, %v3638_v13, 920167782  ;;  %vm3643_vm5 = vcmp.lt.s32.totalorder %v3623_v53, 2  ;;  %v3654_v61 = vsel %vm3642_vm2, %v3632_v5, %v3635_v30 }
  0xfe   : > { %v3652_v27 = vsel %vm3644_vm4, %v3635_v30, %v3651_v17  ;;  %v3655_v36 = vsel %vm3645_vm3, %v3641_v21, 1326507024  ;;  %v2230_v47 = vsub.s32 4294967266, %v6147_v9  ;;  %v3646_v28 = vsel %vm3642_vm2, %v3626_v25, %v3629_v52  ;;  %v569_v25 = vpop.permute.xlu0 %568 }
  0xff   : > { %v6159_v8 = vsub.s32 %v3774_v63, %v3777_v55  ;;  %v3653_v42 = vsel %vm3643_vm5, %v3650_v32, %v3652_v27  ;;  %v3648_v45 = vsel %vm3644_vm4, %v3632_v5, %v3647_v33  ;;  %v3656_v46 = vsel %vm3644_vm4, %v3638_v13, %v3655_v36 }
 0x100   : > { %v6163_v19 = vmul.u32.u64.low %v3658_v44, %v3653_v42  ;;  %v6164_v29 = vmul.u32.u64.high %v3658_v44, %v3653_v42, %v6163_v19  ;;  %v2326_v58 = vclz %v4774_v48  ;;  %v3657_v30 = vsel %vm3643_vm5, %v3654_v61, %v3656_v46 }
 0x101   : > { %v3780_v17 = vsub.s32 0, %v6159_v8  ;;  %v9133_v21 = vand.u32 2147483647, %v6065_v35  ;;  %v6174_v63 = vmul.f32 %v3900_v6, %v3898_v59  ;;  %v2060_v13 = vadd.s32 1, %v4765_v50 }
 0x102   : > { %v6176_v52 = vmul.u32.u64.low %v3658_v44, %v3657_v30  ;;  %v6177_v5 = vmul.u32.u64.high %v3658_v44, %v3657_v30, %v6176_v52  ;;  %v6183_v48 = vor.u32 %v6117_v37, %v3995_v22  ;;  %v6185_v32 = vor.u32 4788187, %v4000_v54 }
 0x103   : > { %v4830_v55 = vmin.u32 %v3780_v17, %v6159_v8  ;;  %v3649_v23 = vsel %vm3643_vm5, %v3646_v28, %v3648_v45  ;;  %v2210_v20 = vadd.s32 %v5962_v43, %v5973_v56  ;;  %v2231_v59 = vadd.s32 127, %v2230_v47 }
 0x104   : > { %v3668_v6 = vadd.s32 1, %v6164_v29  ;;  %vm2061_vm6 = vcmp.gt.s32.totalorder %v2060_v13, 0  ;;  %v4775_v50 = vadd.s32 4294967294, %v2326_v58  ;;  %v2057_v10 = vand.u32 8388607, %v9133_v21 }
 0x105   : > { %v2062_v11 = vsel %vm2061_vm6, %v2060_v13, 0  ;;  %v6195_v22 = vadd.f32 %v569_v25, %v6055_v40  ;;  %v3782_v37 = vclz %v4830_v55  ;;  %v3665_v54 = vmul.u32 %v3658_v44, %v3649_v23 }
 0x106   : > { %vm3667_vm7 = vc.u32 %v6177_v5, %v6163_v19  ;;  %v2064_v53 = vand.u32 31, %v2062_v11  ;;  %v3902_v43 = vxor.u32 2147483648, %v6174_v63  ;;  %v4002_v56 = vand.u32 2147483647, %v6185_v32 }
 0x107   : > { %9356 = vst [vmem:[#allocation12_spill] sm:$0xff] %v6195_v22  ;;  %v4004_v33 = vcvt.s32.f32 %v6183_v48  ;;  %v3669_v58 = vsel %vm3667_vm7, %v3668_v6, %v6164_v29  ;;  %v2226_v27 = vsub.s32 32, %v6147_v9  ;;  %v2227_v40 = vshll.u32 %v6007_v1, %v6147_v9 }
 0x108   : > { %v3670_v61 = vadd.s32 %v3669_v58, %v3665_v54  ;;  %v2065_v36 = vsub.s32 32, %v2064_v53  ;;  %v2232_v44 = vshll.u32 %v2231_v59, 23  ;;  %vm4776_vm8 = vcmp.lt.s32.totalorder %v4775_v50, 0 }
 0x109   : > { %v2058_v47 = vor.u32 8388608, %v2057_v10  ;;  %v1949_v28 = vand.u32 2139095040, %v6195_v22  ;;  %v4831_v42 = vadd.s32 4294967294, %v3782_v37  ;;  %v2063_v46 = vshrl.u32 %v2062_v11, 5 }
 0x10a   : > { %v3671_v45 = vadd.s32 536870912, %v3670_v61  ;;  %v2068_v17 = vshrl.u32 %v9143_v62, %v2065_v36  ;;  %v2067_v30 = vshll.u32 %v9145_v57, %v2064_v53  ;;  %v2070_v29 = vshll.u32 %v9143_v62, %v2064_v53 }
 0x10b   : > { %v2071_v52 = vshrl.u32 %v9136_v0, %v2065_v36  ;;  %v2073_v1 = vshll.u32 %v9136_v0, %v2064_v53  ;;  %v2074_v13 = vshrl.u32 %v9134_v2, %v2065_v36  ;;  %v2076_v25 = vshll.u32 %v9134_v2, %v2064_v53 }
 0x10c   : > { %v6212_v9 = vshrl.u32 %v3671_v45, 30  ;;  %v2077_v55 = vshrl.u32 %v9140_v4, %v2065_v36  ;;  %v2069_v23 = vor.u32 %v2068_v17, %v2067_v30  ;;  %v2079_v6 = vshll.u32 %v9140_v4, %v2064_v53 }
 0x10d   : > { %v2072_v59 = vor.u32 %v2071_v52, %v2070_v29  ;;  %v2080_v10 = vshrl.u32 %v9138_v12, %v2065_v36  ;;  %vm9250_vm9 = vcmp.lt.s32.totalorder %v5770_v14, 0  ;;  %v2228_v11 = vshrl.u32 %v2210_v20, %v2226_v27 }
 0x10e   : > { %9357 = vst [vmem:[#allocation13_spill] sm:$0xff] %v6212_v9  ;;  %v3673_v37 = vshll.u32 %v6212_v9, 30  ;;  %v2075_v54 = vor.u32 %v2074_v13, %v2073_v1  ;;  %v2078_v58 = vor.u32 %v2077_v55, %v2076_v25  ;;  %v2233_v45 = vor.u32 4788187, %v2232_v44 }
 0x10f   : > { %v6222_v21 = vsel %vm4776_vm8, 0, %v4775_v50  ;;  %v2081_v2 = vor.u32 %v2080_v10, %v2079_v6  ;;  %v2098_v0 = vshll.u32 %v2058_v47, 8  ;;  %vm4832_vm10 = vcmp.lt.s32.totalorder %v4831_v42, 0 }
 0x110   : > { %v6224_v17 = vsub.s32 %v3670_v61, %v3673_v37  ;;  %vm2082_vm11 = vcmp.lt.s32.totalorder %v2063_v46, 1  ;;  %v1950_v53 = vshrl.u32 %v1949_v28, 23  ;;  %v2066_v30 = vshrl.u32 %v9145_v57, %v2065_v36 }
 0x111   : > { %vm2084_vm12 = vcmp.lt.s32.totalorder %v2063_v46, 3  ;;  %vm2085_vm13 = vcmp.lt.s32.totalorder %v2063_v46, 4  ;;  %v2090_v20 = vsel %vm2082_vm11, %v2069_v23, %v2072_v59  ;;  %v2094_v44 = vsel %vm2082_vm11, %v2072_v59, %v2075_v54 }
 0x112   : > { %v3676_v27 = vsub.s32 0, %v6224_v17  ;;  %v2087_v29 = vsel %vm2085_vm13, %v2075_v54, 2102212464  ;;  %v2091_v52 = vsel %vm2085_vm13, %v2078_v58, 920167782  ;;  %v3785_v1 = vsel %vm4832_vm10, 0, %v4831_v42 }
 0x113   : > { %vm2083_vm14 = vcmp.lt.s32.totalorder %v2063_v46, 2  ;;  %v2092_v50 = vsel %vm2084_vm12, %v2075_v54, %v2091_v52  ;;  %v2095_v13 = vsel %vm2085_vm13, %v2081_v2, 1326507024  ;;  %v2086_v61 = vsel %vm2082_vm11, %v2066_v30, %v2069_v23  ;;  %v4101_v2 = vld [vmem:[%s9125_s4 + $0xd8] sm:$0xff]  ;;  %v4100_v23 = vld [vmem:[%s9125_s4 + $0xd0] sm:$0xff] }
 0x114   : > { %v4826_v47 = vmin.u32 %v3676_v27, %v6224_v17  ;;  %v2093_v25 = vsel %vm2083_vm14, %v2090_v20, %v2092_v50  ;;  %v2096_v28 = vsel %vm2084_vm12, %v2078_v58, %v2095_v13  ;;  %v2088_v55 = vsel %vm2084_vm12, %v2072_v59, %v2087_v29  ;;  %v414_v58 = vpop.permute.xlu1 %413  ;;  %4243 = vperm.xlu1 %5200, %v4101_v2  }
 0x115   : > { %v2097_v36 = vsel %vm2083_vm14, %v2094_v44, %v2096_v28  ;;  %v6231_v6 = vmul.u32.u64.low %v2098_v0, %v2093_v25  ;;  %v6232_v10 = vmul.u32.u64.high %v2098_v0, %v2093_v25, %v6231_v6  ;;  %v4761_v42 = vadd.s32 4294967169, %v1950_v53  ;;  %4238 = vperm.xlu0 %5199, %v4100_v23   ;;  %v409_v44 = vpop.permute.xlu0 %408 }
 0x116   : > { %v3678_v37 = vclz %v4826_v47  ;;  %v6235_v12 = vmul.u32.u64.low %v2098_v0, %v2097_v36  ;;  %v6236_v4 = vmul.u32.u64.high %v2098_v0, %v2097_v36, %v6235_v12  ;;  %v6249_v59 = vsel %vm9250_vm9, %v3902_v43, %v6174_v63  ;;  %v6284_v36 = vld [vmem:[%s5751_s24] ss:$0 sm:$0xff] }
 0x117   : > { %v6255_v12 = vmul.f32 %v4004_v33, %v4002_v56  ;;  %v2229_v54 = vor.u32 %v2228_v11, %v2227_v40  ;;  %v3786_v53 = vsub.s32 32, %v3785_v1  ;;  %v3790_v30 = vsub.s32 4294967266, %v3785_v1 }
 0x118   : > { %v2089_v20 = vsel %vm2083_vm14, %v2086_v61, %v2088_v55  ;;  %v1956_v27 = vadd.s32 1, %v4761_v42  ;;  %v2234_v29 = vand.u32 2147483647, %v2233_v45  ;;  %v2314_v63 = vadd.s32 %v6015_v7, %v6022_v31  ;;  %v6274_v47 = vpop.permute.xlu1 %333 }
 0x119   : > { %v2330_v43 = vsub.s32 32, %v6222_v21  ;;  %v2108_v32 = vadd.s32 1, %v6232_v10  ;;  %v2334_v48 = vsub.s32 4294967266, %v6222_v21  ;;  %v3770_v56 = vadd.s32 %v6089_v60, %v6106_v3 }
 0x11a   : > { %v4827_v33 = vadd.s32 4294967294, %v3678_v37  ;;  %vm2107_vm15 = vc.u32 %v6236_v4, %v6231_v6  ;;  %v2236_v40 = vcvt.s32.f32 %v2229_v54  ;;  %v2105_v46 = vmul.u32 %v2098_v0, %v2089_v20 }
 0x11b   : > { %v2109_v11 = vsel %vm2107_vm15, %v2108_v32, %v6232_v10  ;;  %vm1957_vm0 = vcmp.gt.s32.totalorder %v1956_v27, 0  ;;  %v3788_v31 = vshrl.u32 %v3770_v56, %v3786_v53  ;;  %v3791_v45 = vadd.s32 127, %v3790_v30 }
 0x11c   : > { %v9142_v52 = vand.u32 2147483647, %v6195_v22  ;;  %v6270_v50 = vmul.f32 %v2236_v40, %v2234_v29  ;;  %v6272_v60 = vshrl.u32 %v2314_v63, %v2330_v43  ;;  %v2110_v3 = vadd.s32 %v2109_v11, %v2105_v46 }
 0x11d   : > { %v1958_v13 = vsel %vm1957_vm0, %v1956_v27, 0  ;;  %v6276_v0 = vadd.s32 127, %v2334_v48  ;;  %v3787_v61 = vshll.u32 %v6159_v8, %v3785_v1  ;;  %vm4828_vm1 = vcmp.lt.s32.totalorder %v4827_v33, 0 }
 0x11e   : > { %v1960_v25 = vand.u32 31, %v1958_v13  ;;  %v6281_v28 = vadd.s32 %v6163_v19, %v6177_v5  ;;  %v2111_v55 = vadd.s32 536870912, %v2110_v3  ;;  %v469_v10 = vmul.f32 %v6284_v36, %v414_v58 }
 0x11f   : > { %v468_v37 = vmul.f32 %v6284_v36, %v409_v44  ;;  %v6288_v42 = vor.u32 %v3788_v31, %v3787_v61  ;;  %v3792_v2 = vshll.u32 %v3791_v45, 23  ;;  %v1953_v23 = vand.u32 8388607, %v9142_v52  ;;  %v6311_v44 = vpop.permute.xlu0 %328 }
 0x120   : > { %v1961_v8 = vsub.s32 32, %v1960_v25  ;;  %v6292_v1 = vsel %vm4828_vm1, 0, %v4827_v33  ;;  %v6294_v54 = vshrl.u32 %v2111_v55, 30  ;;  %v6296_v19 = vshrl.u32 %v1958_v13, 5  ;;  %v644_v33 = vpop.permute.xlu1 %643 }
 0x121   : > { %v1963_v5 = vshll.u32 %v9145_v57, %v1960_v25  ;;  %v1966_v58 = vshll.u32 %v9143_v62, %v1960_v25  ;;  %v9359_v30 = vmov 2131351028   ;;  %v9360_v27 = vmov 2102212464  }
 0x122   : > { %9358 = vst [vmem:[#allocation14_spill] sm:$0xff] %v6294_v54  ;;  %v1964_v53 = vshrl.u32 %v9143_v62, %v1961_v8  ;;  %v1969_v20 = vshll.u32 %v9359_v30, %v1960_v25  ;;  %v1972_v29 = vshll.u32 %v9360_v27, %v1960_v25  ;;  %v2113_v63 = vshll.u32 %v6294_v54, 30 }
 0x123   : > { %v1967_v43 = vshrl.u32 %v9359_v30, %v1961_v8  ;;  %v1970_v32 = vshrl.u32 %v9360_v27, %v1961_v8  ;;  %v9361_v48 = vmov 920167782   ;;  %v6307_v40 = vor.u32 4788187, %v3792_v2 }
 0x124   : > { %v1973_v56 = vshrl.u32 %v9361_v48, %v1961_v8  ;;  %v1965_v46 = vor.u32 %v1964_v53, %v1963_v5  ;;  %v1975_v11 = vshll.u32 %v9361_v48, %v1960_v25  ;;  %v9362_v31 = vmov 1326507024  }
 0x125   : > { %v1976_v45 = vshrl.u32 %v9362_v31, %v1961_v8  ;;  %vm9220_vm2 = vcmp.lt.s32.totalorder %v5772_v15, 0  ;;  %v6314_v13 = vsub.s32 %v2110_v3, %v2113_v63  ;;  %v1968_v61 = vor.u32 %v1967_v43, %v1966_v58 }
 0x126   : > { %v1971_v55 = vor.u32 %v1970_v32, %v1969_v20  ;;  %v1974_v52 = vor.u32 %v1973_v56, %v1972_v29  ;;  %v3686_v62 = vsub.s32 4294967266, %v6292_v1  ;;  %v1954_v7 = vor.u32 8388608, %v1953_v23  ;;  %v639_v56 = vpop.permute.xlu0 %638 }
 0x127   : > { %v1977_v57 = vor.u32 %v1976_v45, %v1975_v11  ;;  %v6317_v2 = vadd.f32 %v644_v33, %v469_v10  ;;  %v2116_v5 = vsub.s32 0, %v6314_v13  ;;  %v9364_v25 = vmov 683565275  }
 0x128   : > { %v1962_v53 = vshrl.u32 %v9364_v25, %v1961_v8  ;;  %vm1978_vm3 = vcmp.lt.s32.totalorder %v6296_v19, 1  ;;  %vm1981_vm4 = vcmp.lt.s32.totalorder %v6296_v19, 4  ;;  %vm1979_vm5 = vcmp.lt.s32.totalorder %v6296_v19, 2 }
 0x129   : > { %9363 = vst [vmem:[#allocation15_spill] sm:$0xff] %v6317_v2  ;;  %vm1980_vm6 = vcmp.lt.s32.totalorder %v6296_v19, 3  ;;  %v1986_v3 = vsel %vm1978_vm3, %v1965_v46, %v1968_v61  ;;  %v1987_v58 = vsel %vm1981_vm4, %v1974_v52, 920167782  ;;  %v4766_v23 = vmin.u32 %v2116_v5, %v6314_v13 }
 0x12a   : > { %v1983_v10 = vsel %vm1981_vm4, %v1971_v55, 2102212464  ;;  %v1988_v20 = vsel %vm1980_vm6, %v1971_v55, %v1987_v58  ;;  %v1990_v8 = vsel %vm1978_vm3, %v1968_v61, %v1971_v55  ;;  %v1991_v63 = vsel %vm1981_vm4, %v1977_v57, 1326507024 }
 0x12b   : > { %v1989_v29 = vsel %vm1979_vm5, %v1986_v3, %v1988_v20  ;;  %v1994_v43 = vshll.u32 %v1954_v7, 8  ;;  %v3509_v32 = vand.u32 2139095040, %v6317_v2  ;;  %vm9214_vm7 = vcmp.lt.s32.totalorder %v5787_v26, 0 }
 0x12c   : > { %v3682_v33 = vsub.s32 32, %v6292_v1  ;;  %v3687_v11 = vadd.s32 127, %v3686_v62  ;;  %v1982_v45 = vsel %vm1978_vm3, %v1962_v53, %v1965_v46  ;;  %v1992_v5 = vsel %vm1980_vm6, %v1974_v52, %v1991_v63 }
 0x12d   : > { %v1984_v55 = vsel %vm1980_vm6, %v1968_v61, %v1983_v10  ;;  %v1993_v57 = vsel %vm1979_vm5, %v1990_v8, %v1992_v5  ;;  %v6345_v7 = vmul.u32.u64.low %v1994_v43, %v1989_v29  ;;  %v6346_v3 = vmul.u32.u64.high %v1994_v43, %v1989_v29, %v6345_v7 }
 0x12e   : > { %v2118_v58 = vclz %v4766_v23  ;;  %v6349_v20 = vmul.u32.u64.low %v1994_v43, %v1993_v57  ;;  %v6350_v54 = vmul.u32.u64.high %v1994_v43, %v1993_v57, %v6349_v20  ;;  %v6352_v62 = vadd.f32 %v639_v56, %v468_v37 }
 0x12f   : > { %v9365_v46 = vxor.u32 2147483648, %v6255_v12  ;;  %v2331_v61 = vshll.u32 %v6100_v24, %v6222_v21  ;;  %v2336_v53 = vshll.u32 %v6276_v0, 23  ;;  %v3510_v10 = vshrl.u32 %v3509_v32, 23 }
 0x130   : > { %v3794_v23 = vand.u32 2147483647, %v6307_v40  ;;  %v3684_v8 = vshrl.u32 %v6281_v28, %v3682_v33  ;;  %v3688_v29 = vshll.u32 %v3687_v11, 23  ;;  %v1985_v37 = vsel %vm1979_vm5, %v1982_v45, %v1984_v55  ;;  %v564_v45 = vpop.permute.xlu1 %563 }
 0x131   : > { %v6359_v52 = vsel %vm9220_vm2, %v9365_v46, %v6255_v12  ;;  %v2238_v63 = vxor.u32 2147483648, %v6270_v50  ;;  %v6370_v56 = vor.u32 %v6272_v60, %v2331_v61  ;;  %v2004_v12 = vadd.s32 1, %v6346_v3 }
 0x132   : > { %v4821_v5 = vadd.s32 4294967169, %v3510_v10  ;;  %v3796_v24 = vcvt.s32.f32 %v6288_v42  ;;  %v3683_v21 = vshll.u32 %v6224_v17, %v6292_v1  ;;  %v4767_v0 = vadd.s32 4294967294, %v2118_v58 }
 0x133   : > { %v3405_v28 = vand.u32 2139095040, %v6352_v62  ;;  %v6377_v40 = vor.u32 4788187, %v2336_v53  ;;  %v2001_v19 = vmul.u32 %v1994_v43, %v1985_v37  ;;  %vm2003_vm8 = vc.u32 %v6350_v54, %v6345_v7 }
 0x134   : > { %v3516_v32 = vadd.s32 1, %v4821_v5  ;;  %v6381_v60 = vmul.f32 %v3796_v24, %v3794_v23  ;;  %v6383_v33 = vor.u32 %v3684_v8, %v3683_v21  ;;  %v6385_v11 = vor.u32 4788187, %v3688_v29 }
 0x135   : > { %v2005_v42 = vsel %vm2003_vm8, %v2004_v12, %v6346_v3  ;;  %v6391_v17 = vsel %vm9214_vm7, %v2238_v63, %v6270_v50  ;;  %v9149_v43 = vand.u32 2147483647, %v6317_v2  ;;  %vm4768_vm11 = vcmp.lt.s32.totalorder %v4767_v0, 0 }
 0x136   : > { %9366 = vst [vmem:[#allocation16_spill] sm:$0xff] %v6391_v17  ;;  %v2006_v1 = vadd.s32 %v2005_v42, %v2001_v19  ;;  %vm3517_vm10 = vcmp.gt.s32.totalorder %v3516_v32, 0  ;;  %v453_v55 = vmul.f32 %v6284_v36, %v6274_v47  ;;  %v3406_v58 = vshrl.u32 %v3405_v28, 23 }
 0x137   : > { %v3518_v57 = vsel %vm3517_vm10, %v3516_v32, 0  ;;  %v6403_v8 = vsel %vm4768_vm11, 0, %v4767_v0  ;;  %v3513_v47 = vand.u32 8388607, %v9149_v43  ;;  %v9369_v5 = vmov 2475754826  }
 0x138   : > { %v2007_v46 = vadd.s32 536870912, %v2006_v1  ;;  %v3520_v61 = vand.u32 31, %v3518_v57  ;;  %v6401_v23 = vadd.f32 %v564_v45, %v453_v55  ;;  %v3519_v63 = vshrl.u32 %v3518_v57, 5 }
 0x139   : > { %v4817_v21 = vadd.s32 4294967169, %v3406_v58  ;;  %v3514_v20 = vor.u32 8388608, %v3513_v47  ;;  %vm9200_vm12 = vcmp.lt.s32.totalorder %v6011_v16, 0  ;;  %v9375_v18 = vand.u32 2147483647, %v6011_v16 }
 0x13a   : > { %9367 = vst [vmem:[#allocation17_spill] sm:$0xff] %v6401_v23  ;;  %v6405_v29 = vshrl.u32 %v2007_v46, 30  ;;  %v3521_v37 = vsub.s32 32, %v3520_v61  ;;  %v3523_v12 = vshll.u32 %v9364_v25, %v3520_v61  ;;  %v3526_v24 = vshll.u32 %v9369_v5, %v3520_v61 }
 0x13b   : > { %v3529_v0 = vshll.u32 %v9359_v30, %v3520_v61  ;;  %v3532_v45 = vshll.u32 %v9360_v27, %v3520_v61  ;;  %v3535_v3 = vshll.u32 %v9361_v48, %v3520_v61  ;;  %vm3538_vm13 = vcmp.lt.s32.totalorder %v3519_v63, 1 }
 0x13c   : > { %9368 = vst [vmem:[#allocation18_spill] sm:$0xff] %v6405_v29  ;;  %v2009_v28 = vshll.u32 %v6405_v29, 30  ;;  %v3524_v19 = vshrl.u32 %v9369_v5, %v3521_v37  ;;  %v3527_v32 = vshrl.u32 %v9359_v30, %v3521_v37  ;;  %v3530_v42 = vshrl.u32 %v9360_v27, %v3521_v37 }
 0x13d   : > { %v3533_v55 = vshrl.u32 %v9361_v48, %v3521_v37  ;;  %v3536_v57 = vshrl.u32 %v9362_v31, %v3521_v37  ;;  %v2122_v29 = vsub.s32 32, %v6403_v8  ;;  %vm3541_vm14 = vcmp.lt.s32.totalorder %v3519_v63, 4 }
 0x13e   : > { %v6419_v46 = vsub.s32 %v2006_v1, %v2009_v28  ;;  %v3525_v43 = vor.u32 %v3524_v19, %v3523_v12  ;;  %v3528_v58 = vor.u32 %v3527_v32, %v3526_v24  ;;  %v3531_v10 = vor.u32 %v3530_v42, %v3529_v0 }
 0x13f   : > { %v3534_v53 = vor.u32 %v3533_v55, %v3532_v45  ;;  %v3537_v9 = vor.u32 %v3536_v57, %v3535_v3  ;;  %v3522_v1 = vshrl.u32 %v9364_v25, %v3521_v37  ;;  %v3412_v24 = vadd.s32 1, %v4817_v21 }
 0x140   : > { %v2012_v49 = vsub.s32 0, %v6419_v46  ;;  %v3546_v12 = vsel %vm3538_vm13, %v3525_v43, %v3528_v58  ;;  %vm3540_vm15 = vcmp.lt.s32.totalorder %v3519_v63, 3  ;;  %v3543_v47 = vsel %vm3541_vm14, %v3531_v10, 2102212464 }
 0x141   : > { %v3547_v28 = vsel %vm3541_vm14, %v3534_v53, 920167782  ;;  %vm3539_vm0 = vcmp.lt.s32.totalorder %v3519_v63, 2  ;;  %v3550_v32 = vsel %vm3538_vm13, %v3528_v58, %v3531_v10  ;;  %v3554_v0 = vshll.u32 %v3514_v20, 8 }
 0x142   : > { %v4762_v61 = vmin.u32 %v2012_v49, %v6419_v46  ;;  %v3548_v19 = vsel %vm3540_vm15, %v3531_v10, %v3547_v28  ;;  %v3542_v45 = vsel %vm3538_vm13, %v3522_v1, %v3525_v43  ;;  %v3551_v3 = vsel %vm3541_vm14, %v3537_v9, 1326507024  ;;  %v4103_v49 = vld [vmem:[%s9125_s4 + $0xe8] sm:$0xff]  ;;  %v4102_v10 = vld [vmem:[%s9125_s4 + $0xe0] sm:$0xff] }
 0x143   : > { %v3549_v55 = vsel %vm3539_vm0, %v3546_v12, %v3548_v19  ;;  %v3544_v57 = vsel %vm3540_vm15, %v3528_v58, %v3543_v47  ;;  %v3552_v50 = vsel %vm3540_vm15, %v3534_v53, %v3551_v3  ;;  %v2126_v20 = vsub.s32 4294967266, %v6403_v8  ;;  %4253 = vperm.xlu1 %5200, %v4103_v49   ;;  %4248 = vperm.xlu0 %5199, %v4102_v10  }
 0x144   : > { %v2014_v42 = vclz %v4762_v61  ;;  %v6429_v37 = vmul.u32.u64.low %v3554_v0, %v3549_v55  ;;  %v6430_v34 = vmul.u32.u64.high %v3554_v0, %v3549_v55, %v6429_v37  ;;  %v3553_v21 = vsel %vm3539_vm0, %v3550_v32, %v3552_v50 }
 0x145   : > { %vm3413_vm1 = vcmp.gt.s32.totalorder %v3412_v24, 0  ;;  %v6441_v9 = vmul.u32.u64.low %v3554_v0, %v3553_v21  ;;  %v6442_v53 = vmul.u32.u64.high %v3554_v0, %v3553_v21, %v6441_v9  ;;  %v9370_v58 = vand.u32 2147483647, %v6352_v62 }
 0x146   : > { %v4763_v43 = vadd.s32 4294967294, %v2014_v42  ;;  %v3414_v12 = vsel %vm3413_vm1, %v3412_v24, 0  ;;  %v3545_v61 = vsel %vm3539_vm0, %v3542_v45, %v3544_v57  ;;  %v1845_v28 = vand.u32 2139095040, %v6401_v23  ;;  %v4105_v24 = vld [vmem:[%s9125_s4 + $0xf8] sm:$0xff]  ;;  %v4104_v45 = vld [vmem:[%s9125_s4 + $0xf0] sm:$0xff] }
 0x147   : > { %v3409_v1 = vand.u32 8388607, %v9370_v58  ;;  %v3416_v47 = vand.u32 31, %v3414_v12  ;;  %v9371_v19 = vxor.u32 2147483648, %v6381_v60  ;;  %v2106_v32 = vadd.s32 %v6231_v6, %v6236_v4  ;;  %4263 = vperm.xlu1 %5200, %v4105_v24   ;;  %4258 = vperm.xlu0 %5199, %v4104_v45  }
 0x148   : > { %vm4764_vm3 = vcmp.lt.s32.totalorder %v4763_v43, 0  ;;  %v6459_v42 = vmul.f32 %v6284_v36, %v6311_v44  ;;  %v3564_v63 = vadd.s32 1, %v6430_v34  ;;  %v9373_v55 = vcvt.s32.f32 %v6383_v33 }
 0x149   : > { %v6453_v50 = vsel %vm9200_vm12, %v9371_v19, %v6381_v60  ;;  %v9372_v60 = vand.u32 2147483647, %v6385_v11  ;;  %v2123_v4 = vshll.u32 %v6314_v13, %v6403_v8  ;;  %v6476_v6 = vsel %vm4764_vm3, 0, %v4763_v43 }
 0x14a   : > { %v3417_v44 = vsub.s32 32, %v3416_v47  ;;  %v2124_v57 = vshrl.u32 %v2106_v32, %v2122_v29  ;;  %v2127_v49 = vadd.s32 127, %v2126_v20  ;;  %v3561_v10 = vmul.u32 %v3554_v0, %v3545_v61 }
 0x14b   : > { %v6472_v3 = vmul.f32 %v9373_v55, %v9372_v60  ;;  %vm3563_vm4 = vc.u32 %v6442_v53, %v6429_v37  ;;  %v3410_v21 = vor.u32 8388608, %v3409_v1  ;;  %v3415_v33 = vshrl.u32 %v3414_v12, 5 }
 0x14c   : > { %v3565_v11 = vsel %vm3563_vm4, %v3564_v63, %v6430_v34  ;;  %v1846_v9 = vshrl.u32 %v1845_v28, 23  ;;  %v2022_v58 = vsub.s32 4294967266, %v6476_v6  ;;  %v3420_v13 = vshrl.u32 %v9369_v5, %v3417_v44 }
 0x14d   : > { %v3566_v19 = vadd.s32 %v3565_v11, %v3561_v10  ;;  %v3423_v8 = vshrl.u32 %v9359_v30, %v3417_v44  ;;  %v3419_v43 = vshll.u32 %v9364_v25, %v3416_v47  ;;  %v3422_v29 = vshll.u32 %v9369_v5, %v3416_v47 }
 0x14e   : > { %v3425_v0 = vshll.u32 %v9359_v30, %v3416_v47  ;;  %v3426_v20 = vshrl.u32 %v9360_v27, %v3417_v44  ;;  %v2128_v61 = vshll.u32 %v2127_v49, 23  ;;  %v3428_v1 = vshll.u32 %v9360_v27, %v3416_v47 }
 0x14f   : > { %v3567_v34 = vadd.s32 536870912, %v3566_v19  ;;  %v3429_v12 = vshrl.u32 %v9361_v48, %v3417_v44  ;;  %v3421_v28 = vor.u32 %v3420_v13, %v3419_v43  ;;  %v3424_v32 = vor.u32 %v3423_v8, %v3422_v29 }
 0x150   : > { %v3427_v63 = vor.u32 %v3426_v20, %v3425_v0  ;;  %v3450_v24 = vshll.u32 %v3410_v21, 8  ;;  %v3431_v55 = vshll.u32 %v9361_v48, %v3416_v47  ;;  %v3432_v10 = vshrl.u32 %v9362_v31, %v3417_v44 }
 0x151   : > { %v6490_v45 = vshrl.u32 %v3567_v34, 30  ;;  %v3430_v60 = vor.u32 %v3429_v12, %v3428_v1  ;;  %v2018_v11 = vsub.s32 32, %v6476_v6  ;;  %v2023_v17 = vadd.s32 127, %v2022_v58 }
 0x152   : > { %vm3437_vm5 = vcmp.lt.s32.totalorder %v3415_v33, 4  ;;  %v4757_v49 = vadd.s32 4294967169, %v1846_v9  ;;  %vm6497_vm6 = vcmp.le.f32.partialorder %v9375_v18, 0.7853982  ;;  %v9376_v26 = vmov 0 }
 0x153   : > { %9374 = vst [vmem:[#allocation19_spill] sm:$0xff] %v6490_v45  ;;  %v9377_v26 = vsel %vm6497_vm6, 4294967295, %v9376_v26  ;;  %v3569_v21 = vshll.u32 %v6490_v45, 30  ;;  %v3433_v13 = vor.u32 %v3432_v10, %v3431_v55  ;;  %vm3434_vm8 = vcmp.lt.s32.totalorder %v3415_v33, 1 }
 0x154   : > { %9378 = vst [vmem:[#allocation20_spill] sm:$0xff] %v9377_v26  ;;  %v3439_v8 = vsel %vm3437_vm5, %v3427_v63, 2102212464  ;;  %v3418_v47 = vshrl.u32 %v9364_v25, %v3417_v44  ;;  %vm3436_vm10 = vcmp.lt.s32.totalorder %v3415_v33, 3  ;;  %v3442_v43 = vsel %vm3434_vm8, %v3421_v28, %v3424_v32 }
 0x155   : > { %v3443_v58 = vsel %vm3437_vm5, %v3430_v60, 920167782  ;;  %v6505_v29 = vsub.s32 %v3566_v19, %v3569_v21  ;;  %vm3435_vm11 = vcmp.lt.s32.totalorder %v3415_v33, 2  ;;  %v3446_v18 = vsel %vm3434_vm8, %v3424_v32, %v3427_v63  ;;  %v559_v33 = vpop.permute.xlu0 %558 }
 0x156   : > { %v3444_v9 = vsel %vm3436_vm10, %v3427_v63, %v3443_v58  ;;  %v3438_v0 = vsel %vm3434_vm8, %v3418_v47, %v3421_v28  ;;  %v3440_v20 = vsel %vm3436_vm10, %v3424_v32, %v3439_v8  ;;  %v3447_v1 = vsel %vm3437_vm5, %v3433_v13, 1326507024 }
 0x157   : > { %v3445_v34 = vsel %vm3435_vm11, %v3442_v43, %v3444_v9  ;;  %v3572_v12 = vsub.s32 0, %v6505_v29  ;;  %v3448_v55 = vsel %vm3436_vm10, %v3430_v60, %v3447_v1  ;;  %v2002_v19 = vadd.s32 %v6345_v7, %v6350_v54 }
 0x158   : > { %v6510_v10 = vmul.u32.u64.low %v3450_v24, %v3445_v34  ;;  %v6511_v44 = vmul.u32.u64.high %v3450_v24, %v3445_v34, %v6510_v10  ;;  %v3449_v21 = vsel %vm3435_vm11, %v3446_v18, %v3448_v55  ;;  %v9162_v63 = vand.u32 2147483647, %v6401_v23 }
 0x159   : > { %v1852_v28 = vadd.s32 1, %v4757_v49  ;;  %v2125_v32 = vor.u32 %v2124_v57, %v2123_v4  ;;  %v4822_v8 = vmin.u32 %v3572_v12, %v6505_v29  ;;  %v2129_v43 = vor.u32 4788187, %v2128_v61 }
 0x15a   : > { %v6519_v47 = vmul.u32.u64.low %v3450_v24, %v3449_v21  ;;  %v6520_v13 = vmul.u32.u64.high %v3450_v24, %v3449_v21, %v6519_v47  ;;  %v2020_v60 = vshrl.u32 %v2002_v19, %v2018_v11  ;;  %v3441_v58 = vsel %vm3435_vm11, %v3438_v0, %v3440_v20 }
 0x15b   : > { %vm1853_vm13 = vcmp.gt.s32.totalorder %v1852_v28, 0  ;;  %v2024_v9 = vshll.u32 %v2023_v17, 23  ;;  %v3574_v34 = vclz %v4822_v8  ;;  %v3460_v54 = vadd.s32 1, %v6511_v44 }
 0x15c   : > { %v1854_v7 = vsel %vm1853_vm13, %v1852_v28, 0  ;;  %v6528_v4 = vsel %vm6497_vm6, %v6011_v16, %v6453_v50  ;;  %v1849_v61 = vand.u32 8388607, %v9162_v63  ;;  %v2019_v17 = vshll.u32 %v6419_v46, %v6476_v6 }
 0x15d   : > { %v1856_v11 = vand.u32 31, %v1854_v7  ;;  %v4823_v49 = vadd.s32 4294967294, %v3574_v34  ;;  %v3457_v18 = vmul.u32 %v3450_v24, %v3441_v58  ;;  %vm3459_vm14 = vc.u32 %v6520_v13, %v6510_v10 }
 0x15e   : > { %v2130_v0 = vand.u32 2147483647, %v2129_v43  ;;  %v2132_v20 = vcvt.s32.f32 %v2125_v32  ;;  %v3461_v50 = vsel %vm3459_vm14, %v3460_v54, %v6511_v44  ;;  %v6538_v12 = vor.u32 %v2020_v60, %v2019_v17 }
 0x15f   : > { %v1857_v1 = vsub.s32 32, %v1856_v11  ;;  %v6540_v55 = vor.u32 4788187, %v2024_v9  ;;  %v3462_v19 = vadd.s32 %v3461_v50, %v3457_v18  ;;  %v6543_v21 = vadd.f32 %v559_v33, %v6459_v42 }
 0x160   : > { %vm4824_vm15 = vcmp.lt.s32.totalorder %v4823_v49, 0  ;;  %v1850_v46 = vor.u32 8388608, %v1849_v61  ;;  %v1855_v8 = vshrl.u32 %v1854_v7, 5  ;;  %v1859_v32 = vshll.u32 %v9364_v25, %v1856_v11 }
 0x161   : > { %v1860_v6 = vshrl.u32 %v9369_v5, %v1857_v1  ;;  %v1863_v24 = vshrl.u32 %v9359_v30, %v1857_v1  ;;  %v3463_v28 = vadd.s32 536870912, %v3462_v19  ;;  %v1862_v44 = vshll.u32 %v9369_v5, %v1856_v11 }
 0x162   : > { %v1865_v47 = vshll.u32 %v9359_v30, %v1856_v11  ;;  %v1866_v43 = vshrl.u32 %v9360_v27, %v1857_v1  ;;  %v1868_v60 = vshll.u32 %v9360_v27, %v1856_v11  ;;  %v1869_v42 = vshrl.u32 %v9361_v48, %v1857_v1 }
 0x163   : > { %v6553_v58 = vsel %vm4824_vm15, 0, %v4823_v49  ;;  %v6555_v9 = vshrl.u32 %v3463_v28, 30  ;;  %v1861_v34 = vor.u32 %v1860_v6, %v1859_v32  ;;  %v1864_v54 = vor.u32 %v1863_v24, %v1862_v44 }
 0x164   : > { %v1867_v61 = vor.u32 %v1866_v43, %v1865_v47  ;;  %v1870_v7 = vor.u32 %v1869_v42, %v1868_v60  ;;  %v1871_v33 = vshll.u32 %v9361_v48, %v1856_v11  ;;  %v1872_v17 = vshrl.u32 %v9362_v31, %v1857_v1 }
 0x165   : > { %9379 = vst [vmem:[#allocation21_spill] sm:$0xff] %v6555_v9  ;;  %v6559_v18 = vmul.f32 %v2132_v20, %v2130_v0  ;;  %v2026_v50 = vand.u32 2147483647, %v6540_v55  ;;  %v2028_v63 = vcvt.s32.f32 %v6538_v12  ;;  %v3465_v57 = vshll.u32 %v6555_v9, 30 }
 0x166   : > { %vm9213_vm0 = vcmp.lt.s32.totalorder %v6034_v51, 0  ;;  %v3582_v49 = vsub.s32 4294967266, %v6553_v58  ;;  %v1873_v6 = vor.u32 %v1872_v17, %v1871_v33  ;;  %v1890_v24 = vshll.u32 %v1850_v46, 8 }
 0x167   : > { %v1741_v28 = vand.u32 2139095040, %v6543_v21  ;;  %v6567_v32 = vsub.s32 %v3462_v19, %v3465_v57  ;;  %v1858_v11 = vshrl.u32 %v9364_v25, %v1857_v1  ;;  %vm1874_vm1 = vcmp.lt.s32.totalorder %v1855_v8, 1 }
 0x168   : > { %vm1877_vm3 = vcmp.lt.s32.totalorder %v1855_v8, 4  ;;  %vm1876_vm4 = vcmp.lt.s32.totalorder %v1855_v8, 3  ;;  %v1882_v20 = vsel %vm1874_vm1, %v1861_v34, %v1864_v54  ;;  %vm1875_vm5 = vcmp.lt.s32.totalorder %v1855_v8, 2 }
 0x169   : > { %v1879_v0 = vsel %vm1877_vm3, %v1867_v61, 2102212464  ;;  %v1883_v12 = vsel %vm1877_vm3, %v1870_v7, 920167782  ;;  %v3468_v55 = vsub.s32 0, %v6567_v32  ;;  %v1886_v46 = vsel %vm1874_vm1, %v1864_v54, %v1867_v61 }
 0x16a   : > { %v1884_v44 = vsel %vm1876_vm4, %v1867_v61, %v1883_v12  ;;  %v3583_v47 = vadd.s32 127, %v3582_v49  ;;  %v1887_v19 = vsel %vm1877_vm3, %v1873_v6, 1326507024  ;;  %v1742_v43 = vshrl.u32 %v1741_v28, 23 }
 0x16b   : > { %v1885_v57 = vsel %vm1875_vm5, %v1882_v20, %v1884_v44  ;;  %v9380_v1 = vand.u32 2147483647, %v6034_v51  ;;  %v9381_v60 = vmov 0  ;;  %vm9183_vm10 = vcmp.lt.s32.totalorder %v6065_v35, 0 }
 0x16c   : > { %v4818_v42 = vmin.u32 %v3468_v55, %v6567_v32  ;;  %v1878_v33 = vsel %vm1874_vm1, %v1858_v11, %v1861_v34  ;;  %v1880_v17 = vsel %vm1876_vm4, %v1864_v54, %v1879_v0  ;;  %v1888_v61 = vsel %vm1876_vm4, %v1870_v7, %v1887_v19 }
 0x16d   : > { %vm6577_vm8 = vcmp.le.f32.partialorder %v9380_v1, 0.7853982  ;;  %v1889_v49 = vsel %vm1875_vm5, %v1886_v46, %v1888_v61  ;;  %v6587_v6 = vmul.u32.u64.low %v1890_v24, %v1885_v57  ;;  %v6588_v28 = vmul.u32.u64.high %v1890_v24, %v1885_v57, %v6587_v6 }
 0x16e   : > { %v9382_v60 = vsel %vm6577_vm8, 4294967295, %v9381_v60  ;;  %v4753_v20 = vadd.s32 4294967169, %v1742_v43  ;;  %v3578_v12 = vsub.s32 32, %v6553_v58  ;;  %v3470_v44 = vclz %v4818_v42 }
 0x16f   : > { %9383 = vst [vmem:[#allocation22_spill] sm:$0xff] %v9382_v60  ;;  %v6592_v1 = vmul.u32.u64.low %v1890_v24, %v1889_v49  ;;  %v6593_v45 = vmul.u32.u64.high %v1890_v24, %v1889_v49, %v6592_v1  ;;  %v3584_v55 = vshll.u32 %v3583_v47, 23  ;;  %v1881_v34 = vsel %vm1875_vm5, %v1878_v33, %v1880_v17  ;;  %v404_v33 = vpop.permute.xlu1 %403  ;;  %v399_v17 = vpop.permute.xlu0 %398 }
 0x170   : > { %v9165_v54 = vand.u32 2147483647, %v6543_v21  ;;  %v1748_v11 = vadd.s32 1, %v4753_v20  ;;  %5249 = vcosq.f32 %v6528_v4  ;;  %v9384_v7 = vxor.u32 2147483648, %v6472_v3 }
 0x171   : > { %v3562_v46 = vadd.s32 %v6429_v37, %v6442_v53  ;;  %v4819_v57 = vadd.s32 4294967294, %v3470_v44  ;;  %v2134_v19 = vxor.u32 2147483648, %v6559_v18  ;;  %v6606_v47 = vmul.f32 %v2028_v63, %v2026_v50 }
 0x172   : > { %v3695_v0 = vsel %vm9213_vm0, %v9384_v7, %v6472_v3  ;;  %v1900_v8 = vadd.s32 1, %v6588_v28  ;;  %vm1749_vm11 = vcmp.gt.s32.totalorder %v1748_v11, 0  ;;  %v1897_v42 = vmul.u32 %v1890_v24, %v1881_v34 }
 0x173   : > { %v3580_v43 = vshrl.u32 %v3562_v46, %v3578_v12  ;;  %vm4820_vm13 = vcmp.lt.s32.totalorder %v4819_v57, 0  ;;  %vm1899_vm14 = vc.u32 %v6593_v45, %v6587_v6  ;;  %v6611_v3 = vor.u32 4788187, %v3584_v55 }
 0x174   : > { %v1901_v37 = vsel %vm1899_vm14, %v1900_v8, %v6588_v28  ;;  %v1745_v53 = vand.u32 8388607, %v9165_v54  ;;  %v1750_v63 = vsel %vm1749_vm11, %v1748_v11, 0  ;;  %v9385_v50 = vand.u32 2147483647, %v6377_v40 }
 0x175   : > { %v9386_v61 = vcvt.s32.f32 %v6370_v56  ;;  %5251 = vsinq.f32 %v6528_v4  ;;  %v3579_v24 = vshll.u32 %v6505_v29, %v6553_v58  ;;  %v1902_v20 = vadd.s32 %v1901_v37, %v1897_v42 }
 0x176   : > { %v6628_v28 = vsel %vm6577_vm8, %v6034_v51, %v3695_v0  ;;  %v6633_v12 = vsel %vm9183_vm10, %v2134_v19, %v6559_v18  ;;  %v6635_v40 = vsel %vm4820_vm13, 0, %v4819_v57  ;;  %v1752_v56 = vand.u32 31, %v1750_v63  ;;  %v6651_v57 = vpop.permute.xlu1 %323  ;;  %v6653_v19 = vpop.permute.xlu0 %318 }
 0x177   : > { %v6620_v49 = vmul.f32 %v9386_v61, %v9385_v50  ;;  %v6638_v4 = vor.u32 %v3580_v43, %v3579_v24  ;;  %v6642_v29 = vadd.s32 %v6510_v10, %v6520_v13  ;;  %v1903_v58 = vadd.s32 536870912, %v1902_v20 }
 0x178   : > { %v1746_v55 = vor.u32 8388608, %v1745_v53  ;;  %v1753_v34 = vsub.s32 32, %v1752_v56  ;;  %v467_v11 = vmul.f32 %v6284_v36, %v404_v33  ;;  %v3478_v18 = vsub.s32 4294967266, %v6635_v40 }
 0x179   : > { %v6647_v7 = vshrl.u32 %v1903_v58, 30  ;;  %v1755_v0 = vshll.u32 %v9364_v25, %v1752_v56  ;;  %v1758_v46 = vshll.u32 %v9369_v5, %v1752_v56  ;;  %v1761_v8 = vshll.u32 %v9359_v30, %v1752_v56 }
 0x17a   : > { %v1756_v10 = vshrl.u32 %v9369_v5, %v1753_v34  ;;  %v1759_v13 = vshrl.u32 %v9359_v30, %v1753_v34  ;;  %v1762_v43 = vshrl.u32 %v9360_v27, %v1753_v34  ;;  %v1751_v33 = vshrl.u32 %v1750_v63, 5 }
 0x17b   : > { %9387 = vst [vmem:[#allocation23_spill] sm:$0xff] %v6647_v7  ;;  %v1905_v42 = vshll.u32 %v6647_v7, 30  ;;  %v1764_v37 = vshll.u32 %v9360_v27, %v1752_v56  ;;  %v1765_v53 = vshrl.u32 %v9361_v48, %v1753_v34  ;;  %v466_v58 = vmul.f32 %v6284_v36, %v399_v17 }
 0x17c   : > { %v1757_v50 = vor.u32 %v1756_v10, %v1755_v0  ;;  %v1760_v61 = vor.u32 %v1759_v13, %v1758_v46  ;;  %v1763_v24 = vor.u32 %v1762_v43, %v1761_v8  ;;  %v9388_v54 = vand.u32 2147483647, %v6065_v35  ;;  %v629_v8 = vpop.permute.xlu0 %628 }
 0x17d   : > { %v9389_v44 = vmov 0  ;;  %v6669_v1 = vsub.s32 %v1902_v20, %v1905_v42  ;;  %v1766_v9 = vor.u32 %v1765_v53, %v1764_v37  ;;  %v1767_v63 = vshll.u32 %v9361_v48, %v1752_v56  ;;  %v6673_v26 = vpop.eup %5249  ;;  %v634_v20 = vpop.permute.xlu1 %633 }
 0x17e   : > { %vm6665_vm15 = vcmp.le.f32.partialorder %v9388_v54, 0.7853982  ;;  %v1768_v7 = vshrl.u32 %v9362_v31, %v1753_v34  ;;  %9392 = vst [vmem:[#allocation25_spill] sm:$0xff] %v6673_v26  ;;  %v3474_v0 = vsub.s32 32, %v6635_v40  ;;  %v3479_v46 = vadd.s32 127, %v3478_v18 }
 0x17f   : > { %v9390_v44 = vsel %vm6665_vm15, 4294967295, %v9389_v44  ;;  %v1754_v17 = vshrl.u32 %v9364_v25, %v1753_v34  ;;  %v1786_v10 = vshll.u32 %v1746_v55, 8  ;;  %v1908_v54 = vsub.s32 0, %v6669_v1 }
 0x180   : > { %9391 = vst [vmem:[#allocation24_spill] sm:$0xff] %v9390_v44  ;;  %v1769_v13 = vor.u32 %v1768_v7, %v1767_v63  ;;  %vm1770_vm1 = vcmp.lt.s32.totalorder %v1751_v33, 1  ;;  %vm1773_vm3 = vcmp.lt.s32.totalorder %v1751_v33, 4  ;;  %vm9199_vm4 = vcmp.lt.s32.totalorder %v6195_v22, 0 }
 0x181   : > { %vm1771_vm5 = vcmp.lt.s32.totalorder %v1751_v33, 2  ;;  %vm1772_vm11 = vcmp.lt.s32.totalorder %v1751_v33, 3  ;;  %v1778_v56 = vsel %vm1770_vm1, %v1757_v50, %v1760_v61  ;;  %v1779_v43 = vsel %vm1773_vm3, %v1766_v9, 920167782 }
 0x182   : > { %v4758_v42 = vmin.u32 %v1908_v54, %v6669_v1  ;;  %v1775_v18 = vsel %vm1773_vm3, %v1763_v24, 2102212464  ;;  %v1780_v34 = vsel %vm1772_vm11, %v1763_v24, %v1779_v43  ;;  %v1782_v55 = vsel %vm1770_vm1, %v1760_v61, %v1763_v24  ;;  %v6683_v37 = vpop.eup %5251 }
 0x183   : > { %9393 = vst [vmem:[#allocation26_spill] sm:$0xff] %v6683_v37  ;;  %v1781_v7 = vsel %vm1771_vm5, %v1778_v56, %v1780_v34  ;;  %v1783_v53 = vsel %vm1773_vm3, %v1769_v13, 1326507024  ;;  %v6686_v63 = vadd.f32 %v634_v20, %v467_v11  ;;  %v6688_v26 = vadd.f32 %v629_v8, %v466_v58 }
 0x184   : > { %v9396_v16 = vand.u32 2147483647, %v6195_v22  ;;  %v9397_v60 = vmov 0  ;;  %v3480_v54 = vshll.u32 %v3479_v46, 23  ;;  %v1910_v51 = vclz %v4758_v42 }
 0x185   : > { %9394 = vst [vmem:[#allocation27_spill] sm:$0xff] %v6686_v63  ;;  %9395 = vst [vmem:[#allocation28_spill] sm:$0xff] %v6688_v26  ;;  %v1774_v43 = vsel %vm1770_vm1, %v1754_v17, %v1757_v50  ;;  %v1784_v24 = vsel %vm1772_vm11, %v1766_v9, %v1783_v53  ;;  %v1776_v37 = vsel %vm1772_vm11, %v1760_v61, %v1775_v18  ;;  %v3588_v58 = vcvt.s32.f32 %v6638_v4 }
 0x186   : > { %vm6692_vm13 = vcmp.le.f32.partialorder %v9396_v16, 0.7853982  ;;  %v1785_v13 = vsel %vm1771_vm5, %v1782_v55, %v1784_v24  ;;  %v6700_v11 = vmul.u32.u64.low %v1786_v10, %v1781_v7  ;;  %v6701_v20 = vmul.u32.u64.high %v1786_v10, %v1781_v7, %v6700_v11 }
 0x187   : > { %v9398_v60 = vsel %vm6692_vm13, 4294967295, %v9397_v60  ;;  %v3476_v16 = vshrl.u32 %v6642_v29, %v3474_v0  ;;  %v6706_v8 = vmul.u32.u64.low %v1786_v10, %v1785_v13  ;;  %v6707_v56 = vmul.u32.u64.high %v1786_v10, %v1785_v13, %v6706_v8  ;;  %v554_v13 = vpop.permute.xlu1 %553 }
 0x188   : > { %9399 = vst [vmem:[#allocation29_spill] sm:$0xff] %v9398_v60  ;;  %5253 = vcosq.f32 %v6628_v28  ;;  %v2138_v9 = vsel %vm6665_vm15, %v6065_v35, %v6633_v12  ;;  %vm9182_vm14 = vcmp.lt.s32.totalorder %v6317_v2, 0  ;;  %v3301_v50 = vand.u32 2139095040, %v6686_v63 }
 0x189   : > { %v9400_v61 = vand.u32 2147483647, %v6611_v3  ;;  %v3475_v4 = vshll.u32 %v6567_v32, %v6635_v40  ;;  %v4759_v29 = vadd.s32 4294967294, %v1910_v51  ;;  %v1777_v0 = vsel %vm1771_vm5, %v1774_v43, %v1776_v37 }
 0x18a   : > { %v3481_v17 = vor.u32 4788187, %v3480_v54  ;;  %v1796_v42 = vadd.s32 1, %v6701_v20  ;;  %v3302_v18 = vshrl.u32 %v3301_v50, 23  ;;  %v3197_v34 = vand.u32 2139095040, %v6688_v26 }
 0x18b   : > { %v3589_v46 = vmul.f32 %v3588_v58, %v9400_v61  ;;  %5255 = vsinq.f32 %v6628_v28  ;;  %v9401_v12 = vxor.u32 2147483648, %v6606_v47  ;;  %v3477_v55 = vor.u32 %v3476_v16, %v3475_v4 }
 0x18c   : > { %v9178_v32 = vand.u32 2147483647, %v6686_v63  ;;  %5257 = vcosq.f32 %v2138_v9  ;;  %v1793_v51 = vmul.u32 %v1786_v10, %v1777_v0  ;;  %vm1795_vm1 = vc.u32 %v6707_v56, %v6700_v11 }
 0x18d   : > { %v2031_v3 = vsel %vm9199_vm4, %v9401_v12, %v6606_v47  ;;  %v4813_v40 = vadd.s32 4294967169, %v3302_v18  ;;  %v3590_v33 = vxor.u32 2147483648, %v3589_v46  ;;  %vm4760_vm3 = vcmp.lt.s32.totalorder %v4759_v29, 0 }
 0x18e   : > { %v1797_v37 = vsel %vm1795_vm1, %v1796_v42, %v6701_v20  ;;  %v3198_v28 = vshrl.u32 %v3197_v34, 23  ;;  %v6736_v7 = vsel %vm6692_vm13, %v6195_v22, %v2031_v3  ;;  %v3482_v47 = vand.u32 2147483647, %v3481_v17 }
 0x18f   : > { %v1798_v53 = vadd.s32 %v1797_v37, %v1793_v51  ;;  %v3308_v54 = vadd.s32 1, %v4813_v40  ;;  %5259 = vsinq.f32 %v2138_v9  ;;  %v3484_v43 = vcvt.s32.f32 %v3477_v55 }
 0x190   : > { %v451_v10 = vmul.f32 %v6284_v36, %v6651_v57  ;;  %v3305_v24 = vand.u32 8388607, %v9178_v32  ;;  %v6742_v58 = vsel %vm4760_vm3, 0, %v4759_v29  ;;  %v4809_v16 = vadd.s32 4294967169, %v3198_v28 }
 0x191   : > { %v1799_v20 = vadd.s32 536870912, %v1798_v53  ;;  %vm3309_vm5 = vcmp.gt.s32.totalorder %v3308_v54, 0  ;;  %5261 = vcosq.f32 %v6736_v7  ;;  %v6747_v8 = vsel %vm9182_vm14, %v3590_v33, %v3589_v46 }
 0x192   : > { %v1898_v9 = vadd.s32 %v6587_v6, %v6593_v45  ;;  %v3310_v50 = vsel %vm3309_vm5, %v3308_v54, 0  ;;  %v6751_v36 = vmul.f32 %v3484_v43, %v3482_v47  ;;  %v6755_v4 = vadd.f32 %v554_v13, %v451_v10 }
 0x193   : > { %v6753_v57 = vshrl.u32 %v1799_v20, 30  ;;  %v3312_v61 = vand.u32 31, %v3310_v50  ;;  %v1914_v29 = vsub.s32 32, %v6742_v58  ;;  %v1918_v17 = vsub.s32 4294967266, %v6742_v58 }
 0x194   : > { %9403 = vst [vmem:[#allocation31_spill] sm:$0xff] %v6755_v4  ;;  %v3306_v45 = vor.u32 8388608, %v3305_v24  ;;  %v3204_v18 = vadd.s32 1, %v4809_v16  ;;  %v3311_v12 = vshrl.u32 %v3310_v50, 5  ;;  %v9406_v32 = vmov 0 }
 0x195   : > { %9402 = vst [vmem:[#allocation30_spill] sm:$0xff] %v6753_v57  ;;  %v1801_v42 = vshll.u32 %v6753_v57, 30  ;;  %v3313_v6 = vsub.s32 32, %v3312_v61  ;;  %v6763_v34 = vpop.eup %5253  ;;  %v3315_v3 = vshll.u32 %v9364_v25, %v3312_v61  ;;  %v3318_v55 = vshll.u32 %v9369_v5, %v3312_v61 }
 0x196   : > { %v3321_v51 = vshll.u32 %v9359_v30, %v3312_v61  ;;  %v3324_v28 = vshll.u32 %v9360_v27, %v3312_v61  ;;  %v3327_v43 = vshll.u32 %v9361_v48, %v3312_v61  ;;  %v1916_v13 = vshrl.u32 %v1898_v9, %v1914_v29 }
 0x197   : > { %v6768_v40 = vsub.s32 %v1798_v53, %v1801_v42  ;;  %v3316_v33 = vshrl.u32 %v9369_v5, %v3313_v6  ;;  %v3319_v37 = vshrl.u32 %v9359_v30, %v3313_v6  ;;  %v3322_v47 = vshrl.u32 %v9360_v27, %v3313_v6 }
 0x198   : > { %v3325_v54 = vshrl.u32 %v9361_v48, %v3313_v6  ;;  %v3328_v10 = vshrl.u32 %v9362_v31, %v3313_v6  ;;  %v6777_v24 = vpop.eup %5255  ;;  %v9405_v42 = vand.u32 2147483647, %v6317_v2  ;;  %v1919_v0 = vadd.s32 127, %v1918_v17 }
 0x199   : > { %v1804_v53 = vsub.s32 0, %v6768_v40  ;;  %v3317_v20 = vor.u32 %v3316_v33, %v3315_v3  ;;  %v3320_v16 = vor.u32 %v3319_v37, %v3318_v55  ;;  %v6780_v50 = vpop.eup %5257  ;;  %v3323_v46 = vor.u32 %v3322_v47, %v3321_v51 }
 0x19a   : > { %9404 = vst [vmem:[#allocation32_spill] sm:$0xff] %v6780_v50  ;;  %vm6784_vm11 = vcmp.le.f32.partialorder %v9405_v42, 0.7853982  ;;  %v3326_v61 = vor.u32 %v3325_v54, %v3324_v28  ;;  %v3329_v57 = vor.u32 %v3328_v10, %v3327_v43  ;;  %vm3330_vm1 = vcmp.lt.s32.totalorder %v3311_v12, 1 }
 0x19b   : > { %v9407_v32 = vsel %vm6784_vm11, 4294967295, %v9406_v32  ;;  %v4754_v44 = vmin.u32 %v1804_v53, %v6768_v40  ;;  %v3346_v9 = vshll.u32 %v3306_v45, 8  ;;  %vm3205_vm3 = vcmp.gt.s32.totalorder %v3204_v18, 0 }
 0x19c   : > { %9408 = vst [vmem:[#allocation33_spill] sm:$0xff] %v9407_v32  ;;  %v3314_v29 = vshrl.u32 %v9364_v25, %v3313_v6  ;;  %vm3331_vm5 = vcmp.lt.s32.totalorder %v3311_v12, 2  ;;  %vm3333_vm14 = vcmp.lt.s32.totalorder %v3311_v12, 4  ;;  %v3338_v3 = vsel %vm3330_vm1, %v3317_v20, %v3320_v16  ;;  %v6790_v55 = vpop.eup %5259 }
 0x19d   : > { %9409 = vst [vmem:[#allocation34_spill] sm:$0xff] %v6790_v55  ;;  %v1806_v33 = vclz %v4754_v44  ;;  %vm3332_vm10 = vcmp.lt.s32.totalorder %v3311_v12, 3  ;;  %v3335_v37 = vsel %vm3333_vm14, %v3323_v46, 2102212464  ;;  %v3339_v42 = vsel %vm3333_vm14, %v3326_v61, 920167782 }
 0x19e   : > { %v3334_v17 = vsel %vm3330_vm1, %v3314_v29, %v3317_v20  ;;  %v3340_v51 = vsel %vm3332_vm10, %v3323_v46, %v3339_v42  ;;  %v3342_v28 = vsel %vm3330_vm1, %v3320_v16, %v3323_v46  ;;  %v3343_v47 = vsel %vm3333_vm14, %v3329_v57, 1326507024  ;;  %v6792_v54 = vpop.eup %5261 }
 0x19f   : > { %9410 = vst [vmem:[#allocation35_spill] sm:$0xff] %v6792_v54  ;;  %v4755_v43 = vadd.s32 4294967294, %v1806_v33  ;;  %v3336_v45 = vsel %vm3332_vm10, %v3320_v16, %v3335_v37  ;;  %v3341_v6 = vsel %vm3331_vm5, %v3338_v3, %v3340_v51  ;;  %v3344_v10 = vsel %vm3332_vm10, %v3326_v61, %v3343_v47  ;;  %v6819_v51 = vld [vmem:[%s5751_s24] ss:$0 sm:$0xff] }
 0x1a0   : > { %v3345_v53 = vsel %vm3331_vm5, %v3342_v28, %v3344_v10  ;;  %v6796_v50 = vmul.u32.u64.low %v3346_v9, %v3341_v6  ;;  %v6797_v55 = vmul.u32.u64.high %v3346_v9, %v3341_v6, %v6796_v50  ;;  %v9411_v44 = vand.u32 2147483647, %v6688_v26 }
 0x1a1   : > { %v1920_v29 = vshll.u32 %v1919_v0, 23  ;;  %v6802_v46 = vmul.u32.u64.low %v3346_v9, %v3345_v53  ;;  %v6803_v57 = vmul.u32.u64.high %v3346_v9, %v3345_v53, %v6802_v46  ;;  %v3206_v33 = vsel %vm3205_vm3, %v3204_v18, 0 }
 0x1a2   : > { %v3201_v20 = vand.u32 8388607, %v9411_v44  ;;  %5263 = vsinq.f32 %v6736_v7  ;;  %vm4756_vm14 = vcmp.lt.s32.totalorder %v4755_v43, 0  ;;  %v3337_v16 = vsel %vm3331_vm5, %v3334_v17, %v3336_v45 }
 0x1a3   : > { %v3208_v61 = vand.u32 31, %v3206_v33  ;;  %v6812_v3 = vsel %vm6784_vm11, %v6317_v2, %v6747_v8  ;;  %v9412_v0 = vshll.u32 %v6669_v1, %v6742_v58  ;;  %v6823_v7 = vmul.f32 %v6819_v51, %v6653_v19 }
 0x1a4   : > { %v3356_v18 = vadd.s32 1, %v6797_v55  ;;  %v3202_v12 = vor.u32 8388608, %v3201_v20  ;;  %v1921_v8 = vor.u32 4788187, %v1920_v29  ;;  %v6827_v47 = vsel %vm4756_vm14, 0, %v4755_v43 }
 0x1a5   : > { %v1917_v42 = vor.u32 %v1916_v13, %v9412_v0  ;;  %v3209_v17 = vsub.s32 32, %v3208_v61  ;;  %v3353_v45 = vmul.u32 %v3346_v9, %v3337_v16  ;;  %vm3355_vm10 = vc.u32 %v6803_v57, %v6796_v50 }
 0x1a6   : > { %v3357_v1 = vsel %vm3355_vm10, %v3356_v18, %v6797_v55  ;;  %v3211_v58 = vshll.u32 %v9364_v25, %v3208_v61  ;;  %v3207_v10 = vshrl.u32 %v3206_v33, 5  ;;  %v3214_v53 = vshll.u32 %v9369_v5, %v3208_v61 }
 0x1a7   : > { %v3212_v19 = vshrl.u32 %v9369_v5, %v3209_v17  ;;  %v3215_v13 = vshrl.u32 %v9359_v30, %v3209_v17  ;;  %v3358_v6 = vadd.s32 %v3357_v1, %v3353_v45  ;;  %v1637_v44 = vand.u32 2139095040, %v6755_v4 }
 0x1a8   : > { %v1814_v43 = vsub.s32 4294967266, %v6827_v47  ;;  %v3217_v20 = vshll.u32 %v9359_v30, %v3208_v61  ;;  %v3218_v29 = vshrl.u32 %v9360_v27, %v3209_v17  ;;  %v3220_v16 = vshll.u32 %v9360_v27, %v3208_v61 }
 0x1a9   : > { %v3213_v9 = vor.u32 %v3212_v19, %v3211_v58  ;;  %v3359_v55 = vadd.s32 536870912, %v3358_v6  ;;  %v3216_v46 = vor.u32 %v3215_v13, %v3214_v53  ;;  %v3221_v0 = vshrl.u32 %v9361_v48, %v3209_v17 }
 0x1aa   : > { %v1924_v18 = vcvt.s32.f32 %v1917_v42  ;;  %v3219_v45 = vor.u32 %v3218_v29, %v3217_v20  ;;  %v3223_v33 = vshll.u32 %v9361_v48, %v3208_v61  ;;  %v3224_v1 = vshrl.u32 %v9362_v31, %v3209_v17 }
 0x1ab   : > { %vm9198_vm1 = vcmp.lt.s32.totalorder %v6352_v62, 0  ;;  %v1922_v28 = vand.u32 2147483647, %v1921_v8  ;;  %v6845_v58 = vshrl.u32 %v3359_v55, 30  ;;  %v3222_v19 = vor.u32 %v3221_v0, %v3220_v16 }
 0x1ac   : > { %v3242_v37 = vshll.u32 %v3202_v12, 8  ;;  %v1815_v32 = vadd.s32 127, %v1814_v43  ;;  %v3225_v2 = vor.u32 %v3224_v1, %v3223_v33  ;;  %vm3226_vm3 = vcmp.lt.s32.totalorder %v3207_v10, 1 }
 0x1ad   : > { %9413 = vst [vmem:[#allocation36_spill] sm:$0xff] %v6845_v58  ;;  %v1638_v13 = vshrl.u32 %v1637_v44, 23  ;;  %v3361_v53 = vshll.u32 %v6845_v58, 30  ;;  %v3210_v42 = vshrl.u32 %v9364_v25, %v3209_v17  ;;  %vm3229_vm5 = vcmp.lt.s32.totalorder %v3207_v10, 4 }
 0x1ae   : > { %v3234_v61 = vsel %vm3226_vm3, %v3213_v9, %v3216_v46  ;;  %vm3228_vm14 = vcmp.lt.s32.totalorder %v3207_v10, 3  ;;  %v3235_v20 = vsel %vm3229_vm5, %v3222_v19, 920167782  ;;  %v3238_v29 = vsel %vm3226_vm3, %v3216_v46, %v3219_v45 }
 0x1af   : > { %v3239_v8 = vsel %vm3229_vm5, %v3225_v2, 1326507024  ;;  %v6851_v55 = vpop.eup %5263  ;;  %v6853_v16 = vsub.s32 %v3358_v6, %v3361_v53  ;;  %vm3227_vm10 = vcmp.lt.s32.totalorder %v3207_v10, 2  ;;  %v3231_v12 = vsel %vm3229_vm5, %v3219_v45, 2102212464 }
 0x1b0   : > { %9414 = vst [vmem:[#allocation37_spill] sm:$0xff] %v6851_v55  ;;  %v3236_v44 = vsel %vm3228_vm14, %v3219_v45, %v3235_v20  ;;  %v6856_v43 = vmul.f32 %v1924_v18, %v1922_v28  ;;  %v3240_v0 = vsel %vm3228_vm14, %v3222_v19, %v3239_v8  ;;  %v4749_v33 = vadd.s32 4294967169, %v1638_v13 }
 0x1b1   : > { %v3237_v17 = vsel %vm3227_vm10, %v3234_v61, %v3236_v44  ;;  %v1810_v1 = vsub.s32 32, %v6827_v47  ;;  %v3364_v58 = vsub.s32 0, %v6853_v16  ;;  %v3230_v2 = vsel %vm3226_vm3, %v3210_v42, %v3213_v9 }
 0x1b2   : > { %v3241_v6 = vsel %vm3227_vm10, %v3238_v29, %v3240_v0  ;;  %v3232_v53 = vsel %vm3228_vm14, %v3216_v46, %v3231_v12  ;;  %v1644_v28 = vadd.s32 1, %v4749_v33  ;;  %v1816_v18 = vshll.u32 %v1815_v32, 23 }
 0x1b3   : > { %v6865_v35 = vmul.u32.u64.low %v3242_v37, %v3241_v6  ;;  %v6866_v54 = vmul.u32.u64.high %v3242_v37, %v3241_v6, %v6865_v35  ;;  %v4814_v45 = vmin.u32 %v3364_v58, %v6853_v16  ;;  %v9415_v13 = vxor.u32 2147483648, %v6751_v36 }
 0x1b4   : > { %v6869_v61 = vmul.u32.u64.low %v3242_v37, %v3237_v17  ;;  %v6870_v19 = vmul.u32.u64.high %v3242_v37, %v3237_v17, %v6869_v61  ;;  %v1794_v46 = vadd.s32 %v6700_v11, %v6707_v56  ;;  %v9416_v35 = vand.u32 2147483647, %v6755_v4 }
 0x1b5   : > { %v6878_v9 = vsel %vm9198_vm1, %v9415_v13, %v6751_v36  ;;  %vm1645_vm3 = vcmp.gt.s32.totalorder %v1644_v28, 0  ;;  %v3366_v58 = vclz %v4814_v45  ;;  %v3233_v20 = vsel %vm3227_vm10, %v3230_v2, %v3232_v53 }
 0x1b6   : > { %v1641_v42 = vand.u32 8388607, %v9416_v35  ;;  %v1646_v29 = vsel %vm1645_vm3, %v1644_v28, 0  ;;  %v1811_v8 = vshll.u32 %v6768_v40, %v6827_v47  ;;  %v1812_v12 = vshrl.u32 %v1794_v46, %v1810_v1 }
 0x1b7   : > { %vm3251_vm5 = vc.u32 %v6866_v54, %v6869_v61  ;;  %v1648_v36 = vand.u32 31, %v1646_v29  ;;  %v6890_v44 = vor.u32 4788187, %v1816_v18  ;;  %v3354_v11 = vadd.s32 %v6796_v50, %v6803_v57 }
 0x1b8   : > { %v4815_v56 = vadd.s32 4294967294, %v3366_v58  ;;  %v3252_v17 = vadd.s32 1, %v6870_v19  ;;  %v3249_v0 = vmul.u32 %v3242_v37, %v3233_v20  ;;  %v1642_v10 = vor.u32 8388608, %v1641_v42  ;;  %v549_v42 = vpop.permute.xlu0 %548  ;;  %v394_v58 = vpop.permute.xlu1 %393 }
 0x1b9   : > { %v6895_v33 = vshrl.u32 %v1646_v29, 5  ;;  %v1649_v2 = vsub.s32 32, %v1648_v36  ;;  %v1651_v47 = vshll.u32 %v9364_v25, %v1648_v36  ;;  %v1654_v1 = vshll.u32 %v9369_v5, %v1648_v36 }
 0x1ba   : > { %vm4816_vm14 = vcmp.lt.s32.totalorder %v4815_v56, 0  ;;  %v3253_v40 = vsel %vm3251_vm5, %v3252_v17, %v6870_v19  ;;  %v1657_v57 = vshll.u32 %v9359_v30, %v1648_v36  ;;  %v1660_v18 = vshll.u32 %v9360_v27, %v1648_v36 }
 0x1bb   : > { %v6900_v6 = vsel %vm4816_vm14, 0, %v4815_v56  ;;  %v3254_v53 = vadd.s32 %v3253_v40, %v3249_v0  ;;  %v1652_v50 = vshrl.u32 %v9369_v5, %v1649_v2  ;;  %v1655_v28 = vshrl.u32 %v9359_v30, %v1649_v2 }
 0x1bc   : > { %v3374_v37 = vsub.s32 4294967266, %v6900_v6  ;;  %v1663_v45 = vshll.u32 %v9361_v48, %v1648_v36  ;;  %v3370_v19 = vsub.s32 32, %v6900_v6  ;;  %v1658_v46 = vshrl.u32 %v9360_v27, %v1649_v2 }
 0x1bd   : > { %v3255_v13 = vadd.s32 536870912, %v3254_v53  ;;  %v1661_v35 = vshrl.u32 %v9361_v48, %v1649_v2  ;;  %v1653_v29 = vor.u32 %v1652_v50, %v1651_v47  ;;  %v1656_v56 = vor.u32 %v1655_v28, %v1654_v1 }
 0x1be   : > { %v3375_v20 = vadd.s32 127, %v3374_v37  ;;  %v1664_v17 = vshrl.u32 %v9362_v31, %v1649_v2  ;;  %v1813_v0 = vor.u32 %v1812_v12, %v1811_v8  ;;  %v1659_v32 = vor.u32 %v1658_v46, %v1657_v57 }
 0x1bf   : > { %v6912_v40 = vshrl.u32 %v3255_v13, 30  ;;  %v1662_v55 = vor.u32 %v1661_v35, %v1660_v18  ;;  %v9418_v36 = vand.u32 2147483647, %v6352_v62  ;;  %v9419_v60 = vmov 0  ;;  %v389_v35 = vpop.permute.xlu0 %388 }
 0x1c0   : > { %vm9211_vm3 = vcmp.lt.s32.totalorder %v6401_v23, 0  ;;  %v1818_v22 = vand.u32 2147483647, %v6890_v44  ;;  %v1665_v37 = vor.u32 %v1664_v17, %v1663_v45  ;;  %v1682_v47 = vshll.u32 %v1642_v10, 8 }
 0x1c1   : > { %9417 = vst [vmem:[#allocation38_spill] sm:$0xff] %v6912_v40  ;;  %vm6916_vm10 = vcmp.le.f32.partialorder %v9418_v36, 0.7853982  ;;  %v6923_v1 = vadd.f32 %v549_v42, %v6823_v7  ;;  %v3257_v8 = vshll.u32 %v6912_v40, 30  ;;  %v1650_v12 = vshrl.u32 %v9364_v25, %v1649_v2  ;;  %v6932_v7 = vpop.permute.xlu1 %313 }
 0x1c2   : > { %v9420_v60 = vsel %vm6916_vm10, 4294967295, %v9419_v60  ;;  %vm1666_vm5 = vcmp.lt.s32.totalorder %v6895_v33, 1  ;;  %vm1669_vm14 = vcmp.lt.s32.totalorder %v6895_v33, 4  ;;  %v3372_v50 = vshrl.u32 %v3354_v11, %v3370_v19 }
 0x1c3   : > { %9421 = vst [vmem:[#allocation39_spill] sm:$0xff] %v9420_v60  ;;  %v3376_v57 = vshll.u32 %v3375_v20, 23  ;;  %v1671_v28 = vsel %vm1669_vm14, %v1659_v32, 2102212464  ;;  %v1674_v18 = vsel %vm1666_vm5, %v1653_v29, %v1656_v56  ;;  %v6929_v13 = vsub.s32 %v3254_v53, %v3257_v8 }
 0x1c4   : > { %vm1668_vm1 = vcmp.lt.s32.totalorder %v6895_v33, 3  ;;  %v1675_v44 = vsel %vm1669_vm14, %v1662_v55, 920167782  ;;  %v1678_v10 = vsel %vm1666_vm5, %v1656_v56, %v1659_v32  ;;  %vm1667_vm4 = vcmp.lt.s32.totalorder %v6895_v33, 2 }
 0x1c5   : > { %v1670_v45 = vsel %vm1666_vm5, %v1650_v12, %v1653_v29  ;;  %v1676_v2 = vsel %vm1668_vm1, %v1659_v32, %v1675_v44  ;;  %v1679_v46 = vsel %vm1669_vm14, %v1665_v37, 1326507024  ;;  %v9422_v42 = vand.u32 2147483647, %v6401_v23 }
 0x1c6   : > { %v9423_v11 = vmov 0  ;;  %v3260_v53 = vsub.s32 0, %v6929_v13  ;;  %v1672_v19 = vsel %vm1668_vm1, %v1656_v56, %v1671_v28  ;;  %v1677_v20 = vsel %vm1667_vm4, %v1674_v18, %v1676_v2 }
 0x1c7   : > { %vm6937_vm12 = vcmp.le.f32.partialorder %v9422_v42, 0.7853982  ;;  %v1680_v17 = vsel %vm1668_vm1, %v1662_v55, %v1679_v46  ;;  %v3371_v36 = vshll.u32 %v6853_v16, %v6900_v6  ;;  %v3377_v8 = vor.u32 4788187, %v3376_v57 }
 0x1c8   : > { %v9424_v11 = vsel %vm6937_vm12, 4294967295, %v9423_v11  ;;  %v1681_v32 = vsel %vm1667_vm4, %v1678_v10, %v1680_v17  ;;  %v6948_v29 = vmul.u32.u64.low %v1682_v47, %v1677_v20  ;;  %v6949_v37 = vmul.u32.u64.high %v1682_v47, %v1677_v20, %v6948_v29  ;;  %v624_v10 = vpop.permute.xlu1 %623 }
 0x1c9   : > { %9425 = vst [vmem:[#allocation40_spill] sm:$0xff] %v9424_v11  ;;  %v4810_v12 = vmin.u32 %v3260_v53, %v6929_v13  ;;  %v6953_v44 = vmul.u32.u64.low %v1682_v47, %v1681_v32  ;;  %v6954_v42 = vmul.u32.u64.high %v1682_v47, %v1681_v32, %v6953_v44  ;;  %5265 = vcosq.f32 %v6812_v3  ;;  %v6972_v53 = vpop.permute.xlu0 %308 }
 0x1ca   : > { %v1820_v56 = vcvt.s32.f32 %v1813_v0  ;;  %v1673_v55 = vsel %vm1667_vm4, %v1670_v45, %v1672_v19  ;;  %v1533_v16 = vand.u32 2139095040, %v6923_v1  ;;  %v3490_v6 = vsel %vm6916_vm10, %v6352_v62, %v6878_v9 }
 0x1cb   : > { %v9426_v57 = vxor.u32 2147483648, %v6856_v43  ;;  %vm9212_vm1 = vcmp.lt.s32.totalorder %v6543_v21, 0  ;;  %v3373_v18 = vor.u32 %v3372_v50, %v3371_v36  ;;  %v3262_v0 = vclz %v4810_v12 }
 0x1cc   : > { %v1821_v33 = vmul.f32 %v1820_v56, %v1818_v22  ;;  %v1692_v45 = vadd.s32 1, %v6949_v37  ;;  %v1534_v2 = vshrl.u32 %v1533_v16, 23  ;;  %v465_v46 = vmul.f32 %v6819_v51, %v394_v58 }
 0x1cd   : > { %v1927_v28 = vsel %vm9211_vm3, %v9426_v57, %v6856_v43  ;;  %v3378_v9 = vand.u32 2147483647, %v3377_v8  ;;  %v4811_v19 = vadd.s32 4294967294, %v3262_v0  ;;  %v1689_v20 = vmul.u32 %v1682_v47, %v1673_v55  ;;  %v619_v16 = vpop.permute.xlu0 %618 }
 0x1ce   : > { %vm1691_vm4 = vc.u32 %v6954_v42, %v6948_v29  ;;  %5267 = vsinq.f32 %v6812_v3  ;;  %v4745_v50 = vadd.s32 4294967169, %v1534_v2  ;;  %v6978_v17 = vadd.f32 %v624_v10, %v465_v46 }
 0x1cf   : > { %v1693_v43 = vsel %vm1691_vm4, %v1692_v45, %v6949_v37  ;;  %5269 = vcosq.f32 %v3490_v6  ;;  %v3380_v22 = vcvt.s32.f32 %v3373_v18  ;;  %vm4812_vm5 = vcmp.lt.s32.totalorder %v4811_v19, 0 }
 0x1d0   : > { %9427 = vst [vmem:[#allocation41_spill] sm:$0xff] %v6978_v17  ;;  %v1694_v36 = vadd.s32 %v1693_v43, %v1689_v20  ;;  %v6983_v58 = vsel %vm6937_vm12, %v6401_v23, %v1927_v28  ;;  %v1822_v47 = vxor.u32 2147483648, %v1821_v33  ;;  %v3265_v32 = vsel %vm4812_vm5, 0, %v4811_v19 }
 0x1d1   : > { %v1540_v8 = vadd.s32 1, %v4745_v50  ;;  %v6985_v12 = vmul.f32 %v3380_v22, %v3378_v9  ;;  %v3270_v3 = vsub.s32 4294967266, %v3265_v32  ;;  %v9201_v37 = vand.u32 2147483647, %v6923_v1 }
 0x1d2   : > { %v1695_v44 = vadd.s32 536870912, %v1694_v36  ;;  %5271 = vsinq.f32 %v3490_v6  ;;  %v3266_v56 = vsub.s32 32, %v3265_v32  ;;  %v3093_v55 = vand.u32 2139095040, %v6978_v17 }
 0x1d3   : > { %vm1541_vm14 = vcmp.gt.s32.totalorder %v1540_v8, 0  ;;  %v3271_v57 = vadd.s32 127, %v3270_v3  ;;  %v464_v0 = vmul.f32 %v6819_v51, %v389_v35  ;;  %5273 = vcosq.f32 %v6983_v58 }
 0x1d4   : > { %v6989_v18 = vshrl.u32 %v1695_v44, 30  ;;  %v1542_v28 = vsel %vm1541_vm14, %v1540_v8, 0  ;;  %v6995_v10 = vsel %vm9212_vm1, %v1822_v47, %v1821_v33  ;;  %v3250_v6 = vadd.s32 %v6869_v61, %v6866_v54 }
 0x1d5   : > { %v1544_v45 = vand.u32 31, %v1542_v28  ;;  %v1537_v9 = vand.u32 8388607, %v9201_v37  ;;  %v7003_v19 = vadd.f32 %v619_v16, %v464_v0  ;;  %v3094_v50 = vshrl.u32 %v3093_v55, 23 }
 0x1d6   : > { %9428 = vst [vmem:[#allocation42_spill] sm:$0xff] %v6989_v18  ;;  %v1697_v46 = vshll.u32 %v6989_v18, 30  ;;  %v3268_v35 = vshrl.u32 %v3250_v6, %v3266_v56  ;;  %v7006_v33 = vpop.eup %5265  ;;  %v3272_v22 = vshll.u32 %v3271_v57, 23  ;;  %v1543_v54 = vshrl.u32 %v1542_v28, 5 }
 0x1d7   : > { %9429 = vst [vmem:[#allocation43_spill] sm:$0xff] %v7003_v19  ;;  %v1545_v20 = vsub.s32 32, %v1544_v45  ;;  %9430 = vst [vmem:[#allocation44_spill] sm:$0xff] %v7006_v33  ;;  %v1547_v61 = vshll.u32 %v9364_v25, %v1544_v45  ;;  %v1550_v3 = vshll.u32 %v9369_v5, %v1544_v45  ;;  %v1553_v55 = vshll.u32 %v9359_v30, %v1544_v45 }
 0x1d8   : > { %v7008_v47 = vsub.s32 %v1694_v36, %v1697_v46  ;;  %v1556_v0 = vshll.u32 %v9360_v27, %v1544_v45  ;;  %v1559_v6 = vshll.u32 %v9361_v48, %v1544_v45  ;;  %v3267_v2 = vshll.u32 %v6929_v13, %v3265_v32 }
 0x1d9   : > { %v1548_v8 = vshrl.u32 %v9369_v5, %v1545_v20  ;;  %v1551_v44 = vshrl.u32 %v9359_v30, %v1545_v20  ;;  %v1554_v56 = vshrl.u32 %v9360_v27, %v1545_v20  ;;  %v1557_v36 = vshrl.u32 %v9361_v48, %v1545_v20 }
 0x1da   : > { %v1700_v16 = vsub.s32 0, %v7008_v47  ;;  %v1560_v46 = vshrl.u32 %v9362_v31, %v1545_v20  ;;  %v1538_v23 = vor.u32 8388608, %v1537_v9  ;;  %v4805_v60 = vadd.s32 4294967169, %v3094_v50 }
 0x1db   : > { %v1549_v57 = vor.u32 %v1548_v8, %v1547_v61  ;;  %v1552_v28 = vor.u32 %v1551_v44, %v1550_v3  ;;  %v7021_v37 = vpop.eup %5267  ;;  %v1555_v18 = vor.u32 %v1554_v56, %v1553_v55  ;;  %v1558_v40 = vor.u32 %v1557_v36, %v1556_v0 }
 0x1dc   : > { %9431 = vst [vmem:[#allocation45_spill] sm:$0xff] %v7021_v37  ;;  %v4750_v43 = vmin.u32 %v1700_v16, %v7008_v47  ;;  %v7025_v11 = vpop.eup %5269  ;;  %v1561_v33 = vor.u32 %v1560_v46, %v1559_v6  ;;  %v9433_v61 = vand.u32 2147483647, %v6978_v17  ;;  %v9434_v45 = vand.u32 2147483647, %v6543_v21 }
 0x1dd   : > { %9432 = vst [vmem:[#allocation46_spill] sm:$0xff] %v7025_v11  ;;  %v9435_v3 = vmov 0  ;;  %v3269_v44 = vor.u32 %v3268_v35, %v3267_v2  ;;  %vm1562_vm5 = vcmp.lt.s32.totalorder %v1543_v54, 1  ;;  %vm1565_vm14 = vcmp.lt.s32.totalorder %v1543_v54, 4 }
 0x1de   : > { %v3097_v8 = vand.u32 8388607, %v9433_v61  ;;  %vm7031_vm4 = vcmp.le.f32.partialorder %v9434_v45, 0.7853982  ;;  %v1702_v13 = vclz %v4750_v43  ;;  %vm9219_vm3 = vcmp.lt.s32.totalorder %v6686_v63, 0 }
 0x1df   : > { %v9436_v3 = vsel %vm7031_vm4, 4294967295, %v9435_v3  ;;  %v3273_v32 = vor.u32 4788187, %v3272_v22  ;;  %vm1564_vm1 = vcmp.lt.s32.totalorder %v1543_v54, 3  ;;  %v1570_v9 = vsel %vm1562_vm5, %v1549_v57, %v1552_v28  ;;  %v7037_v56 = vpop.eup %5271 }
 0x1e0   : > { %9437 = vst [vmem:[#allocation47_spill] sm:$0xff] %v9436_v3  ;;  %v1571_v50 = vsel %vm1565_vm14, %v1558_v40, 920167782  ;;  %9438 = vst [vmem:[#allocation48_spill] sm:$0xff] %v7037_v56  ;;  %v4751_v16 = vadd.s32 4294967294, %v1702_v13  ;;  %v1574_v36 = vsel %vm1562_vm5, %v1552_v28, %v1555_v18  ;;  %v1546_v2 = vshrl.u32 %v9364_v25, %v1545_v20  ;;  %v7042_v6 = vpop.eup %5273 }
 0x1e1   : > { %v1567_v55 = vsel %vm1565_vm14, %v1555_v18, 2102212464  ;;  %v1572_v0 = vsel %vm1564_vm1, %v1555_v18, %v1571_v50  ;;  %vm1563_vm0 = vcmp.lt.s32.totalorder %v1543_v54, 2  ;;  %v1575_v35 = vsel %vm1565_vm14, %v1561_v33, 1326507024  ;;  %9439 = vst [vmem:[#allocation49_spill] sm:$0xff] %v7042_v6 }
 0x1e2   : > { %v1578_v43 = vshll.u32 %v1538_v23, 8  ;;  %vm4752_vm7 = vcmp.lt.s32.totalorder %v4751_v16, 0  ;;  %v1573_v22 = vsel %vm1563_vm0, %v1570_v9, %v1572_v0  ;;  %v1576_v46 = vsel %vm1564_vm1, %v1558_v40, %v1575_v35 }
 0x1e3   : > { %v3100_v61 = vadd.s32 1, %v4805_v60  ;;  %v1705_v45 = vsel %vm4752_vm7, 0, %v4751_v16  ;;  %v1566_v13 = vsel %vm1562_vm5, %v1546_v2, %v1549_v57  ;;  %v1568_v50 = vsel %vm1564_vm1, %v1552_v28, %v1567_v55 }
 0x1e4   : > { %v1577_v18 = vsel %vm1563_vm0, %v1574_v36, %v1576_v46  ;;  %v3274_v37 = vand.u32 2147483647, %v3273_v32  ;;  %v3276_v20 = vcvt.s32.f32 %v3269_v44  ;;  %v3098_v11 = vor.u32 8388608, %v3097_v8 }
 0x1e5   : > { %vm3101_vm14 = vcmp.gt.s32.totalorder %v3100_v61, 0  ;;  %v7049_v23 = vmul.u32.u64.low %v1578_v43, %v1577_v18  ;;  %v7050_v33 = vmul.u32.u64.high %v1578_v43, %v1577_v18, %v7049_v23  ;;  %v1706_v40 = vsub.s32 32, %v1705_v45 }
 0x1e6   : > { %v7052_v6 = vmul.u32.u64.low %v1578_v43, %v1573_v22  ;;  %v7053_v56 = vmul.u32.u64.high %v1578_v43, %v1573_v22, %v7052_v6  ;;  %v1710_v60 = vsub.s32 4294967266, %v1705_v45  ;;  %v1569_v9 = vsel %vm1563_vm0, %v1566_v13, %v1568_v50  ;;  %v544_v23 = vpop.permute.xlu1 %543 }
 0x1e7   : > { %v3102_v57 = vsel %vm3101_vm14, %v3100_v61, 0  ;;  %5275 = vsinq.f32 %v6983_v58  ;;  %v7062_v28 = vsel %vm7031_vm4, %v6543_v21, %v6995_v10  ;;  %v449_v8 = vmul.f32 %v6819_v51, %v6932_v7 }
 0x1e8   : > { %v3104_v44 = vand.u32 31, %v3102_v57  ;;  %v9440_v32 = vxor.u32 2147483648, %v6985_v12  ;;  %v7073_v16 = vmul.f32 %v3276_v20, %v3274_v37  ;;  %v1690_v58 = vadd.s32 %v6948_v29, %v6954_v42 }
 0x1e9   : > { %v9222_v55 = vand.u32 2147483647, %v7003_v19  ;;  %v1585_v10 = vmul.u32 %v1578_v43, %v1569_v9  ;;  %vm1587_vm7 = vc.u32 %v7050_v33, %v7052_v6  ;;  %v1588_v7 = vadd.s32 1, %v7053_v56 }
 0x1ea   : > { %v7071_v54 = vsel %vm9219_vm3, %v9440_v32, %v6985_v12  ;;  %v3105_v0 = vsub.s32 32, %v3104_v44  ;;  %v1708_v36 = vshrl.u32 %v1690_v58, %v1706_v40  ;;  %v1711_v2 = vadd.s32 127, %v1710_v60 }
 0x1eb   : > { %v3107_v35 = vshll.u32 %v9364_v25, %v3104_v44  ;;  %v7082_v12 = vshll.u32 %v3098_v11, 8  ;;  %v1589_v37 = vsel %vm1587_vm7, %v1588_v7, %v7053_v56  ;;  %v3110_v29 = vshll.u32 %v9369_v5, %v3104_v44 }
 0x1ec   : > { %v3108_v22 = vshrl.u32 %v9369_v5, %v3105_v0  ;;  %v3111_v42 = vshrl.u32 %v9359_v30, %v3105_v0  ;;  %v1590_v43 = vadd.s32 %v1589_v37, %v1585_v10  ;;  %v3103_v46 = vshrl.u32 %v3102_v57, 5 }
 0x1ed   : > { %v3113_v61 = vshll.u32 %v9359_v30, %v3104_v44  ;;  %v3114_v13 = vshrl.u32 %v9360_v27, %v3105_v0  ;;  %v3116_v20 = vshll.u32 %v9360_v27, %v3104_v44  ;;  %v3117_v11 = vshrl.u32 %v9361_v48, %v3105_v0 }
 0x1ee   : > { %v3109_v50 = vor.u32 %v3108_v22, %v3107_v35  ;;  %v3112_v18 = vor.u32 %v3111_v42, %v3110_v29  ;;  %v1707_v56 = vshll.u32 %v7008_v47, %v1705_v45  ;;  %v1591_v40 = vadd.s32 536870912, %v1590_v43 }
 0x1ef   : > { %v3115_v60 = vor.u32 %v3114_v13, %v3113_v61  ;;  %v2989_v9 = vand.u32 2139095040, %v7003_v19  ;;  %v1712_v32 = vshll.u32 %v1711_v2, 23  ;;  %v3118_v58 = vor.u32 %v3117_v11, %v3116_v20 }
 0x1f0   : > { %v3119_v57 = vshll.u32 %v9361_v48, %v3104_v44  ;;  %v3120_v10 = vshrl.u32 %v9362_v31, %v3105_v0  ;;  %v1709_v7 = vor.u32 %v1708_v36, %v1707_v56  ;;  %v7096_v35 = vshrl.u32 %v1591_v40, 30 }
 0x1f1   : > { %vm3122_vm0 = vcmp.lt.s32.totalorder %v3103_v46, 1  ;;  %v7098_v37 = vadd.f32 %v544_v23, %v449_v8  ;;  %v9443_v22 = vand.u32 2147483647, %v6686_v63  ;;  %v9444_v47 = vmov 0 }
 0x1f2   : > { %9441 = vst [vmem:[#allocation50_spill] sm:$0xff] %v7096_v35  ;;  %vm9235_vm5 = vcmp.lt.s32.totalorder %v6688_v26, 0  ;;  %v3106_v45 = vshrl.u32 %v9364_v25, %v3105_v0  ;;  %v3121_v2 = vor.u32 %v3120_v10, %v3119_v57  ;;  %vm3125_vm14 = vcmp.lt.s32.totalorder %v3103_v46, 4 }
 0x1f3   : > { %9442 = vst [vmem:[#allocation51_spill] sm:$0xff] %v7098_v37  ;;  %vm7102_vm1 = vcmp.le.f32.partialorder %v9443_v22, 0.7853982  ;;  %v3130_v44 = vsel %vm3122_vm0, %v3109_v50, %v3112_v18  ;;  %v1593_v36 = vshll.u32 %v7096_v35, 30  ;;  %vm3124_vm7 = vcmp.lt.s32.totalorder %v3103_v46, 3 }
 0x1f4   : > { %v9445_v47 = vsel %vm7102_vm1, 4294967295, %v9444_v47  ;;  %v3127_v29 = vsel %vm3125_vm14, %v3115_v60, 2102212464  ;;  %v3131_v8 = vsel %vm3125_vm14, %v3118_v58, 920167782  ;;  %vm3123_vm3 = vcmp.lt.s32.totalorder %v3103_v46, 2  ;;  %v7111_v20 = vpop.eup %5275 }
 0x1f5   : > { %9446 = vst [vmem:[#allocation52_spill] sm:$0xff] %v9445_v47  ;;  %v1713_v42 = vor.u32 4788187, %v1712_v32  ;;  %v3132_v61 = vsel %vm3124_vm7, %v3115_v60, %v3131_v8  ;;  %v3134_v13 = vsel %vm3122_vm0, %v3112_v18, %v3115_v60  ;;  %9447 = vst [vmem:[#allocation53_spill] sm:$0xff] %v7111_v20  ;;  %v7113_v11 = vsub.s32 %v1590_v43, %v1593_v36 }
 0x1f6   : > { %v3126_v0 = vsel %vm3122_vm0, %v3106_v45, %v3109_v50  ;;  %v3133_v23 = vsel %vm3123_vm3, %v3130_v44, %v3132_v61  ;;  %v3135_v56 = vsel %vm3125_vm14, %v3121_v2, 1326507024  ;;  %v3128_v40 = vsel %vm3124_vm7, %v3112_v18, %v3127_v29 }
 0x1f7   : > { %v3136_v57 = vsel %vm3124_vm7, %v3118_v58, %v3135_v56  ;;  %v7118_v10 = vmul.u32.u64.low %v7082_v12, %v3133_v23  ;;  %v7119_v22 = vmul.u32.u64.high %v7082_v12, %v3133_v23, %v7118_v10  ;;  %v9448_v32 = vand.u32 2147483647, %v6688_v26 }
 0x1f8   : > { %v9449_v60 = vmov 0  ;;  %v3278_v43 = vxor.u32 2147483648, %v7073_v16  ;;  %v1596_v50 = vsub.s32 0, %v7113_v11  ;;  %v3137_v45 = vsel %vm3123_vm3, %v3134_v13, %v3136_v57 }
 0x1f9   : > { %vm7124_vm2 = vcmp.le.f32.partialorder %v9448_v32, 0.7853982  ;;  %v2990_v2 = vshrl.u32 %v2989_v9, 23  ;;  %v1714_v18 = vand.u32 2147483647, %v1713_v42  ;;  %5277 = vcosq.f32 %v7062_v28 }
 0x1fa   : > { %v9450_v60 = vsel %vm7124_vm2, 4294967295, %v9449_v60  ;;  %v7132_v58 = vmul.u32.u64.low %v7082_v12, %v3137_v45  ;;  %v7133_v44 = vmul.u32.u64.high %v7082_v12, %v3137_v45, %v7132_v58  ;;  %v2993_v36 = vand.u32 8388607, %v9222_v55 }
 0x1fb   : > { %9451 = vst [vmem:[#allocation54_spill] sm:$0xff] %v9450_v60  ;;  %v4746_v29 = vmin.u32 %v1596_v50, %v7113_v11  ;;  %v3129_v8 = vsel %vm3123_vm3, %v3126_v0, %v3128_v40  ;;  %v4801_v61 = vadd.s32 4294967169, %v2990_v2  ;;  %5279 = vsinq.f32 %v7062_v28  ;;  %v539_v2 = vpop.permute.xlu0 %538 }
 0x1fc   : > { %v1716_v23 = vcvt.s32.f32 %v1709_v7  ;;  %v3148_v9 = vadd.s32 1, %v7119_v22  ;;  %v1429_v42 = vand.u32 2139095040, %v7098_v37  ;;  %v3386_v13 = vsel %vm7102_vm1, %v6686_v63, %v7071_v54 }
 0x1fd   : > { %v3279_v56 = vsel %vm9235_vm5, %v3278_v43, %v7073_v16  ;;  %v1598_v57 = vclz %v4746_v29  ;;  %v2996_v46 = vadd.s32 1, %v4801_v61  ;;  %v3145_v28 = vmul.u32 %v7082_v12, %v3129_v8 }
 0x1fe   : > { %v7150_v0 = vmul.f32 %v1716_v23, %v1714_v18  ;;  %vm3147_vm3 = vc.u32 %v7133_v44, %v7118_v10  ;;  %v2994_v7 = vor.u32 8388608, %v2993_v36  ;;  %v9221_v54 = vand.u32 2147483647, %v7098_v37 }
 0x1ff   : > { %v4747_v40 = vadd.s32 4294967294, %v1598_v57  ;;  %v3149_v32 = vsel %vm3147_vm3, %v3148_v9, %v7119_v22  ;;  %vm2997_vm0 = vcmp.gt.s32.totalorder %v2996_v46, 0  ;;  %5281 = vcosq.f32 %v3386_v13 }
 0x200   : > { %v3150_v50 = vadd.s32 %v3149_v32, %v3145_v28  ;;  %v2998_v45 = vsel %vm2997_vm0, %v2996_v46, 0  ;;  %v1430_v16 = vshrl.u32 %v1429_v42, 23  ;;  %5283 = vsinq.f32 %v3386_v13 }
 0x201   : > { %vm4748_vm14 = vcmp.lt.s32.totalorder %v4747_v40, 0  ;;  %v448_v43 = vmul.f32 %v6819_v51, %v6972_v53  ;;  %v3000_v12 = vand.u32 31, %v2998_v45  ;;  %v7162_v18 = vsel %vm7124_vm2, %v6688_v26, %v3279_v56 }
 0x202   : > { %v1586_v22 = vadd.s32 %v7052_v6, %v7050_v33  ;;  %v7166_v58 = vsel %vm4748_vm14, 0, %v4747_v40  ;;  %v3151_v36 = vadd.s32 536870912, %v3150_v50  ;;  %v7169_v61 = vshll.u32 %v2994_v7, 8 }
 0x203   : > { %v3001_v8 = vsub.s32 32, %v3000_v12  ;;  %v7173_v51 = vand.u32 8388607, %v9221_v54  ;;  %v1602_v53 = vsub.s32 32, %v7166_v58  ;;  %v4741_v9 = vadd.s32 4294967169, %v1430_v16 }
 0x204   : > { %v7176_v23 = vshrl.u32 %v3151_v36, 30  ;;  %v7178_v42 = vadd.f32 %v539_v2, %v448_v43  ;;  %v1606_v6 = vsub.s32 4294967266, %v7166_v58  ;;  %v3003_v33 = vshll.u32 %v9364_v25, %v3000_v12 }
 0x205   : > { %v3004_v13 = vshrl.u32 %v9369_v5, %v3001_v8  ;;  %v3006_v56 = vshll.u32 %v9369_v5, %v3000_v12  ;;  %v3007_v46 = vshrl.u32 %v9359_v30, %v3001_v8  ;;  %v3009_v28 = vshll.u32 %v9359_v30, %v3000_v12 }
 0x206   : > { %9452 = vst [vmem:[#allocation55_spill] sm:$0xff] %v7176_v23  ;;  %9453 = vst [vmem:[#allocation56_spill] sm:$0xff] %v7178_v42  ;;  %v3153_v57 = vshll.u32 %v7176_v23, 30  ;;  %v3010_v7 = vshrl.u32 %v9360_v27, %v3001_v8  ;;  %v2999_v40 = vshrl.u32 %v2998_v45, 5  ;;  %v3012_v32 = vshll.u32 %v9360_v27, %v3000_v12  ;;  %v7191_v2 = vpop.eup %5277 }
 0x207   : > { %v3013_v16 = vshrl.u32 %v9361_v48, %v3001_v8  ;;  %v1434_v43 = vor.u32 8388608, %v7173_v51  ;;  %9454 = vst [vmem:[#allocation57_spill] sm:$0xff] %v7191_v2  ;;  %v3005_v54 = vor.u32 %v3004_v13, %v3003_v33  ;;  %v3008_v55 = vor.u32 %v3007_v46, %v3006_v56 }
 0x208   : > { %v7193_v36 = vsub.s32 %v3150_v50, %v3153_v57  ;;  %v3011_v29 = vor.u32 %v3010_v7, %v3009_v28  ;;  %v7195_v23 = vpop.eup %5279  ;;  %v1607_v35 = vadd.s32 127, %v1606_v6  ;;  %v3015_v63 = vshll.u32 %v9361_v48, %v3000_v12 }
 0x209   : > { %9455 = vst [vmem:[#allocation58_spill] sm:$0xff] %v7195_v23  ;;  %v3014_v47 = vor.u32 %v3013_v16, %v3012_v32  ;;  %v3016_v45 = vshrl.u32 %v9362_v31, %v3001_v8  ;;  %v1604_v60 = vshrl.u32 %v1586_v22, %v1602_v53  ;;  %v3002_v51 = vshrl.u32 %v9364_v25, %v3001_v8 }
 0x20a   : > { %v3156_v26 = vsub.s32 0, %v7193_v36  ;;  %v1436_v20 = vadd.s32 1, %v4741_v9  ;;  %vm3018_vm7 = vcmp.lt.s32.totalorder %v2999_v40, 1  ;;  %vm3020_vm3 = vcmp.lt.s32.totalorder %v2999_v40, 3 }
 0x20b   : > { %v3017_v2 = vor.u32 %v3016_v45, %v3015_v63  ;;  %vm3021_vm0 = vcmp.lt.s32.totalorder %v2999_v40, 4  ;;  %v3026_v13 = vsel %vm3018_vm7, %v3005_v54, %v3008_v55  ;;  %v1608_v12 = vshll.u32 %v1607_v35, 23 }
 0x20c   : > { %v4806_v50 = vmin.u32 %v3156_v26, %v7193_v36  ;;  %v3023_v33 = vsel %vm3021_vm0, %v3011_v29, 2102212464  ;;  %v3027_v6 = vsel %vm3021_vm0, %v3014_v47, 920167782  ;;  %v7202_v56 = vpop.eup %5281  ;;  %vm3019_vm14 = vcmp.lt.s32.totalorder %v2999_v40, 2 }
 0x20d   : > { %9456 = vst [vmem:[#allocation59_spill] sm:$0xff] %v7202_v56  ;;  %v3028_v22 = vsel %vm3020_vm3, %v3011_v29, %v3027_v6  ;;  %v3030_v53 = vsel %vm3018_vm7, %v3008_v55, %v3011_v29  ;;  %v7205_v57 = vpop.eup %5283  ;;  %v3022_v9 = vsel %vm3018_vm7, %v3002_v51, %v3005_v54  ;;  %v3031_v46 = vsel %vm3021_vm0, %v3017_v2, 1326507024 }
 0x20e   : > { %9457 = vst [vmem:[#allocation60_spill] sm:$0xff] %v7205_v57  ;;  %v3158_v8 = vclz %v4806_v50  ;;  %v3029_v63 = vsel %vm3019_vm14, %v3026_v13, %v3028_v22  ;;  %v3024_v28 = vsel %vm3020_vm3, %v3008_v55, %v3023_v33  ;;  %v3032_v26 = vsel %vm3020_vm3, %v3014_v47, %v3031_v46 }
 0x20f   : > { %v7211_v7 = vmul.u32.u64.low %v7169_v61, %v3029_v63  ;;  %v7212_v32 = vmul.u32.u64.high %v7169_v61, %v3029_v63, %v7211_v7  ;;  %v1603_v35 = vshll.u32 %v7113_v11, %v7166_v58  ;;  %v3033_v16 = vsel %vm3019_vm14, %v3030_v53, %v3032_v26 }
 0x210   : > { %v4807_v29 = vadd.s32 4294967294, %v3158_v8  ;;  %vm1437_vm5 = vcmp.gt.s32.totalorder %v1436_v20, 0  ;;  %v1609_v54 = vor.u32 4788187, %v1608_v12  ;;  %v3025_v47 = vsel %vm3019_vm14, %v3022_v9, %v3024_v28 }
 0x211   : > { %v7219_v45 = vmul.u32.u64.low %v7169_v61, %v3033_v16  ;;  %v7220_v2 = vmul.u32.u64.high %v7169_v61, %v3033_v16, %v7219_v45  ;;  %v1438_v55 = vsel %vm1437_vm5, %v1436_v20, 0  ;;  %v1605_v51 = vor.u32 %v1604_v60, %v1603_v35 }
 0x212   : > { %vm4808_vm7 = vcmp.lt.s32.totalorder %v4807_v29, 0  ;;  %v1440_v50 = vand.u32 31, %v1438_v55  ;;  %5285 = vcosq.f32 %v7162_v18  ;;  %vm9236_vm3 = vcmp.lt.s32.totalorder %v6755_v4, 0 }
 0x213   : > { %v7225_v11 = vsel %vm4808_vm7, 0, %v4807_v29  ;;  %v3044_v58 = vadd.s32 1, %v7212_v32  ;;  %v9458_v33 = vxor.u32 2147483648, %v7150_v0  ;;  %v3146_v20 = vadd.s32 %v7118_v10, %v7133_v44 }
 0x214   : > { %v3166_v60 = vsub.s32 4294967266, %v7225_v11  ;;  %v7238_v40 = vshll.u32 %v1434_v43, 8  ;;  %v1610_v6 = vand.u32 2147483647, %v1609_v54  ;;  %v3041_v12 = vmul.u32 %v7169_v61, %v3025_v47 }
 0x215   : > { %v7233_v13 = vsel %vm9236_vm3, %v9458_v33, %v7150_v0  ;;  %vm3043_vm5 = vc.u32 %v7220_v2, %v7211_v7  ;;  %v1441_v22 = vsub.s32 32, %v1440_v50  ;;  %v1612_v53 = vcvt.s32.f32 %v1605_v51 }
 0x216   : > { %v3162_v8 = vsub.s32 32, %v7225_v11  ;;  %v3045_v0 = vsel %vm3043_vm5, %v3044_v58, %v7212_v32  ;;  %v1443_v10 = vshll.u32 %v9364_v25, %v1440_v50  ;;  %v3167_v46 = vadd.s32 127, %v3166_v60 }
 0x217   : > { %v3046_v63 = vadd.s32 %v3045_v0, %v3041_v12  ;;  %v1444_v44 = vshrl.u32 %v9369_v5, %v1441_v22  ;;  %v1447_v43 = vshrl.u32 %v9359_v30, %v1441_v22  ;;  %v1446_v61 = vshll.u32 %v9369_v5, %v1440_v50 }
 0x218   : > { %v1449_v28 = vshll.u32 %v9359_v30, %v1440_v50  ;;  %v1450_v26 = vshrl.u32 %v9360_v27, %v1441_v22  ;;  %v7252_v35 = vmul.f32 %v1612_v53, %v1610_v6  ;;  %v1439_v32 = vshrl.u32 %v1438_v55, 5 }
 0x219   : > { %v3047_v29 = vadd.s32 536870912, %v3046_v63  ;;  %v1445_v16 = vor.u32 %v1444_v44, %v1443_v10  ;;  %v1448_v54 = vor.u32 %v1447_v43, %v1446_v61  ;;  %v1452_v51 = vshll.u32 %v9360_v27, %v1440_v50  ;;  %v384_v10 = vpop.permute.xlu1 %383  ;;  %v379_v44 = vpop.permute.xlu0 %378 }
 0x21a   : > { %v1451_v45 = vor.u32 %v1450_v26, %v1449_v28  ;;  %v1453_v47 = vshrl.u32 %v9361_v48, %v1441_v22  ;;  %v1455_v33 = vshll.u32 %v9361_v48, %v1440_v50  ;;  %v1456_v60 = vshrl.u32 %v9362_v31, %v1441_v22 }
 0x21b   : > { %v7256_v58 = vshrl.u32 %v3047_v29, 30  ;;  %v1325_v12 = vand.u32 2139095040, %v7178_v42  ;;  %v3164_v0 = vshrl.u32 %v3146_v20, %v3162_v8  ;;  %v3168_v6 = vshll.u32 %v3167_v46, 23 }
 0x21c   : > { %v1442_v53 = vshrl.u32 %v9364_v25, %v1441_v22  ;;  %v1454_v55 = vor.u32 %v1453_v47, %v1452_v51  ;;  %v9460_v43 = vand.u32 2147483647, %v6755_v4  ;;  %v9461_v61 = vmov 0 }
 0x21d   : > { %9459 = vst [vmem:[#allocation61_spill] sm:$0xff] %v7256_v58  ;;  %v3049_v28 = vshll.u32 %v7256_v58, 30  ;;  %v1457_v50 = vor.u32 %v1456_v60, %v1455_v33  ;;  %vm1458_vm14 = vcmp.lt.s32.totalorder %v1439_v32, 1  ;;  %vm1461_vm7 = vcmp.lt.s32.totalorder %v1439_v32, 4 }
 0x21e   : > { %vm7264_vm0 = vcmp.le.f32.partialorder %v9460_v43, 0.7853982  ;;  %vm1460_vm5 = vcmp.lt.s32.totalorder %v1439_v32, 3  ;;  %v1463_v26 = vsel %vm1461_vm7, %v1451_v45, 2102212464  ;;  %v1466_v20 = vsel %vm1458_vm14, %v1445_v16, %v1448_v54 }
 0x21f   : > { %v9462_v61 = vsel %vm7264_vm0, 4294967295, %v9461_v61  ;;  %v1467_v8 = vsel %vm1461_vm7, %v1454_v55, 920167782  ;;  %v7269_v46 = vsub.s32 %v3046_v63, %v3049_v28  ;;  %vm1459_vm3 = vcmp.lt.s32.totalorder %v1439_v32, 2  ;;  %v7271_v51 = vpop.eup %5285 }
 0x220   : > { %9463 = vst [vmem:[#allocation62_spill] sm:$0xff] %v9462_v61  ;;  %v1468_v22 = vsel %vm1460_vm5, %v1451_v45, %v1467_v8  ;;  %v1470_v29 = vsel %vm1458_vm14, %v1448_v54, %v1451_v45  ;;  %9464 = vst [vmem:[#allocation63_spill] sm:$0xff] %v7271_v51  ;;  %v1462_v47 = vsel %vm1458_vm14, %v1442_v53, %v1445_v16  ;;  %v1471_v56 = vsel %vm1461_vm7, %v1457_v50, 1326507024  ;;  %v7283_v16 = vpop.permute.xlu1 %303 }
 0x221   : > { %v1464_v43 = vsel %vm1460_vm5, %v1448_v54, %v1463_v26  ;;  %v1469_v9 = vsel %vm1459_vm3, %v1466_v20, %v1468_v22  ;;  %v3052_v33 = vsub.s32 0, %v7269_v46  ;;  %v1472_v60 = vsel %vm1460_vm5, %v1454_v55, %v1471_v56  ;;  %v7285_v54 = vpop.permute.xlu0 %298 }
 0x222   : > { %v7276_v58 = vmul.u32.u64.low %v7238_v40, %v1469_v9  ;;  %v7277_v57 = vmul.u32.u64.high %v7238_v40, %v1469_v9, %v7276_v58  ;;  %v3163_v63 = vshll.u32 %v7193_v36, %v7225_v11  ;;  %v3169_v28 = vor.u32 4788187, %v3168_v6 }
 0x223   : > { %v1473_v45 = vsel %vm1459_vm3, %v1470_v29, %v1472_v60  ;;  %v1326_v8 = vshrl.u32 %v1325_v12, 23  ;;  %v1614_v53 = vxor.u32 2147483648, %v7252_v35  ;;  %v4802_v56 = vmin.u32 %v3052_v33, %v7269_v46  ;;  %v7306_v29 = vld [vmem:[%s5751_s24] ss:$0 sm:$0xff] }
 0x224   : > { %v7290_v9 = vmul.u32.u64.low %v7238_v40, %v1473_v45  ;;  %v7291_v55 = vmul.u32.u64.high %v7238_v40, %v1473_v45, %v7290_v9  ;;  %v3165_v50 = vor.u32 %v3164_v0, %v3163_v63  ;;  %v1465_v36 = vsel %vm1459_vm3, %v1462_v47, %v1464_v43 }
 0x225   : > { %v4737_v11 = vadd.s32 4294967169, %v1326_v8  ;;  %v9465_v6 = vand.u32 2147483647, %v7178_v42  ;;  %5287 = vsinq.f32 %v7162_v18  ;;  %vm9249_vm14 = vcmp.lt.s32.totalorder %v6923_v1, 0  ;;  %v609_v45 = vpop.permute.xlu0 %608 }
 0x226   : > { %v3054_v26 = vclz %v4802_v56  ;;  %v1484_v20 = vadd.s32 1, %v7277_v57  ;;  %v7303_v22 = vsel %vm7264_vm0, %v6755_v4, %v7233_v13  ;;  %v3170_v0 = vand.u32 2147483647, %v3169_v28  ;;  %v614_v28 = vpop.permute.xlu1 %613 }
 0x227   : > { %v1329_v12 = vand.u32 8388607, %v9465_v6  ;;  %v1332_v32 = vadd.s32 1, %v4737_v11  ;;  %v463_v47 = vmul.f32 %v7306_v29, %v384_v10  ;;  %v7312_v18 = vsel %vm9249_vm14, %v1614_v53, %v7252_v35 }
 0x228   : > { %v4803_v43 = vadd.s32 4294967294, %v3054_v26  ;;  %v1481_v33 = vmul.u32 %v7238_v40, %v1465_v36  ;;  %vm1483_vm3 = vc.u32 %v7291_v55, %v7276_v58  ;;  %v3172_v60 = vcvt.s32.f32 %v3165_v50 }
 0x229   : > { %v1485_v13 = vsel %vm1483_vm3, %v1484_v20, %v7277_v57  ;;  %v1330_v63 = vor.u32 8388608, %v1329_v12  ;;  %vm1333_vm7 = vcmp.gt.s32.totalorder %v1332_v32, 0  ;;  %v462_v56 = vmul.f32 %v7306_v29, %v379_v44 }
 0x22a   : > { %vm4804_vm5 = vcmp.lt.s32.totalorder %v4803_v43, 0  ;;  %v1486_v10 = vadd.s32 %v1485_v13, %v1481_v33  ;;  %v1334_v8 = vsel %vm1333_vm7, %v1332_v32, 0  ;;  %v7319_v35 = vmul.f32 %v3172_v60, %v3170_v0 }
 0x22b   : > { %v3042_v40 = vadd.s32 %v7211_v7, %v7220_v2  ;;  %v3057_v53 = vsel %vm4804_vm5, 0, %v4803_v43  ;;  %v1336_v9 = vand.u32 31, %v1334_v8  ;;  %v7323_v11 = vadd.f32 %v614_v28, %v463_v47 }
 0x22c   : > { %v3062_v36 = vsub.s32 4294967266, %v3057_v53  ;;  %v1487_v50 = vadd.s32 536870912, %v1486_v10  ;;  %v7325_v57 = vadd.f32 %v609_v45, %v462_v56  ;;  %v3058_v6 = vsub.s32 32, %v3057_v53 }
 0x22d   : > { %9466 = vst [vmem:[#allocation64_spill] sm:$0xff] %v7323_v11  ;;  %v7327_v12 = vshrl.u32 %v1334_v8, 5  ;;  %v1337_v26 = vsub.s32 32, %v1336_v9  ;;  %v7329_v20 = vshll.u32 %v1330_v63, 8  ;;  %v1339_v32 = vshll.u32 %v9364_v25, %v1336_v9 }
 0x22e   : > { %v3063_v44 = vadd.s32 127, %v3062_v36  ;;  %v7331_v0 = vshrl.u32 %v1487_v50, 30  ;;  %v1342_v7 = vshll.u32 %v9369_v5, %v1336_v9  ;;  %v1345_v43 = vshll.u32 %v9359_v30, %v1336_v9 }
 0x22f   : > { %v1340_v2 = vshrl.u32 %v9369_v5, %v1337_v26  ;;  %v1343_v47 = vshrl.u32 %v9359_v30, %v1337_v26  ;;  %v1346_v33 = vshrl.u32 %v9360_v27, %v1337_v26  ;;  %v1348_v63 = vshll.u32 %v9360_v27, %v1336_v9 }
 0x230   : > { %9467 = vst [vmem:[#allocation65_spill] sm:$0xff] %v7331_v0  ;;  %v3064_v60 = vshll.u32 %v3063_v44, 23  ;;  %v1489_v13 = vshll.u32 %v7331_v0, 30  ;;  %v1349_v28 = vshrl.u32 %v9361_v48, %v1337_v26  ;;  %v9253_v36 = vand.u32 2147483647, %v7323_v11 }
 0x231   : > { %v1341_v45 = vor.u32 %v1340_v2, %v1339_v32  ;;  %v1344_v8 = vor.u32 %v1343_v47, %v1342_v7  ;;  %v1347_v56 = vor.u32 %v1346_v33, %v1345_v43  ;;  %v9468_v50 = vand.u32 2147483647, %v6923_v1 }
 0x232   : > { %v9469_v61 = vmov 0  ;;  %v3059_v4 = vshll.u32 %v7269_v46, %v3057_v53  ;;  %v3060_v44 = vshrl.u32 %v3042_v40, %v3058_v6  ;;  %v7350_v51 = vsub.s32 %v1486_v10, %v1489_v13  ;;  %v7352_v23 = vpop.eup %5287 }
 0x233   : > { %vm7345_vm3 = vcmp.le.f32.partialorder %v9468_v50, 0.7853982  ;;  %v1350_v0 = vor.u32 %v1349_v28, %v1348_v63  ;;  %v3065_v3 = vor.u32 4788187, %v3064_v60  ;;  %v1338_v32 = vshrl.u32 %v9364_v25, %v1337_v26 }
 0x234   : > { %v9470_v61 = vsel %vm7345_vm3, 4294967295, %v9469_v61  ;;  %v1351_v7 = vshll.u32 %v9361_v48, %v1336_v9  ;;  %v1352_v2 = vshrl.u32 %v9362_v31, %v1337_v26  ;;  %v1492_v47 = vsub.s32 0, %v7350_v51 }
 0x235   : > { %9471 = vst [vmem:[#allocation66_spill] sm:$0xff] %v9470_v61  ;;  %vm1354_vm7 = vcmp.lt.s32.totalorder %v7327_v12, 1  ;;  %vm1356_vm5 = vcmp.lt.s32.totalorder %v7327_v12, 3  ;;  %vm1357_vm14 = vcmp.lt.s32.totalorder %v7327_v12, 4  ;;  %vm9261_vm9 = vcmp.lt.s32.totalorder %v6978_v17, 0 }
 0x236   : > { %v1353_v46 = vor.u32 %v1352_v2, %v1351_v7  ;;  %v1359_v10 = vsel %vm1357_vm14, %v1347_v56, 2102212464  ;;  %v1362_v40 = vsel %vm1354_vm7, %v1341_v45, %v1344_v8  ;;  %v1363_v53 = vsel %vm1357_vm14, %v1350_v0, 920167782 }
 0x237   : > { %v3061_v6 = vor.u32 %v3060_v44, %v3059_v4  ;;  %v4742_v9 = vmin.u32 %v1492_v47, %v7350_v51  ;;  %vm1355_vm0 = vcmp.lt.s32.totalorder %v7327_v12, 2  ;;  %v1364_v26 = vsel %vm1356_vm5, %v1347_v56, %v1363_v53 }
 0x238   : > { %v3066_v43 = vand.u32 2147483647, %v3065_v3  ;;  %v1365_v33 = vsel %vm1355_vm0, %v1362_v40, %v1364_v26  ;;  %v1366_v60 = vsel %vm1354_vm7, %v1344_v8, %v1347_v56  ;;  %v1367_v13 = vsel %vm1357_vm14, %v1353_v46, 1326507024 }
 0x239   : > { %v1494_v63 = vclz %v4742_v9  ;;  %v1358_v28 = vsel %vm1354_vm7, %v1338_v32, %v1341_v45  ;;  %v1360_v4 = vsel %vm1356_vm5, %v1344_v8, %v1359_v10  ;;  %v1368_v50 = vsel %vm1356_vm5, %v1350_v0, %v1367_v13 }
 0x23a   : > { %v1369_v3 = vsel %vm1355_vm0, %v1366_v60, %v1368_v50  ;;  %v7381_v44 = vmul.u32.u64.low %v7329_v20, %v1365_v33  ;;  %v7382_v7 = vmul.u32.u64.high %v7329_v20, %v1365_v33, %v7381_v44  ;;  %v2885_v56 = vand.u32 2139095040, %v7323_v11 }
 0x23b   : > { %v9472_v2 = vand.u32 2147483647, %v6978_v17  ;;  %v9473_v45 = vmov 0  ;;  %v3068_v8 = vcvt.s32.f32 %v3061_v6  ;;  %v4743_v32 = vadd.s32 4294967294, %v1494_v63 }
 0x23c   : > { %v7393_v0 = vmul.u32.u64.low %v7329_v20, %v1369_v3  ;;  %v7394_v47 = vmul.u32.u64.high %v7329_v20, %v1369_v3, %v7393_v0  ;;  %5289 = vcosq.f32 %v7303_v22  ;;  %v1618_v46 = vsel %vm7345_vm3, %v6923_v1, %v7312_v18 }
 0x23d   : > { %vm7388_vm14 = vcmp.le.f32.partialorder %v9472_v2, 0.7853982  ;;  %v3174_v10 = vxor.u32 2147483648, %v7319_v35  ;;  %v2886_v40 = vshrl.u32 %v2885_v56, 23  ;;  %v3069_v53 = vmul.f32 %v3068_v8, %v3066_v43 }
 0x23e   : > { %v9474_v45 = vsel %vm7388_vm14, 4294967295, %v9473_v45  ;;  %vm4744_vm7 = vcmp.lt.s32.totalorder %v4743_v32, 0  ;;  %v1361_v6 = vsel %vm1355_vm0, %v1358_v28, %v1360_v4  ;;  %v2889_v9 = vand.u32 8388607, %v9253_v36 }
 0x23f   : > { %9475 = vst [vmem:[#allocation67_spill] sm:$0xff] %v9474_v45  ;;  %5291 = vsinq.f32 %v7303_v22  ;;  %v1497_v26 = vsel %vm4744_vm7, 0, %v4743_v32  ;;  %v1380_v33 = vadd.s32 1, %v7382_v7  ;;  %v4797_v60 = vadd.s32 4294967169, %v2886_v40 }
 0x240   : > { %5293 = vcosq.f32 %v1618_v46  ;;  %vm9262_vm5 = vcmp.lt.s32.totalorder %v7003_v19, 0  ;;  %v1502_v18 = vsub.s32 4294967266, %v1497_v26  ;;  %v2781_v13 = vand.u32 2139095040, %v7325_v57 }
 0x241   : > { %v3175_v12 = vsel %vm9261_vm9, %v3174_v10, %v7319_v35  ;;  %v1377_v43 = vmul.u32 %v7329_v20, %v1361_v6  ;;  %vm1379_vm0 = vc.u32 %v7394_v47, %v7381_v44  ;;  %v2892_v22 = vadd.s32 1, %v4797_v60 }
 0x242   : > { %v3070_v63 = vxor.u32 2147483648, %v3069_v53  ;;  %v1498_v28 = vsub.s32 32, %v1497_v26  ;;  %v1381_v4 = vsel %vm1379_vm0, %v1380_v33, %v7382_v7  ;;  %v2890_v50 = vor.u32 8388608, %v2889_v9 }
 0x243   : > { %v1503_v3 = vadd.s32 127, %v1502_v18  ;;  %v1382_v56 = vadd.s32 %v1381_v4, %v1377_v43  ;;  %vm2893_vm7 = vcmp.gt.s32.totalorder %v2892_v22, 0  ;;  %v9252_v2 = vand.u32 2147483647, %v7325_v57 }
 0x244   : > { %5295 = vsinq.f32 %v1618_v46  ;;  %v1482_v35 = vadd.s32 %v7276_v58, %v7291_v55  ;;  %v2894_v8 = vsel %vm2893_vm7, %v2892_v22, 0  ;;  %v2782_v20 = vshrl.u32 %v2781_v13, 23 }
 0x245   : > { %v7423_v32 = vsel %vm7388_vm14, %v6978_v17, %v3175_v12  ;;  %v1383_v0 = vadd.s32 536870912, %v1382_v56  ;;  %v447_v7 = vmul.f32 %v7306_v29, %v7283_v16  ;;  %v2896_v10 = vand.u32 31, %v2894_v8 }
 0x246   : > { %v7429_v40 = vsel %vm9262_vm5, %v3070_v63, %v3069_v53  ;;  %v1499_v46 = vshll.u32 %v7350_v51, %v1497_v26  ;;  %v1500_v6 = vshrl.u32 %v1482_v35, %v1498_v28  ;;  %v7432_v58 = vshll.u32 %v2890_v50, 8 }
 0x247   : > { %v1504_v55 = vshll.u32 %v1503_v3, 23  ;;  %v7434_v9 = vshrl.u32 %v1383_v0, 30  ;;  %v2897_v33 = vsub.s32 32, %v2896_v10  ;;  %v7438_v60 = vand.u32 8388607, %v9252_v2 }
 0x248   : > { %v2895_v18 = vshrl.u32 %v2894_v8, 5  ;;  %v2899_v16 = vshll.u32 %v9364_v25, %v2896_v10  ;;  %v2902_v13 = vshll.u32 %v9369_v5, %v2896_v10  ;;  %v4793_v53 = vadd.s32 4294967169, %v2782_v20 }
 0x249   : > { %9476 = vst [vmem:[#allocation68_spill] sm:$0xff] %v7434_v9  ;;  %v1385_v12 = vshll.u32 %v7434_v9, 30  ;;  %v2900_v51 = vshrl.u32 %v9369_v5, %v2897_v33  ;;  %v2903_v26 = vshrl.u32 %v9359_v30, %v2897_v33  ;;  %v2905_v43 = vshll.u32 %v9359_v30, %v2896_v10  ;;  %v7446_v22 = vpop.eup %5289 }
 0x24a   : > { %9477 = vst [vmem:[#allocation69_spill] sm:$0xff] %v7446_v22  ;;  %v2906_v63 = vshrl.u32 %v9360_v27, %v2897_v33  ;;  %v2908_v28 = vshll.u32 %v9360_v27, %v2896_v10  ;;  %v2909_v4 = vshrl.u32 %v9361_v48, %v2897_v33  ;;  %v2912_v50 = vshrl.u32 %v9362_v31, %v2897_v33 }
 0x24b   : > { %v7452_v3 = vsub.s32 %v1382_v56, %v1385_v12  ;;  %v2901_v35 = vor.u32 %v2900_v51, %v2899_v16  ;;  %v2904_v8 = vor.u32 %v2903_v26, %v2902_v13  ;;  %v2911_v20 = vshll.u32 %v9361_v48, %v2896_v10  ;;  %v534_v26 = vpop.permute.xlu1 %533 }
 0x24c   : > { %v7455_v0 = vpop.eup %5291  ;;  %v1501_v2 = vor.u32 %v1500_v6, %v1499_v46  ;;  %v2907_v36 = vor.u32 %v2906_v63, %v2905_v43  ;;  %v2910_v9 = vor.u32 %v2909_v4, %v2908_v28  ;;  %v2786_v45 = vor.u32 8388608, %v7438_v60 }
 0x24d   : > { %9478 = vst [vmem:[#allocation70_spill] sm:$0xff] %v7455_v0  ;;  %v7458_v17 = vpop.eup %5293  ;;  %v9480_v22 = vand.u32 2147483647, %v7003_v19  ;;  %v9481_v61 = vmov 0  ;;  %v1388_v56 = vsub.s32 0, %v7452_v3  ;;  %v2913_v16 = vor.u32 %v2912_v50, %v2911_v20 }
 0x24e   : > { %9479 = vst [vmem:[#allocation71_spill] sm:$0xff] %v7458_v17  ;;  %vm2914_vm7 = vcmp.lt.s32.totalorder %v2895_v18, 1  ;;  %vm2917_vm9 = vcmp.lt.s32.totalorder %v2895_v18, 4  ;;  %v1505_v10 = vor.u32 4788187, %v1504_v55  ;;  %v2898_v46 = vshrl.u32 %v9364_v25, %v2897_v33 }
 0x24f   : > { %vm7462_vm0 = vcmp.le.f32.partialorder %v9480_v22, 0.7853982  ;;  %v2919_v6 = vsel %vm2917_vm9, %v2907_v36, 2102212464  ;;  %v2922_v13 = vsel %vm2914_vm7, %v2901_v35, %v2904_v8  ;;  %v4738_v60 = vmin.u32 %v1388_v56, %v7452_v3 }
 0x250   : > { %v9482_v61 = vsel %vm7462_vm0, 4294967295, %v9481_v61  ;;  %vm2916_vm5 = vcmp.lt.s32.totalorder %v2895_v18, 3  ;;  %v2923_v12 = vsel %vm2917_vm9, %v2910_v9, 920167782  ;;  %v2788_v51 = vadd.s32 1, %v4793_v53 }
 0x251   : > { %9483 = vst [vmem:[#allocation72_spill] sm:$0xff] %v9482_v61  ;;  %vm2915_vm14 = vcmp.lt.s32.totalorder %v2895_v18, 2  ;;  %v2918_v43 = vsel %vm2914_vm7, %v2898_v46, %v2901_v35  ;;  %v2924_v22 = vsel %vm2916_vm5, %v2907_v36, %v2923_v12  ;;  %v2926_v63 = vsel %vm2914_vm7, %v2904_v8, %v2907_v36  ;;  %v7471_v28 = vpop.eup %5295 }
 0x252   : > { %v1390_v4 = vclz %v4738_v60  ;;  %v2920_v55 = vsel %vm2916_vm5, %v2904_v8, %v2919_v6  ;;  %v2925_v33 = vsel %vm2915_vm14, %v2922_v13, %v2924_v22  ;;  %v2927_v50 = vsel %vm2917_vm9, %v2913_v16, 1326507024 }
 0x253   : > { %v2928_v20 = vsel %vm2916_vm5, %v2910_v9, %v2927_v50  ;;  %v7476_v56 = vmul.u32.u64.low %v7432_v58, %v2925_v33  ;;  %v7477_v0 = vmul.u32.u64.high %v7432_v58, %v2925_v33, %v7476_v56  ;;  %v7480_v53 = vadd.f32 %v534_v26, %v447_v7 }
 0x254   : > { %v1506_v17 = vand.u32 2147483647, %v1505_v10  ;;  %v4739_v35 = vadd.s32 4294967294, %v1390_v4  ;;  %v2929_v36 = vsel %vm2915_vm14, %v2926_v63, %v2928_v20  ;;  %vm2789_vm7 = vcmp.gt.s32.totalorder %v2788_v51, 0 }
 0x255   : > { %9484 = vst [vmem:[#allocation73_spill] sm:$0xff] %v7480_v53  ;;  %v2921_v46 = vsel %vm2915_vm14, %v2918_v43, %v2920_v55  ;;  %v7485_v8 = vmul.u32.u64.low %v7432_v58, %v2929_v36  ;;  %v7486_v6 = vmul.u32.u64.high %v7432_v58, %v2929_v36, %v7485_v8  ;;  %v2790_v16 = vsel %vm2789_vm7, %v2788_v51, 0 }
 0x256   : > { %5297 = vcosq.f32 %v7423_v32  ;;  %v1508_v9 = vcvt.s32.f32 %v1501_v2  ;;  %vm4740_vm9 = vcmp.lt.s32.totalorder %v4739_v35, 0  ;;  %v2792_v13 = vand.u32 31, %v2790_v16 }
 0x257   : > { %v7493_v7 = vsel %vm7462_vm0, %v7003_v19, %v7429_v40  ;;  %v1378_v18 = vadd.s32 %v7381_v44, %v7394_v47  ;;  %v1393_v10 = vsel %vm4740_vm9, 0, %v4739_v35  ;;  %v2940_v60 = vadd.s32 1, %v7477_v0 }
 0x258   : > { %v7498_v12 = vmul.f32 %v1508_v9, %v1506_v17  ;;  %v1398_v51 = vsub.s32 4294967266, %v1393_v10  ;;  %v2937_v26 = vmul.u32 %v7432_v58, %v2921_v46  ;;  %v2793_v2 = vsub.s32 32, %v2792_v13 }
 0x259   : > { %vm2939_vm14 = vc.u32 %v7486_v6, %v7476_v56  ;;  %v2791_v43 = vshrl.u32 %v2790_v16, 5  ;;  %v7503_v22 = vshll.u32 %v2786_v45, 8  ;;  %v1394_v63 = vsub.s32 32, %v1393_v10 }
 0x25a   : > { %v1399_v4 = vadd.s32 127, %v1398_v51  ;;  %v2941_v44 = vsel %vm2939_vm14, %v2940_v60, %v7477_v0  ;;  %v1221_v47 = vand.u32 2139095040, %v7480_v53  ;;  %v2795_v55 = vshll.u32 %v9364_v25, %v2792_v13 }
 0x25b   : > { %v2942_v17 = vadd.s32 %v2941_v44, %v2937_v26  ;;  %v2796_v58 = vshrl.u32 %v9369_v5, %v2793_v2  ;;  %v2799_v33 = vshrl.u32 %v9359_v30, %v2793_v2  ;;  %v2798_v20 = vshll.u32 %v9369_v5, %v2792_v13 }
 0x25c   : > { %v1400_v50 = vshll.u32 %v1399_v4, 23  ;;  %v2801_v45 = vshll.u32 %v9359_v30, %v2792_v13  ;;  %v2802_v35 = vshrl.u32 %v9360_v27, %v2793_v2  ;;  %v1395_v36 = vshll.u32 %v7452_v3, %v1393_v10 }
 0x25d   : > { %v2943_v46 = vadd.s32 536870912, %v2942_v17  ;;  %v2804_v0 = vshll.u32 %v9360_v27, %v2792_v13  ;;  %v2805_v8 = vshrl.u32 %v9361_v48, %v2793_v2  ;;  %v1396_v16 = vshrl.u32 %v1378_v18, %v1394_v63 }
 0x25e   : > { %v2797_v9 = vor.u32 %v2796_v58, %v2795_v55  ;;  %v2800_v60 = vor.u32 %v2799_v33, %v2798_v20  ;;  %v2803_v51 = vor.u32 %v2802_v35, %v2801_v45  ;;  %v2807_v44 = vshll.u32 %v9361_v48, %v2792_v13 }
 0x25f   : > { %v7517_v26 = vshrl.u32 %v2943_v46, 30  ;;  %v2806_v4 = vor.u32 %v2805_v8, %v2804_v0  ;;  %v2808_v40 = vshrl.u32 %v9362_v31, %v2793_v2  ;;  %v1401_v61 = vor.u32 4788187, %v1400_v50 }
 0x260   : > { %v2794_v19 = vshrl.u32 %v9364_v25, %v2793_v2  ;;  %vm2810_vm5 = vcmp.lt.s32.totalorder %v2791_v43, 1  ;;  %vm2813_vm7 = vcmp.lt.s32.totalorder %v2791_v43, 4  ;;  %vm2811_vm9 = vcmp.lt.s32.totalorder %v2791_v43, 2 }
 0x261   : > { %9485 = vst [vmem:[#allocation74_spill] sm:$0xff] %v7517_v26  ;;  %v2945_v3 = vshll.u32 %v7517_v26, 30  ;;  %v2809_v10 = vor.u32 %v2808_v40, %v2807_v44  ;;  %v2815_v18 = vsel %vm2813_vm7, %v2803_v51, 2102212464  ;;  %vm2812_vm14 = vcmp.lt.s32.totalorder %v2791_v43, 3 }
 0x262   : > { %v2814_v63 = vsel %vm2810_vm5, %v2794_v19, %v2797_v9  ;;  %v2818_v55 = vsel %vm2810_vm5, %v2797_v9, %v2800_v60  ;;  %v2819_v58 = vsel %vm2813_vm7, %v2806_v4, 920167782  ;;  %v2816_v50 = vsel %vm2812_vm14, %v2800_v60, %v2815_v18 }
 0x263   : > { %v7525_v33 = vpop.eup %5297  ;;  %v7527_v13 = vsub.s32 %v2942_v17, %v2945_v3  ;;  %v2820_v20 = vsel %vm2812_vm14, %v2803_v51, %v2819_v58  ;;  %v2822_v2 = vsel %vm2810_vm5, %v2800_v60, %v2803_v51  ;;  %v1510_v45 = vxor.u32 2147483648, %v7498_v12 }
 0x264   : > { %9486 = vst [vmem:[#allocation75_spill] sm:$0xff] %v7525_v33  ;;  %v1397_v35 = vor.u32 %v1396_v16, %v1395_v36  ;;  %v2821_v40 = vsel %vm2811_vm9, %v2818_v55, %v2820_v20  ;;  %v2823_v46 = vsel %vm2813_vm7, %v2809_v10, 1326507024  ;;  %v1402_v17 = vand.u32 2147483647, %v1401_v61  ;;  %v529_v55 = vpop.permute.xlu0 %528 }
 0x265   : > { %v2948_v0 = vsub.s32 0, %v7527_v13  ;;  %v2824_v19 = vsel %vm2812_vm14, %v2806_v4, %v2823_v46  ;;  %v7534_v8 = vmul.u32.u64.low %v7503_v22, %v2821_v40  ;;  %v7535_v9 = vmul.u32.u64.high %v7503_v22, %v2821_v40, %v7534_v8 }
 0x266   : > { %v2817_v44 = vsel %vm2811_vm9, %v2814_v63, %v2816_v50  ;;  %v2825_v60 = vsel %vm2811_vm9, %v2822_v2, %v2824_v19  ;;  %v1222_v51 = vshrl.u32 %v1221_v47, 23  ;;  %v9487_v10 = vand.u32 2147483647, %v7480_v53 }
 0x267   : > { %v4798_v36 = vmin.u32 %v2948_v0, %v7527_v13  ;;  %v7542_v16 = vmul.u32.u64.low %v7503_v22, %v2825_v60  ;;  %v7543_v3 = vmul.u32.u64.high %v7503_v22, %v2825_v60, %v7542_v16  ;;  %5299 = vsinq.f32 %v7423_v32 }
 0x268   : > { %v1225_v4 = vand.u32 8388607, %v9487_v10  ;;  %vm9269_vm5 = vcmp.lt.s32.totalorder %v7098_v37, 0  ;;  %v1404_v18 = vcvt.s32.f32 %v1397_v35  ;;  %v4733_v61 = vadd.s32 4294967169, %v1222_v51 }
 0x269   : > { %5301 = vcosq.f32 %v7493_v7  ;;  %v446_v43 = vmul.f32 %v7306_v29, %v7285_v54  ;;  %v2950_v47 = vclz %v4798_v36  ;;  %v2836_v63 = vadd.s32 1, %v7535_v9 }
 0x26a   : > { %v1511_v58 = vsel %vm9269_vm5, %v1510_v45, %v7498_v12  ;;  %v7556_v50 = vmul.f32 %v1404_v18, %v1402_v17  ;;  %v2833_v32 = vmul.u32 %v7503_v22, %v2817_v44  ;;  %v1228_v20 = vadd.s32 1, %v4733_v61 }
 0x26b   : > { %v4799_v2 = vadd.s32 4294967294, %v2950_v47  ;;  %vm2835_vm7 = vc.u32 %v7543_v3, %v7534_v8  ;;  %v1226_v35 = vor.u32 8388608, %v1225_v4  ;;  %v7561_v40 = vadd.f32 %v529_v55, %v446_v43 }
 0x26c   : > { %5303 = vsinq.f32 %v7493_v7  ;;  %v9489_v54 = vand.u32 2147483647, %v7098_v37  ;;  %v9490_v46 = vmov 0  ;;  %v2837_v12 = vsel %vm2835_vm7, %v2836_v63, %v7535_v9 }
 0x26d   : > { %9488 = vst [vmem:[#allocation76_spill] sm:$0xff] %v7561_v40  ;;  %vm1229_vm14 = vcmp.gt.s32.totalorder %v1228_v20, 0  ;;  %vm4800_vm5 = vcmp.lt.s32.totalorder %v4799_v2, 0  ;;  %v2838_v45 = vadd.s32 %v2837_v12, %v2833_v32  ;;  %v2938_v7 = vadd.s32 %v7476_v56, %v7486_v6 }
 0x26e   : > { %vm7566_vm9 = vcmp.le.f32.partialorder %v9489_v54, 0.7853982  ;;  %v1230_v0 = vsel %vm1229_vm14, %v1228_v20, 0  ;;  %v2953_v17 = vsel %vm4800_vm5, 0, %v4799_v2  ;;  %v7579_v36 = vshll.u32 %v1226_v35, 8 }
 0x26f   : > { %v9491_v46 = vsel %vm7566_vm9, 4294967295, %v9490_v46  ;;  %v7574_v22 = vsel %vm7566_vm9, %v7098_v37, %v1511_v58  ;;  %v1232_v44 = vand.u32 31, %v1230_v0  ;;  %v2958_v60 = vsub.s32 4294967266, %v2953_v17 }
 0x270   : > { %9492 = vst [vmem:[#allocation77_spill] sm:$0xff] %v9491_v46  ;;  %v2839_v51 = vadd.s32 536870912, %v2838_v45  ;;  %v2954_v16 = vsub.s32 32, %v2953_v17  ;;  %v7582_v10 = vshrl.u32 %v1230_v0, 5  ;;  %v1117_v18 = vand.u32 2139095040, %v7561_v40 }
 0x271   : > { %v1233_v4 = vsub.s32 32, %v1232_v44  ;;  %v2959_v61 = vadd.s32 127, %v2958_v60  ;;  %v1235_v43 = vshll.u32 %v9364_v25, %v1232_v44  ;;  %v1238_v56 = vshll.u32 %v9369_v5, %v1232_v44 }
 0x272   : > { %v7585_v55 = vshrl.u32 %v2839_v51, 30  ;;  %v1241_v63 = vshll.u32 %v9359_v30, %v1232_v44  ;;  %v1244_v2 = vshll.u32 %v9360_v27, %v1232_v44  ;;  %v1118_v60 = vshrl.u32 %v1117_v18, 23 }
 0x273   : > { %v1236_v6 = vshrl.u32 %v9369_v5, %v1233_v4  ;;  %v1239_v47 = vshrl.u32 %v9359_v30, %v1233_v4  ;;  %v1242_v58 = vshrl.u32 %v9360_v27, %v1233_v4  ;;  %v2960_v32 = vshll.u32 %v2959_v61, 23 }
 0x274   : > { %9493 = vst [vmem:[#allocation78_spill] sm:$0xff] %v7585_v55  ;;  %v2841_v20 = vshll.u32 %v7585_v55, 30  ;;  %v1245_v35 = vshrl.u32 %v9361_v48, %v1233_v4  ;;  %v7596_v51 = vpop.eup %5299  ;;  %v2955_v19 = vshll.u32 %v7527_v13, %v2953_v17  ;;  %v2956_v9 = vshrl.u32 %v2938_v7, %v2954_v16 }
 0x275   : > { %v1237_v54 = vor.u32 %v1236_v6, %v1235_v43  ;;  %v1240_v12 = vor.u32 %v1239_v47, %v1238_v56  ;;  %v1243_v0 = vor.u32 %v1242_v58, %v1241_v63  ;;  %9494 = vst [vmem:[#allocation79_spill] sm:$0xff] %v7596_v51  ;;  %v2961_v61 = vor.u32 4788187, %v2960_v32 }
 0x276   : > { %v7599_v26 = vsub.s32 %v2838_v45, %v2841_v20  ;;  %v1246_v46 = vor.u32 %v1245_v35, %v1244_v2  ;;  %v7601_v37 = vpop.eup %5301  ;;  %v1234_v55 = vshrl.u32 %v9364_v25, %v1233_v4  ;;  %v1247_v33 = vshll.u32 %v9361_v48, %v1232_v44 }
 0x277   : > { %v1248_v43 = vshrl.u32 %v9362_v31, %v1233_v4  ;;  %vm1250_vm5 = vcmp.lt.s32.totalorder %v7582_v10, 1  ;;  %vm1253_vm14 = vcmp.lt.s32.totalorder %v7582_v10, 4  ;;  %v9495_v44 = vand.u32 2147483647, %v7178_v42 }
 0x278   : > { %v2844_v56 = vsub.s32 0, %v7599_v26  ;;  %v1255_v45 = vsel %vm1253_vm14, %v1243_v0, 2102212464  ;;  %v1258_v7 = vsel %vm1250_vm5, %v1237_v54, %v1240_v12  ;;  %v1259_v17 = vsel %vm1253_vm14, %v1246_v46, 920167782 }
 0x279   : > { %v1249_v13 = vor.u32 %v1248_v43, %v1247_v33  ;;  %v7612_v16 = vpop.eup %5303  ;;  %vm7616_vm9 = vcmp.le.f32.partialorder %v9495_v44, 0.7853982  ;;  %v9496_v4 = vmov 0  ;;  %v2957_v18 = vor.u32 %v2956_v9, %v2955_v19 }
 0x27a   : > { %v9497_v4 = vsel %vm7616_vm9, 4294967295, %v9496_v4  ;;  %v4794_v6 = vmin.u32 %v2844_v56, %v7599_v26  ;;  %vm1251_vm7 = vcmp.lt.s32.totalorder %v7582_v10, 2  ;;  %vm9499_vm0 = vcmp.lt.s32.totalorder %v7582_v10, 3 }
 0x27b   : > { %9498 = vst [vmem:[#allocation80_spill] sm:$0xff] %v9497_v4  ;;  %v1260_v33 = vsel %vm9499_vm0, %v1243_v0, %v1259_v17  ;;  %v2962_v47 = vand.u32 2147483647, %v2961_v61  ;;  %v1262_v58 = vsel %vm1250_vm5, %v1240_v12, %v1243_v0  ;;  %v1263_v32 = vsel %vm1253_vm14, %v1249_v13, 1326507024  ;;  %vm9500_vm3 = vmmov %vm9499_vm0 }
 0x27c   : > { %v1261_v63 = vsel %vm1251_vm7, %v1258_v7, %v1260_v33  ;;  %v2846_v20 = vclz %v4794_v6  ;;  %v1254_v2 = vsel %vm1250_vm5, %v1234_v55, %v1237_v54  ;;  %v1256_v19 = vsel %vm9500_vm3, %v1240_v12, %v1255_v45  ;;  %vm9501_vm1 = vmmov %vm9499_vm0 }
 0x27d   : > { %v1264_v9 = vsel %vm9501_vm1, %v1246_v46, %v1263_v32  ;;  %v7637_v61 = vmul.u32.u64.low %v7579_v36, %v1261_v63  ;;  %v7638_v43 = vmul.u32.u64.high %v7579_v36, %v1261_v63, %v7637_v61  ;;  %v4729_v0 = vadd.s32 4294967169, %v1118_v60 }
 0x27e   : > { %v1265_v35 = vsel %vm1251_vm7, %v1262_v58, %v1264_v9  ;;  %v4795_v56 = vadd.s32 4294967294, %v2846_v20  ;;  %v9502_v55 = vand.u32 2147483647, %v7561_v40  ;;  %5305 = vcosq.f32 %v7574_v22 }
 0x27f   : > { %v7642_v13 = vmul.u32.u64.low %v7579_v36, %v1265_v35  ;;  %v7643_v7 = vmul.u32.u64.high %v7579_v36, %v1265_v35, %v7642_v13  ;;  %vm9286_vm1 = vcmp.lt.s32.totalorder %v7178_v42, 0  ;;  %v2964_v46 = vcvt.s32.f32 %v2957_v18 }
 0x280   : > { %v1121_v54 = vand.u32 8388607, %v9502_v55  ;;  %v1124_v12 = vadd.s32 1, %v4729_v0  ;;  %5307 = vsinq.f32 %v7574_v22  ;;  %v9503_v45 = vxor.u32 2147483648, %v7556_v50 }
 0x281   : > { %vm4796_vm3 = vcmp.lt.s32.totalorder %v4795_v56, 0  ;;  %v1257_v17 = vsel %vm1251_vm7, %v1254_v2, %v1256_v19  ;;  %v7657_v44 = vmul.f32 %v2964_v46, %v2962_v47  ;;  %v1276_v33 = vadd.s32 1, %v7638_v43 }
 0x282   : > { %v1407_v60 = vsel %vm9286_vm1, %v9503_v45, %v7556_v50  ;;  %v2849_v6 = vsel %vm4796_vm3, 0, %v4795_v56  ;;  %vm1125_vm0 = vcmp.gt.s32.totalorder %v1124_v12, 0  ;;  %v2834_v18 = vadd.s32 %v7534_v8, %v7543_v3 }
 0x283   : > { %v2850_v22 = vsub.s32 32, %v2849_v6  ;;  %v2854_v63 = vsub.s32 4294967266, %v2849_v6  ;;  %v1122_v58 = vor.u32 8388608, %v1121_v54  ;;  %v7665_v50 = vsel %vm7616_vm9, %v7178_v42, %v1407_v60 }
 0x284   : > { %v1273_v10 = vmul.u32 %v7579_v36, %v1257_v17  ;;  %vm1275_vm5 = vc.u32 %v7643_v7, %v7637_v61  ;;  %v1126_v47 = vsel %vm1125_vm0, %v1124_v12, 0  ;;  %v2966_v8 = vxor.u32 2147483648, %v7657_v44 }
 0x285   : > { %v2852_v32 = vshrl.u32 %v2834_v18, %v2850_v22  ;;  %v2855_v20 = vadd.s32 127, %v2854_v63  ;;  %v1277_v2 = vsel %vm1275_vm5, %v1276_v33, %v7638_v43  ;;  %v7671_v19 = vshrl.u32 %v1126_v47, 5 }
 0x286   : > { %v2851_v3 = vshll.u32 %v7599_v26, %v2849_v6  ;;  %v1278_v9 = vadd.s32 %v1277_v2, %v1273_v10  ;;  %v1128_v35 = vand.u32 31, %v1126_v47  ;;  %v7675_v56 = vshll.u32 %v1122_v58, 8 }
 0x287   : > { %v2856_v0 = vshll.u32 %v2855_v20, 23  ;;  %v9504_v36 = vand.u32 2147483647, %v5770_v14  ;;  %v3904_v55 = vsub.s32 4, %v5934_v41  ;;  %vm1146_vm14 = vcmp.lt.s32.totalorder %v7671_v19, 1 }
 0x288   : > { %v2853_v43 = vor.u32 %v2852_v32, %v2851_v3  ;;  %v1279_v54 = vadd.s32 536870912, %v1278_v9  ;;  %v1129_v46 = vsub.s32 32, %v1128_v35  ;;  %v1131_v45 = vshll.u32 %v9364_v25, %v1128_v35 }
 0x289   : > { %vm7679_vm7 = vcmp.le.f32.partialorder %v9504_v36, 0.7853982  ;;  %v2857_v12 = vor.u32 4788187, %v2856_v0  ;;  %v1134_v60 = vshll.u32 %v9369_v5, %v1128_v35  ;;  %v1137_v18 = vshll.u32 %v9359_v30, %v1128_v35 }
 0x28a   : > { %v3906_v26 = vsel %vm7679_vm7, %v5770_v14, %v6249_v59  ;;  %v7692_v17 = vshrl.u32 %v1279_v54, 30  ;;  %v1132_v6 = vshrl.u32 %v9369_v5, %v1129_v46  ;;  %v1135_v33 = vshrl.u32 %v9359_v30, %v1129_v46 }
 0x28b   : > { %v1138_v22 = vshrl.u32 %v9360_v27, %v1129_v46  ;;  %v1140_v59 = vshll.u32 %v9360_v27, %v1128_v35  ;;  %v1141_v63 = vshrl.u32 %v9361_v48, %v1129_v46  ;;  %v1143_v58 = vshll.u32 %v9361_v48, %v1128_v35  ;;  %v7703_v2 = vpop.eup %5305 }
 0x28c   : > { %9507 = vst [vmem:[#allocation81_spill] sm:$0xff] %v7692_v17  ;;  %v1281_v10 = vshll.u32 %v7692_v17, 30  ;;  %v1133_v47 = vor.u32 %v1132_v6, %v1131_v45  ;;  %v1136_v32 = vor.u32 %v1135_v33, %v1134_v60  ;;  %v1144_v20 = vshrl.u32 %v9362_v31, %v1129_v46 }
 0x28d   : > { %v2858_v3 = vand.u32 2147483647, %v2857_v12  ;;  %v1139_v0 = vor.u32 %v1138_v22, %v1137_v18  ;;  %v1142_v36 = vor.u32 %v1141_v63, %v1140_v59  ;;  %vm1147_vm0 = vcmp.lt.s32.totalorder %v7671_v19, 2  ;;  %v7706_v54 = vpop.eup %5307 }
 0x28e   : > { %v2860_v4 = vcvt.s32.f32 %v2853_v43  ;;  %v7708_v42 = vsub.s32 %v1278_v9, %v1281_v10  ;;  %v1145_v51 = vor.u32 %v1144_v20, %v1143_v58  ;;  %vm1149_vm5 = vcmp.lt.s32.totalorder %v7671_v19, 4 }
 0x28f   : > { %vm1148_vm1 = vcmp.lt.s32.totalorder %v7671_v19, 3  ;;  %v1151_v35 = vsel %vm1149_vm5, %v1139_v0, 2102212464  ;;  %v1154_v45 = vsel %vm1146_vm14, %v1133_v47, %v1136_v32  ;;  %v1155_v60 = vsel %vm1149_vm5, %v1142_v36, 920167782 }
 0x290   : > { %v1284_v12 = vsub.s32 0, %v7708_v42  ;;  %v1130_v6 = vshrl.u32 %v9364_v25, %v1129_v46  ;;  %v1156_v33 = vsel %vm1148_vm1, %v1139_v0, %v1155_v60  ;;  %v1158_v9 = vsel %vm1146_vm14, %v1136_v32, %v1139_v0 }
 0x291   : > { %v2861_v43 = vmul.f32 %v2860_v4, %v2858_v3  ;;  %v1157_v18 = vsel %vm1147_vm0, %v1154_v45, %v1156_v33  ;;  %v1159_v22 = vsel %vm1149_vm5, %v1145_v51, 1326507024  ;;  %5309 = vcosq.f32 %v3906_v26 }
 0x292   : > { %v4734_v59 = vmin.u32 %v1284_v12, %v7708_v42  ;;  %v1150_v63 = vsel %vm1146_vm14, %v1130_v6, %v1133_v47  ;;  %v1152_v46 = vsel %vm1148_vm1, %v1136_v32, %v1151_v35  ;;  %v1160_v58 = vsel %vm1148_vm1, %v1142_v36, %v1159_v22 }
 0x293   : > { %vm9508_vm3 = vcmp.lt.s32.totalorder %v7323_v11, 0  ;;  %v1161_v10 = vsel %vm1147_vm0, %v1158_v9, %v1160_v58  ;;  %v7736_v51 = vmul.u32.u64.low %v7675_v56, %v1157_v18  ;;  %v7737_v20 = vmul.u32.u64.high %v7675_v56, %v1157_v18, %v7736_v51 }
 0x294   : > { %v2967_v4 = vsel %vm9508_vm3, %v2966_v8, %v7657_v44  ;;  %v1286_v3 = vclz %v4734_v59  ;;  %v7741_v47 = vmul.u32.u64.low %v7675_v56, %v1161_v10  ;;  %v7742_v0 = vmul.u32.u64.high %v7675_v56, %v1161_v10, %v7741_v47 }
 0x295   : > { %vm9509_vm1 = vcmp.lt.s32.totalorder %v5770_v14, 0  ;;  %v2342_v36 = vxor.u32 2147483648, %v6620_v49  ;;  %v9510_v44 = vand.u32 2147483647, %v7323_v11  ;;  %v9511_v8 = vmov 0 }
 0x296   : > { %v3905_v32 = vsel %vm9509_vm1, %v3904_v55, %v5934_v41  ;;  %v1153_v35 = vsel %vm1147_vm0, %v1150_v63, %v1152_v46  ;;  %5311 = vsinq.f32 %v3906_v26  ;;  %v2862_v60 = vxor.u32 2147483648, %v2861_v43  ;;  %v374_v55 = vpop.permute.xlu1 %373 }
 0x297   : > { %vm7750_vm14 = vcmp.le.f32.partialorder %v9510_v44, 0.7853982  ;;  %5313 = vcosq.f32 %v7665_v50  ;;  %v4735_v41 = vadd.s32 4294967294, %v1286_v3  ;;  %v1172_v12 = vadd.s32 1, %v7737_v20 }
 0x298   : > { %v9512_v8 = vsel %vm7750_vm14, 4294967295, %v9511_v8  ;;  %v2970_v45 = vsel %vm7750_vm14, %v7323_v11, %v2967_v4  ;;  %v3907_v6 = vsel %vm7679_vm7, 0, %v3905_v32  ;;  %v9514_v33 = vand.u32 2147483647, %v5772_v15  ;;  %v9522_v32 = vld [vmem:[#allocation5_spill] sm:$0xff] }
 0x299   : > { %9513 = vst [vmem:[#allocation82_spill] sm:$0xff] %v9512_v8  ;;  %v4008_v26 = vsub.s32 4, %v5960_v39  ;;  %vm4736_vm0 = vcmp.lt.s32.totalorder %v4735_v41, 0  ;;  %v1169_v9 = vmul.u32 %v7675_v56, %v1153_v35  ;;  %vm1171_vm5 = vc.u32 %v7742_v0, %v7736_v51 }
 0x29a   : > { %vm7765_vm3 = vcmp.le.f32.partialorder %v9514_v33, 0.7853982  ;;  %5315 = vsinq.f32 %v7665_v50  ;;  %vm9288_vm7 = vcmp.lt.s32.totalorder %v7325_v57, 0  ;;  %v1289_v18 = vsel %vm4736_vm0, 0, %v4735_v41  ;;  %v294_v3 = vpop.permute.xlu1 %293 }
 0x29b   : > { %v4010_v13 = vsel %vm7765_vm3, %v5772_v15, %v6359_v52  ;;  %v1173_v22 = vsel %vm1171_vm5, %v1172_v12, %v7737_v20  ;;  %vm9517_vm1 = vcmp.lt.s32.totalorder %v5799_v38, 0  ;;  %5317 = vcosq.f32 %v2970_v45  ;;  %v369_v20 = vpop.permute.xlu0 %368  ;;  %v9528_v12 = vld [vmem:[#allocation16_spill] sm:$0xff] }
 0x29c   : > { %v2343_v59 = vsel %vm9517_vm1, %v2342_v36, %v6620_v49  ;;  %v2863_v56 = vsel %vm9288_vm7, %v2862_v60, %v2861_v43  ;;  %v1174_v63 = vadd.s32 %v1173_v22, %v1169_v9  ;;  %v9518_v46 = vand.u32 2147483647, %v7325_v57  ;;  %v9527_v60 = vld [vmem:[#allocation6_spill] sm:$0xff] }
 0x29d   : > { %v9519_v52 = vmov 0  ;;  %v3911_v50 = vadd.s32 3, %v3907_v6  ;;  %vm9521_vm0 = vcmp.lt.s32.totalorder %v5772_v15, 0  ;;  %5319 = vcosq.f32 %v4010_v13 }
 0x29e   : > { %vm7787_vm14 = vcmp.le.f32.partialorder %v9518_v46, 0.7853982  ;;  %v4009_v58 = vsel %vm9521_vm0, %v4008_v26, %v5960_v39  ;;  %v1290_v4 = vsub.s32 32, %v1289_v18  ;;  %v1294_v10 = vsub.s32 4294967266, %v1289_v18  ;;  %v5310_v44 = vpop.eup %5309 }
 0x29f   : > { %v9520_v52 = vsel %vm7787_vm14, 4294967295, %v9519_v52  ;;  %v1175_v49 = vadd.s32 536870912, %v1174_v63  ;;  %5321 = vsinq.f32 %v4010_v13  ;;  %v7797_v43 = vsel %vm7787_vm14, %v7325_v57, %v2863_v56 }
 0x2a0   : > { %5323 = vsinq.f32 %v2970_v45  ;;  %v1274_v47 = vadd.s32 %v7637_v61, %v7643_v7  ;;  %v9523_v36 = vand.u32 2147483647, %v9522_v32  ;;  %v4011_v45 = vsel %vm7765_vm3, 0, %v4009_v58 }
 0x2a1   : > { %v7807_v35 = vshrl.u32 %v1175_v49, 30  ;;  %v2240_v41 = vsub.s32 4, %v9527_v60  ;;  %v461_v61 = vmul.f32 %v7306_v29, %v374_v55  ;;  %v7818_v7 = vmul.f32 %v7306_v29, %v369_v20  ;;  %v604_v20 = vpop.permute.xlu1 %603 }
 0x2a2   : > { %vm7803_vm5 = vcmp.le.f32.partialorder %v9523_v36, 0.7853982  ;;  %v3912_v33 = vand.u32 3, %v3911_v50  ;;  %v1292_v26 = vshrl.u32 %v1274_v47, %v1290_v4  ;;  %v1295_v9 = vadd.s32 127, %v1294_v10  ;;  %v9533_v4 = vld [vmem:[#allocation10_spill] sm:$0xff] }
 0x2a3   : > { %9526 = vst [vmem:[#allocation5_spill] sm:$0xff] %v7807_v35  ;;  %v2242_v6 = vsel %vm7803_vm5, %v9522_v32, %v9528_v12  ;;  %v1177_v19 = vshll.u32 %v7807_v35, 30  ;;  %v1291_v13 = vshll.u32 %v7708_v42, %v1289_v18  ;;  %v3918_v22 = vxor.u32 2147483648, %v5310_v44  ;;  %v5312_v46 = vpop.eup %5311 }
 0x2a4   : > { %5325 = vcosq.f32 %v2242_v6  ;;  %v4015_v56 = vadd.s32 3, %v4011_v45  ;;  %vm9529_vm3 = vcmp.lt.s32.totalorder %v9522_v32, 0  ;;  %v9530_v50 = vand.u32 2147483647, %v5799_v38  ;;  %v7835_v42 = vpop.eup %5313 }
 0x2a5   : > { %5327 = vcosq.f32 %v7797_v43  ;;  %v7823_v58 = vsub.s32 %v1174_v63, %v1177_v19  ;;  %v2241_v55 = vsel %vm9529_vm3, %v2240_v41, %v9527_v60  ;;  %v2344_v10 = vsub.s32 4, %v9533_v4  ;;  %v289_v41 = vpop.permute.xlu0 %288 }
 0x2a6   : > { %5329 = vsinq.f32 %v2242_v6  ;;  %vm7830_vm1 = vcmp.le.f32.partialorder %v9530_v50, 0.7853982  ;;  %vm3914_vm7 = vcmp.eq.s32.totalorder %v3912_v33, 0  ;;  %v3915_v18 = vxor.u32 2147483648, %v5312_v46 }
 0x2a7   : > { %v7839_v63 = vmul.f32 %v7306_v29, %v294_v3  ;;  %v2346_v47 = vsel %vm7830_vm1, %v5799_v38, %v2343_v59  ;;  %v7844_v36 = vor.u32 %v1292_v26, %v1291_v13  ;;  %v1296_v45 = vshll.u32 %v1295_v9, 23  ;;  %v7855_v59 = vpop.eup %5315 }
 0x2a8   : > { %v1180_v60 = vsub.s32 0, %v7823_v58  ;;  %vm3917_vm3 = vcmp.eq.s32.totalorder %v3912_v33, 2  ;;  %v2243_v12 = vsel %vm7803_vm5, 0, %v2241_v55  ;;  %vm9534_vm0 = vcmp.lt.s32.totalorder %v5799_v38, 0  ;;  %v7859_v13 = vpop.eup %5317  ;;  %v7864_v55 = vld [vmem:[%s5751_s24] ss:$0 sm:$0xff] }
 0x2a9   : > { %v2345_v29 = vsel %vm9534_vm0, %v2344_v10, %v9533_v4  ;;  %5331 = vcosq.f32 %v2346_v47  ;;  %v7853_v3 = vadd.f32 %v604_v20, %v461_v61  ;;  %v3916_v26 = vsel %vm3914_vm7, %v5310_v44, %v3915_v18  ;;  %9536 = vst [vmem:[#allocation16_spill] sm:$0xff] %v7859_v13  ;;  %s5387_s24 = scalar_lea.vmem %s5386_s11, 8192 }
 0x2aa   : > { %v4730_v6 = vmin.u32 %v1180_v60, %v7823_v58  ;;  %v3919_v9 = vsel %vm3917_vm3, %v3918_v22, %v5312_v46  ;;  %v4016_v19 = vand.u32 3, %v4015_v56  ;;  %v1170_v39 = vadd.s32 %v7736_v51, %v7742_v0  ;;  %v5320_v61 = vpop.eup %5319  ;;  %p5389_p2 = scmp.lt.s32.totalorder %s5387_s24, %s5381_s9 }
 0x2ab   : > { %9535 = vst [vmem:[#allocation6_spill] sm:$0xff] %v7853_v3  ;;  %vm3913_vm5 = vcmp.lt.s32.totalorder %v3912_v33, 2  ;;  %v7867_v50 = vmul.f32 %v7864_v55, %v289_v41  ;;  %5333 = vsinq.f32 %v2346_v47  ;;  %v1297_v4 = vor.u32 4788187, %v1296_v45 }
 0x2ac   : > { %v1182_v10 = vclz %v4730_v6  ;;  %v2247_v20 = vadd.s32 3, %v2243_v12  ;;  %v2347_v44 = vsel %vm7830_vm1, 0, %v2345_v29  ;;  %v5322_v22 = vpop.eup %5321  ;;  %v1300_v56 = vcvt.s32.f32 %v7844_v36  ;;  %p5390_p3 = por %p5389_p2, %p5388_p1 }
 0x2ad   : > { %v3920_v46 = vsel %vm3913_vm5, %v3916_v26, %v3919_v9  ;;  %v4022_v18 = vxor.u32 2147483648, %v5320_v61  ;;  %v2677_v51 = vand.u32 2139095040, %v7853_v3  ;;  %v7873_v0 = vpop.eup %5323  ;;  %vm4017_vm7 = vcmp.lt.s32.totalorder %v4016_v19, 2 }
 0x2ae   : > { %9537 = vst [vmem:[#allocation10_spill] sm:$0xff] %v7873_v0  ;;  %v4731_v33 = vadd.s32 4294967294, %v1182_v10  ;;  %v4019_v60 = vxor.u32 2147483648, %v5322_v22  ;;  %vm4021_vm0 = vcmp.eq.s32.totalorder %v4016_v19, 2  ;;  %vm4018_vm3 = vcmp.eq.s32.totalorder %v4016_v19, 0  ;;  %p5391_p5 = pnand %p5390_p3, %p5384_p0 }
 0x2af   : > { %v4023_v47 = vsel %vm4021_vm0, %v4022_v18, %v5322_v22  ;;  %v2351_v45 = vadd.s32 3, %v2347_v44  ;;  %v2678_v41 = vshrl.u32 %v2677_v51, 23  ;;  %vm9538_vm1 = vweird.f32 %v5770_v14 }
 0x2b0   : > { %vm4732_vm14 = vcmp.lt.s32.totalorder %v4731_v33, 0  ;;  %v3921_v49 = vsel %vm9538_vm1, nan, %v3920_v46  ;;  %v4020_v36 = vsel %vm4018_vm3, %v5320_v61, %v4019_v60  ;;  %v2248_v29 = vand.u32 3, %v2247_v20 }
 0x2b1   : > { %v5326_v12 = vpop.eup %5325  ;;  %v1298_v26 = vand.u32 2147483647, %v1297_v4  ;;  %v1185_v9 = vsel %vm4732_vm14, 0, %v4731_v33  ;;  %v4024_v17 = vsel %vm4017_vm7, %v4020_v36, %v4023_v47  ;;  %vm9540_vm5 = vweird.f32 %v5772_v15 }
 0x2b2   : > { %v7877_v6 = vpop.eup %5327  ;;  %v2254_v10 = vxor.u32 2147483648, %v5326_v12  ;;  %v1186_v0 = vsub.s32 32, %v1185_v9  ;;  %v1190_v8 = vsub.s32 4294967266, %v1185_v9  ;;  %v4025_v19 = vsel %vm9540_vm5, nan, %v4024_v17 }
 0x2b3   : > { %9539 = vst [vmem:[#allocation83_spill] sm:$0xff] %v7877_v6  ;;  %v5330_v13 = vpop.eup %5329  ;;  %v9298_v44 = vand.u32 2147483647, %v7853_v3  ;;  %v4073_v14 = vpack.c.bf16 %v4025_v19, %v3921_v49  ;;  %v2352_v61 = vand.u32 3, %v2351_v45  ;;  %v4789_v20 = vadd.s32 4294967169, %v2678_v41  ;;  %v599_v45 = vpop.permute.xlu0 %598 }
 0x2b4   : > { %v2251_v22 = vxor.u32 2147483648, %v5330_v13  ;;  %v1191_v46 = vadd.s32 127, %v1190_v8  ;;  %vm2250_vm3 = vcmp.eq.s32.totalorder %v2248_v29, 0  ;;  %vm2253_vm1 = vcmp.eq.s32.totalorder %v2248_v29, 2  ;;  %v524_v41 = vpop.permute.xlu1 %523 }
 0x2b5   : > { %vm2350_vm14 = vweird.f32 %v5799_v38  ;;  %v7884_v4 = vmul.f32 %v1300_v56, %v1298_v26  ;;  %4879 = vmatprep.subr.bf16.mxu0 %v4073_v14  ;;  %4991 = vmatprep.subr.bf16.mxu1 %v4073_v14  ;;  %v2255_v15 = vsel %vm2253_vm1, %v2254_v10, %v5330_v13  ;;  %v2684_v17 = vadd.s32 1, %v4789_v20 }
 0x2b6   : > { %v2252_v18 = vsel %vm2250_vm3, %v5326_v12, %v2251_v22  ;;  %v5332_v51 = vpop.eup %5331  ;;  %v1188_v33 = vshrl.u32 %v1170_v39, %v1186_v0  ;;  %v1192_v60 = vshll.u32 %v1191_v46, 23  ;;  %vm2249_vm7 = vcmp.lt.s32.totalorder %v2248_v29, 2 }
 0x2b7   : > { %v2681_v47 = vand.u32 8388607, %v9298_v44  ;;  %vm2353_vm5 = vcmp.lt.s32.totalorder %v2352_v61, 2  ;;  %vm2357_vm0 = vcmp.eq.s32.totalorder %v2352_v61, 2  ;;  %v2358_v8 = vxor.u32 2147483648, %v5332_v51 }
 0x2b8   : > { %vm2685_vm9 = vcmp.gt.s32.totalorder %v2684_v17, 0  ;;  %v5334_v56 = vpop.eup %5333  ;;  %v1187_v49 = vshll.u32 %v7823_v58, %v1185_v9  ;;  %v1193_v36 = vor.u32 4788187, %v1192_v60  ;;  %v2256_v12 = vsel %vm2249_vm7, %v2252_v18, %v2255_v15 }
 0x2b9   : > { %v2686_v13 = vsel %vm2685_vm9, %v2684_v17, 0  ;;  %vm2354_vm3 = vcmp.eq.s32.totalorder %v2352_v61, 0  ;;  %v2355_v26 = vxor.u32 2147483648, %v5334_v56  ;;  %v2359_v39 = vsel %vm2357_vm0, %v2358_v8, %v5334_v56 }
 0x2ba   : > { %v2688_v0 = vand.u32 31, %v2686_v13  ;;  %v1189_v29 = vor.u32 %v1188_v33, %v1187_v49  ;;  %v2682_v10 = vor.u32 8388608, %v2681_v47  ;;  %v7890_v19 = vadd.f32 %v599_v45, %v7818_v7 }
 0x2bb   : > { %v7893_v14 = vadd.f32 %v524_v41, %v7839_v63  ;;  %vm9543_vm1 = vweird.f32 %v9522_v32  ;;  %v2356_v20 = vsel %vm2354_vm3, %v5332_v51, %v2355_v26  ;;  %v2687_v58 = vshrl.u32 %v2686_v13, 5 }
 0x2bc   : > { %9541 = vst [vmem:[#allocation84_spill] sm:$0xff] %v7890_v19  ;;  %v2257_v22 = vsel %vm9543_vm1, nan, %v2256_v12  ;;  %v2689_v9 = vsub.s32 32, %v2688_v0  ;;  %v1194_v46 = vand.u32 2147483647, %v1193_v36  ;;  %v2360_v18 = vsel %vm2353_vm5, %v2356_v20, %v2359_v39 }
 0x2bd   : > { %9542 = vst [vmem:[#allocation85_spill] sm:$0xff] %v7893_v14  ;;  %v2691_v15 = vshll.u32 %v9364_v25, %v2688_v0  ;;  %v2694_v17 = vshll.u32 %v9369_v5, %v2688_v0  ;;  %v2361_v7 = vsel %vm2350_vm14, nan, %v2360_v18  ;;  %v2697_v32 = vshll.u32 %v9359_v30, %v2688_v0 }
 0x2be   : > { %v2692_v33 = vshrl.u32 %v9369_v5, %v2689_v9  ;;  %v2695_v63 = vshrl.u32 %v9359_v30, %v2689_v9  ;;  %v4065_v60 = vpack.c.bf16 %v2361_v7, %v2257_v22  ;;  %v2698_v51 = vshrl.u32 %v9360_v27, %v2689_v9 }
 0x2bf   : > { %v2700_v47 = vshll.u32 %v9360_v27, %v2688_v0  ;;  %v2701_v61 = vshrl.u32 %v9361_v48, %v2689_v9  ;;  %v2703_v41 = vshll.u32 %v9361_v48, %v2688_v0  ;;  %v2704_v38 = vshrl.u32 %v9362_v31, %v2689_v9 }
 0x2c0   : > { %v2693_v8 = vor.u32 %v2692_v33, %v2691_v15  ;;  %v2696_v45 = vor.u32 %v2695_v63, %v2694_v17  ;;  %v1196_v56 = vcvt.s32.f32 %v1189_v29  ;;  %4880 = vmatpush3.bf16.msra.mxu0 %v4065_v60  ;;  %4999 = vmatpush3.bf16.msra.mxu1 %v4065_v60  ;;  %v2699_v49 = vor.u32 %v2698_v51, %v2697_v32 }
 0x2c1   : > { %v2702_v36 = vor.u32 %v2701_v61, %v2700_v47  ;;  %v2573_v12 = vand.u32 2139095040, %v7890_v19  ;;  %v2705_v13 = vor.u32 %v2704_v38, %v2703_v41  ;;  %vm2706_vm9 = vcmp.lt.s32.totalorder %v2687_v58, 1  ;;  %v519_v61 = vpop.permute.xlu0 %518 }
 0x2c2   : > { %v2722_v26 = vshll.u32 %v2682_v10, 8  ;;  %v9297_v39 = vand.u32 2147483647, %v7890_v19  ;;  %vm9299_vm0 = vcmp.lt.s32.totalorder %v7480_v53, 0  ;;  %v1197_v22 = vmul.f32 %v1196_v56, %v1194_v46 }
 0x2c3   : > { %v2690_v20 = vshrl.u32 %v9364_v25, %v2689_v9  ;;  %vm2709_vm14 = vcmp.lt.s32.totalorder %v2687_v58, 4  ;;  %v2714_v0 = vsel %vm2706_vm9, %v2693_v8, %v2696_v45  ;;  %vm2708_vm7 = vcmp.lt.s32.totalorder %v2687_v58, 3 }
 0x2c4   : > { %v2711_v29 = vsel %vm2709_vm14, %v2699_v49, 2102212464  ;;  %v2715_v18 = vsel %vm2709_vm14, %v2702_v36, 920167782  ;;  %v2718_v15 = vsel %vm2706_vm9, %v2696_v45, %v2699_v49  ;;  %vm2707_vm5 = vcmp.lt.s32.totalorder %v2687_v58, 2 }
 0x2c5   : > { %v2716_v17 = vsel %vm2708_vm7, %v2699_v49, %v2715_v18  ;;  %v2719_v7 = vsel %vm2709_vm14, %v2705_v13, 1326507024  ;;  %v2574_v33 = vshrl.u32 %v2573_v12, 23  ;;  %v2710_v10 = vsel %vm2706_vm9, %v2690_v20, %v2693_v8 }
 0x2c6   : > { %v2712_v63 = vsel %vm2708_vm7, %v2696_v45, %v2711_v29  ;;  %v2717_v32 = vsel %vm2707_vm5, %v2714_v0, %v2716_v17  ;;  %v2720_v46 = vsel %vm2708_vm7, %v2702_v36, %v2719_v7  ;;  %v2577_v47 = vand.u32 8388607, %v9297_v39 }
 0x2c7   : > { %v2721_v9 = vsel %vm2707_vm5, %v2718_v15, %v2720_v46  ;;  %v7919_v60 = vmul.u32.u64.low %v2722_v26, %v2717_v32  ;;  %v7920_v51 = vmul.u32.u64.high %v2722_v26, %v2717_v32, %v7919_v60  ;;  %v1302_v41 = vxor.u32 2147483648, %v7884_v4 }
 0x2c8   : > { %v7926_v38 = vmul.u32.u64.low %v2722_v26, %v2721_v9  ;;  %v7927_v56 = vmul.u32.u64.high %v2722_v26, %v2721_v9, %v7926_v38  ;;  %v4785_v8 = vadd.s32 4294967169, %v2574_v33  ;;  %v1198_v45 = vxor.u32 2147483648, %v1197_v22 }
 0x2c9   : > { %v2713_v49 = vsel %vm2707_vm5, %v2710_v10, %v2712_v63  ;;  %v9296_v36 = vand.u32 2147483647, %v7893_v14  ;;  %v1013_v12 = vand.u32 2139095040, %v7893_v14  ;;  %5335 = vsinq.f32 %v7797_v43 }
 0x2ca   : > { %vm9302_vm3 = vcmp.lt.s32.totalorder %v7561_v40, 0  ;;  %v2580_v13 = vadd.s32 1, %v4785_v8  ;;  %v7935_v20 = vadd.f32 %v519_v61, %v7867_v50  ;;  %v2732_v0 = vadd.s32 1, %v7920_v51 }
 0x2cb   : > { %v2578_v29 = vor.u32 8388608, %v2577_v47  ;;  %v1014_v18 = vshrl.u32 %v1013_v12, 23  ;;  %v7940_v58 = vand.u32 8388607, %v9296_v36  ;;  %v7945_v15 = vsel %vm9299_vm0, %v1302_v41, %v7884_v4 }
 0x2cc   : > { %v2729_v43 = vmul.u32 %v2722_v26, %v2713_v49  ;;  %vm2731_vm1 = vc.u32 %v7927_v56, %v7919_v60  ;;  %vm2581_vm9 = vcmp.gt.s32.totalorder %v2580_v13, 0  ;;  %v1199_v50 = vsel %vm9302_vm3, %v1198_v45, %v1197_v22 }
 0x2cd   : > { %v2733_v17 = vsel %vm2731_vm1, %v2732_v0, %v7920_v51  ;;  %v2582_v7 = vsel %vm2581_vm9, %v2580_v13, 0  ;;  %v4725_v33 = vadd.s32 4294967169, %v1014_v18  ;;  %v7953_v9 = vshll.u32 %v2578_v29, 8 }
 0x2ce   : > { %v2734_v10 = vadd.s32 %v2733_v17, %v2729_v43  ;;  %v2583_v63 = vshrl.u32 %v2582_v7, 5  ;;  %v2584_v32 = vand.u32 31, %v2582_v7  ;;  %v1018_v4 = vor.u32 8388608, %v7940_v58 }
 0x2cf   : > { %v1020_v26 = vadd.s32 1, %v4725_v33  ;;  %v909_v47 = vand.u32 2139095040, %v7935_v20  ;;  %v9544_v49 = vand.u32 2147483647, %v7480_v53  ;;  %v9545_v12 = vmov 0 }
 0x2d0   : > { %v2735_v61 = vadd.s32 536870912, %v2734_v10  ;;  %v2585_v41 = vsub.s32 32, %v2584_v32  ;;  %v2587_v22 = vshll.u32 %v9364_v25, %v2584_v32  ;;  %v2590_v51 = vshll.u32 %v9369_v5, %v2584_v32 }
 0x2d1   : > { %v2593_v38 = vshll.u32 %v9359_v30, %v2584_v32  ;;  %v2596_v8 = vshll.u32 %v9360_v27, %v2584_v32  ;;  %v2599_v45 = vshll.u32 %v9361_v48, %v2584_v32  ;;  %vm2602_vm14 = vcmp.lt.s32.totalorder %v2583_v63, 1 }
 0x2d2   : > { %vm7964_vm7 = vcmp.le.f32.partialorder %v9544_v49, 0.7853982  ;;  %v7968_v13 = vshrl.u32 %v2735_v61, 30  ;;  %v2586_v0 = vshrl.u32 %v9364_v25, %v2585_v41  ;;  %v2588_v29 = vshrl.u32 %v9369_v5, %v2585_v41 }
 0x2d3   : > { %v9546_v12 = vsel %vm7964_vm7, 4294967295, %v9545_v12  ;;  %v2591_v18 = vshrl.u32 %v9359_v30, %v2585_v41  ;;  %v9549_v58 = vand.u32 2147483647, %v7561_v40  ;;  %v9550_v43 = vmov 0 }
 0x2d4   : > { %9547 = vst [vmem:[#allocation86_spill] sm:$0xff] %v9546_v12  ;;  %9548 = vst [vmem:[#allocation87_spill] sm:$0xff] %v7968_v13  ;;  %v2594_v17 = vshrl.u32 %v9360_v27, %v2585_v41  ;;  %v2597_v7 = vshrl.u32 %v9361_v48, %v2585_v41  ;;  %v2600_v33 = vshrl.u32 %v9362_v31, %v2585_v41  ;;  %vm2603_vm1 = vcmp.lt.s32.totalorder %v2583_v63, 2 }
 0x2d5   : > { %vm7975_vm5 = vcmp.le.f32.partialorder %v9549_v58, 0.7853982  ;;  %v2737_v32 = vshll.u32 %v7968_v13, 30  ;;  %v2589_v61 = vor.u32 %v2588_v29, %v2587_v22  ;;  %v2592_v49 = vor.u32 %v2591_v18, %v2590_v51 }
 0x2d6   : > { %v9551_v43 = vsel %vm7975_vm5, 4294967295, %v9550_v43  ;;  %vm2604_vm9 = vcmp.lt.s32.totalorder %v2583_v63, 3  ;;  %v2595_v36 = vor.u32 %v2594_v17, %v2593_v38  ;;  %v2598_v39 = vor.u32 %v2597_v7, %v2596_v8  ;;  %v7987_v11 = vpop.eup %5335 }
 0x2d7   : > { %9552 = vst [vmem:[#allocation88_spill] sm:$0xff] %v9551_v43  ;;  %v2601_v44 = vor.u32 %v2600_v33, %v2599_v45  ;;  %vm2605_vm0 = vcmp.lt.s32.totalorder %v2583_v63, 4  ;;  %v7983_v58 = vsub.s32 %v2734_v10, %v2737_v32  ;;  %v2606_v46 = vsel %vm2602_vm14, %v2586_v0, %v2589_v61  ;;  %9553 = vst [vmem:[#allocation89_spill] sm:$0xff] %v7987_v11 }
 0x2d8   : > { %v2610_v35 = vsel %vm2602_vm14, %v2589_v61, %v2592_v49  ;;  %vm1021_vm3 = vcmp.gt.s32.totalorder %v1020_v26, 0  ;;  %v2607_v41 = vsel %vm2605_vm0, %v2595_v36, 2102212464  ;;  %v2611_v6 = vsel %vm2605_vm0, %v2598_v39, 920167782 }
 0x2d9   : > { %v2614_v13 = vsel %vm2602_vm14, %v2592_v49, %v2595_v36  ;;  %v2615_v22 = vsel %vm2605_vm0, %v2601_v44, 1326507024  ;;  %v2740_v51 = vsub.s32 0, %v7983_v58  ;;  %v2608_v38 = vsel %vm2604_vm9, %v2592_v49, %v2607_v41 }
 0x2da   : > { %v2612_v8 = vsel %vm2604_vm9, %v2595_v36, %v2611_v6  ;;  %v2616_v10 = vsel %vm2604_vm9, %v2598_v39, %v2615_v22  ;;  %v1022_v29 = vsel %vm1021_vm3, %v1020_v26, 0  ;;  %v910_v18 = vshrl.u32 %v909_v47, 23 }
 0x2db   : > { %v2613_v45 = vsel %vm2603_vm1, %v2610_v35, %v2612_v8  ;;  %v2617_v0 = vsel %vm2603_vm1, %v2614_v13, %v2616_v10  ;;  %v4790_v17 = vmin.u32 %v2740_v51, %v7983_v58  ;;  %v2609_v7 = vsel %vm2603_vm1, %v2606_v46, %v2608_v38 }
 0x2dc   : > { %v7999_v44 = vmul.u32.u64.low %v7953_v9, %v2617_v0  ;;  %v8000_v33 = vmul.u32.u64.high %v7953_v9, %v2617_v0, %v7999_v44  ;;  %v8006_v6 = vsel %vm7964_vm7, %v7480_v53, %v7945_v15  ;;  %v1024_v36 = vand.u32 31, %v1022_v29 }
 0x2dd   : > { %v8009_v35 = vmul.u32.u64.low %v7953_v9, %v2613_v45  ;;  %v8010_v39 = vmul.u32.u64.high %v7953_v9, %v2613_v45, %v8009_v35  ;;  %v8016_v63 = vsel %vm7975_vm5, %v7561_v40, %v1199_v50  ;;  %v2730_v46 = vadd.s32 %v7919_v60, %v7927_v56 }
 0x2de   : > { %v2742_v26 = vclz %v4790_v17  ;;  %v8020_v47 = vshll.u32 %v1018_v4, 8  ;;  %v2625_v15 = vmul.u32 %v7953_v9, %v2609_v7  ;;  %v8023_v13 = vshrl.u32 %v1022_v29, 5 }
 0x2df   : > { %v1025_v32 = vsub.s32 32, %v1024_v36  ;;  %v9554_v61 = vand.u32 2147483647, %v7935_v20  ;;  %vm2627_vm0 = vc.u32 %v8000_v33, %v8009_v35  ;;  %v1027_v50 = vshll.u32 %v9364_v25, %v1024_v36 }
 0x2e0   : > { %v4791_v41 = vadd.s32 4294967294, %v2742_v26  ;;  %v4721_v22 = vadd.s32 4294967169, %v910_v18  ;;  %v2628_v60 = vadd.s32 1, %v8010_v39  ;;  %v1030_v9 = vshll.u32 %v9369_v5, %v1024_v36 }
 0x2e1   : > { %v8027_v49 = vand.u32 8388607, %v9554_v61  ;;  %v1028_v56 = vshrl.u32 %v9369_v5, %v1025_v32  ;;  %v1031_v4 = vshrl.u32 %v9359_v30, %v1025_v32  ;;  %v1033_v51 = vshll.u32 %v9359_v30, %v1024_v36 }
 0x2e2   : > { %vm4792_vm3 = vcmp.lt.s32.totalorder %v4791_v41, 0  ;;  %v1034_v38 = vshrl.u32 %v9360_v27, %v1025_v32  ;;  %v1037_v8 = vshrl.u32 %v9361_v48, %v1025_v32  ;;  %v2629_v45 = vsel %vm2627_vm0, %v2628_v60, %v8010_v39 }
 0x2e3   : > { %v2745_v10 = vsel %vm4792_vm3, 0, %v4791_v41  ;;  %v1036_v0 = vshll.u32 %v9360_v27, %v1024_v36  ;;  %v1039_v29 = vshll.u32 %v9361_v48, %v1024_v36  ;;  %v2630_v7 = vadd.s32 %v2629_v45, %v2625_v15 }
 0x2e4   : > { %v2746_v18 = vsub.s32 32, %v2745_v10  ;;  %v2750_v17 = vsub.s32 4294967266, %v2745_v10  ;;  %v1029_v44 = vor.u32 %v1028_v56, %v1027_v50  ;;  %v1032_v26 = vor.u32 %v1031_v4, %v1030_v9 }
 0x2e5   : > { %v1035_v61 = vor.u32 %v1034_v38, %v1033_v51  ;;  %v1038_v12 = vor.u32 %v1037_v8, %v1036_v0  ;;  %v1040_v53 = vshrl.u32 %v9362_v31, %v1025_v32  ;;  %v2631_v11 = vadd.s32 536870912, %v2630_v7 }
 0x2e6   : > { %v2748_v43 = vshrl.u32 %v2730_v46, %v2746_v18  ;;  %v2751_v40 = vadd.s32 127, %v2750_v17  ;;  %v1026_v41 = vshrl.u32 %v9364_v25, %v1025_v32  ;;  %v2747_v39 = vshll.u32 %v7983_v58, %v2745_v10 }
 0x2e7   : > { %v1041_v60 = vor.u32 %v1040_v53, %v1039_v29  ;;  %vm1042_vm14 = vcmp.lt.s32.totalorder %v8023_v13, 1  ;;  %vm1045_vm1 = vcmp.lt.s32.totalorder %v8023_v13, 4  ;;  %v8047_v15 = vshrl.u32 %v2631_v11, 30 }
 0x2e8   : > { %v2752_v36 = vshll.u32 %v2751_v40, 23  ;;  %vm1043_vm9 = vcmp.lt.s32.totalorder %v8023_v13, 2  ;;  %v1047_v50 = vsel %vm1045_vm1, %v1035_v61, 2102212464  ;;  %vm1044_vm0 = vcmp.lt.s32.totalorder %v8023_v13, 3  ;;  %v9555_v13 = vld [vmem:[#allocation13_spill] sm:$0xff] }
 0x2e9   : > { %v1046_v46 = vsel %vm1042_vm14, %v1026_v41, %v1029_v44  ;;  %v1050_v56 = vsel %vm1042_vm14, %v1029_v44, %v1032_v26  ;;  %v1051_v9 = vsel %vm1045_vm1, %v1038_v12, 920167782  ;;  %v2749_v4 = vor.u32 %v2748_v43, %v2747_v39 }
 0x2ea   : > { %v2753_v32 = vor.u32 4788187, %v2752_v36  ;;  %v2633_v58 = vshll.u32 %v8047_v15, 30  ;;  %v1054_v53 = vsel %vm1042_vm14, %v1032_v26, %v1035_v61  ;;  %v1048_v51 = vsel %vm1044_vm0, %v1032_v26, %v1047_v50 }
 0x2eb   : > { %v1052_v38 = vsel %vm1044_vm0, %v1035_v61, %v1051_v9  ;;  %v1055_v8 = vsel %vm1045_vm1, %v1041_v60, 1326507024  ;;  %v916_v10 = vadd.s32 1, %v4721_v22  ;;  %v2756_v17 = vcvt.s32.f32 %v2749_v4 }
 0x2ec   : > { %v2754_v40 = vand.u32 2147483647, %v2753_v32  ;;  %v8052_v11 = vsub.s32 %v2630_v7, %v2633_v58  ;;  %v1053_v45 = vsel %vm1043_vm9, %v1050_v56, %v1052_v38  ;;  %v1056_v0 = vsel %vm1044_vm0, %v1038_v12, %v1055_v8 }
 0x2ed   : > { %v1057_v29 = vsel %vm1043_vm9, %v1054_v53, %v1056_v0  ;;  %v8059_v43 = vmul.u32.u64.low %v8020_v47, %v1053_v45  ;;  %v8060_v18 = vmul.u32.u64.high %v8020_v47, %v1053_v45, %v8059_v43  ;;  %vm917_vm3 = vcmp.gt.s32.totalorder %v916_v10, 0 }
 0x2ee   : > { %v2636_v44 = vsub.s32 0, %v8052_v11  ;;  %v8065_v22 = vmul.u32.u64.low %v8020_v47, %v1057_v29  ;;  %v8066_v7 = vmul.u32.u64.high %v8020_v47, %v1057_v29, %v8065_v22  ;;  %5337 = vcosq.f32 %v8006_v6 }
 0x2ef   : > { %v1049_v12 = vsel %vm1043_vm9, %v1046_v46, %v1048_v51  ;;  %v914_v26 = vor.u32 8388608, %v8027_v49  ;;  %v918_v61 = vsel %vm917_vm3, %v916_v10, 0  ;;  %5339 = vsinq.f32 %v8006_v6 }
 0x2f0   : > { %v8073_v41 = vmul.f32 %v2756_v17, %v2754_v40  ;;  %v4786_v39 = vmin.u32 %v2636_v44, %v8052_v11  ;;  %v920_v60 = vand.u32 31, %v918_v61  ;;  %5341 = vcosq.f32 %v8016_v63  ;;  %v9556_v40 = vld [vmem:[#allocation8_spill] sm:$0xff] }
 0x2f1   : > { %v1068_v36 = vadd.s32 1, %v8060_v18  ;;  %v1065_v56 = vmul.u32 %v8020_v47, %v1049_v12  ;;  %vm1067_vm14 = vc.u32 %v8066_v7, %v8059_v43  ;;  %v3696_v49 = vsub.s32 4, %v9555_v13 }
 0x2f2   : > { %v2638_v50 = vclz %v4786_v39  ;;  %v2626_v6 = vadd.s32 %v8009_v35, %v8000_v33  ;;  %v921_v9 = vsub.s32 32, %v920_v60  ;;  %v8085_v4 = vshll.u32 %v914_v26, 8 }
 0x2f3   : > { %v1069_v46 = vsel %vm1067_vm14, %v1068_v36, %v8060_v18  ;;  %v2758_v32 = vxor.u32 2147483648, %v8073_v41  ;;  %v8088_v51 = vshrl.u32 %v918_v61, 5  ;;  %v923_v47 = vshll.u32 %v9364_v25, %v920_v60 }
 0x2f4   : > { %v4787_v58 = vadd.s32 4294967294, %v2638_v50  ;;  %v1070_v53 = vadd.s32 %v1069_v46, %v1065_v56  ;;  %v924_v38 = vshrl.u32 %v9369_v5, %v921_v9  ;;  %v926_v8 = vshll.u32 %v9369_v5, %v920_v60 }
 0x2f5   : > { %v927_v10 = vshrl.u32 %v9359_v30, %v921_v9  ;;  %v930_v35 = vshrl.u32 %v9360_v27, %v921_v9  ;;  %vm9557_vm9 = vcmp.lt.s32.totalorder %v9556_v40, 0  ;;  %v929_v17 = vshll.u32 %v9359_v30, %v920_v60 }
 0x2f6   : > { %vm4788_vm1 = vcmp.lt.s32.totalorder %v4787_v58, 0  ;;  %v1071_v33 = vadd.s32 536870912, %v1070_v53  ;;  %v3697_v45 = vsel %vm9557_vm9, %v3696_v49, %v9555_v13  ;;  %v925_v29 = vor.u32 %v924_v38, %v923_v47 }
 0x2f7   : > { %v2641_v0 = vsel %vm4788_vm1, 0, %v4787_v58  ;;  %v928_v18 = vor.u32 %v927_v10, %v926_v8  ;;  %v932_v26 = vshll.u32 %v9360_v27, %v920_v60  ;;  %v931_v61 = vor.u32 %v930_v35, %v929_v17 }
 0x2f8   : > { %v2642_v44 = vsub.s32 32, %v2641_v0  ;;  %v2646_v22 = vsub.s32 4294967266, %v2641_v0  ;;  %v8099_v12 = vshrl.u32 %v1071_v33, 30  ;;  %v933_v39 = vshrl.u32 %v9361_v48, %v921_v9 }
 0x2f9   : > { %v935_v36 = vshll.u32 %v9361_v48, %v920_v60  ;;  %v936_v50 = vshrl.u32 %v9362_v31, %v921_v9  ;;  %v922_v46 = vshrl.u32 %v9364_v25, %v921_v9  ;;  %v2643_v58 = vshll.u32 %v8052_v11, %v2641_v0 }
 0x2fa   : > { %9558 = vst [vmem:[#allocation13_spill] sm:$0xff] %v8099_v12  ;;  %v2644_v56 = vshrl.u32 %v2626_v6, %v2642_v44  ;;  %v2647_v13 = vadd.s32 127, %v2646_v22  ;;  %v1073_v49 = vshll.u32 %v8099_v12, 30  ;;  %v934_v47 = vor.u32 %v933_v39, %v932_v26 }
 0x2fb   : > { %v937_v38 = vor.u32 %v936_v50, %v935_v36  ;;  %vm938_vm3 = vcmp.lt.s32.totalorder %v8088_v51, 1  ;;  %v8110_v8 = vpop.eup %5337  ;;  %vm939_vm14 = vcmp.lt.s32.totalorder %v8088_v51, 2  ;;  %vm941_vm1 = vcmp.lt.s32.totalorder %v8088_v51, 4 }
 0x2fc   : > { %9559 = vst [vmem:[#allocation8_spill] sm:$0xff] %v8110_v8  ;;  %v2648_v10 = vshll.u32 %v2647_v13, 23  ;;  %v8112_v60 = vsub.s32 %v1070_v53, %v1073_v49  ;;  %v8116_v6 = vpop.eup %5339  ;;  %v9561_v33 = vand.u32 2147483647, %v7853_v3  ;;  %v9562_v9 = vmov 0 }
 0x2fd   : > { %9560 = vst [vmem:[#allocation90_spill] sm:$0xff] %v8116_v6  ;;  %vm940_vm0 = vcmp.lt.s32.totalorder %v8088_v51, 3  ;;  %v943_v11 = vsel %vm941_vm1, %v931_v61, 2102212464  ;;  %v946_v35 = vsel %vm938_vm3, %v925_v29, %v928_v18  ;;  %v947_v53 = vsel %vm941_vm1, %v934_v47, 920167782  ;;  %v8127_v0 = vpop.eup %5341 }
 0x2fe   : > { %vm8120_vm9 = vcmp.le.f32.partialorder %v9561_v33, 0.7853982  ;;  %v2645_v17 = vor.u32 %v2644_v56, %v2643_v58  ;;  %v2649_v44 = vor.u32 4788187, %v2648_v10  ;;  %v1076_v22 = vsub.s32 0, %v8112_v60 }
 0x2ff   : > { %v9563_v9 = vsel %vm8120_vm9, 4294967295, %v9562_v9  ;;  %v942_v26 = vsel %vm938_vm3, %v922_v46, %v925_v29  ;;  %v944_v39 = vsel %vm940_vm0, %v928_v18, %v943_v11  ;;  %v948_v36 = vsel %vm940_vm0, %v931_v61, %v947_v53  ;;  %v364_v29 = vpop.permute.xlu1 %363 }
 0x300   : > { %9564 = vst [vmem:[#allocation91_spill] sm:$0xff] %v9563_v9  ;;  %v950_v50 = vsel %vm938_vm3, %v928_v18, %v931_v61  ;;  %v951_v13 = vsel %vm941_vm1, %v937_v38, 1326507024  ;;  %v2650_v49 = vand.u32 2147483647, %v2649_v44  ;;  %v4726_v33 = vmin.u32 %v1076_v22, %v8112_v60  ;;  %v9572_v9 = vld [vmem:[#allocation18_spill] sm:$0xff] }
 0x301   : > { %v949_v56 = vsel %vm939_vm14, %v946_v35, %v948_v36  ;;  %v952_v58 = vsel %vm940_vm0, %v934_v47, %v951_v13  ;;  %5343 = vsinq.f32 %v8016_v63  ;;  %v2652_v18 = vcvt.s32.f32 %v2645_v17  ;;  %v9567_v13 = vld [vmem:[#allocation11_spill] sm:$0xff] }
 0x302   : > { %v953_v46 = vsel %vm939_vm14, %v950_v50, %v952_v58  ;;  %v8147_v10 = vmul.u32.u64.low %v8085_v4, %v949_v56  ;;  %v8148_v11 = vmul.u32.u64.high %v8085_v4, %v949_v56, %v8147_v10  ;;  %v1078_v61 = vclz %v4726_v33  ;;  %v9568_v56 = vld [vmem:[#allocation26_spill] sm:$0xff] }
 0x303   : > { %v8152_v38 = vmul.u32.u64.low %v8085_v4, %v953_v46  ;;  %v8153_v53 = vmul.u32.u64.high %v8085_v4, %v953_v46, %v8152_v38  ;;  %vm9565_vm0 = vcmp.lt.s32.totalorder %v7853_v3, 0  ;;  %v945_v47 = vsel %vm939_vm14, %v942_v26, %v944_v39 }
 0x304   : > { %v2759_v63 = vsel %vm9565_vm0, %v2758_v32, %v8073_v41  ;;  %v8163_v35 = vmul.f32 %v7864_v55, %v364_v29  ;;  %v3699_v17 = vsel %vm6577_vm8, 0, %v3697_v45  ;;  %v8167_v22 = vmul.f32 %v2652_v18, %v2650_v49 }
 0x305   : > { %v4727_v36 = vadd.s32 4294967294, %v1078_v61  ;;  %v3703_v50 = vadd.s32 3, %v3699_v17  ;;  %v3800_v33 = vsub.s32 4, %v9567_v13  ;;  %v1066_v41 = vadd.s32 %v8059_v43, %v8066_v7  ;;  %v9569_v61 = vld [vmem:[#allocation7_spill] sm:$0xff] }
 0x306   : > { %v964_v32 = vadd.s32 1, %v8148_v11  ;;  %v3707_v51 = vxor.u32 2147483648, %v6777_v24  ;;  %v3710_v26 = vxor.u32 2147483648, %v6763_v34  ;;  %v8179_v45 = vsel %vm8120_vm9, %v7853_v3, %v2759_v63 }
 0x307   : > { %vm4728_vm8 = vcmp.lt.s32.totalorder %v4727_v36, 0  ;;  %v961_v39 = vmul.u32 %v8085_v4, %v945_v47  ;;  %vm963_vm14 = vc.u32 %v8153_v53, %v8147_v10  ;;  %v3704_v7 = vand.u32 3, %v3703_v50 }
 0x308   : > { %v1081_v49 = vsel %vm4728_vm8, 0, %v4727_v36  ;;  %v965_v43 = vsel %vm963_vm14, %v964_v32, %v8148_v11  ;;  %v3811_v58 = vxor.u32 2147483648, %v9568_v56  ;;  %v2654_v29 = vxor.u32 2147483648, %v8167_v22  ;;  %v359_v36 = vpop.permute.xlu0 %358 }
 0x309   : > { %v1082_v46 = vsub.s32 32, %v1081_v49  ;;  %v1086_v18 = vsub.s32 4294967266, %v1081_v49  ;;  %vm9570_vm1 = vcmp.lt.s32.totalorder %v9569_v61, 0  ;;  %v1083_v63 = vshll.u32 %v8112_v60, %v1081_v49 }
 0x30a   : > { %v3801_v38 = vsel %vm9570_vm1, %v3800_v33, %v9567_v13  ;;  %v966_v4 = vadd.s32 %v965_v43, %v961_v39  ;;  %vm3705_vm0 = vcmp.lt.s32.totalorder %v3704_v7, 2  ;;  %vm3706_vm3 = vcmp.eq.s32.totalorder %v3704_v7, 0 }
 0x30b   : > { %v1084_v47 = vshrl.u32 %v1066_v41, %v1082_v46  ;;  %v1087_v44 = vadd.s32 127, %v1086_v18  ;;  %v3708_v11 = vsel %vm3706_vm3, %v6763_v34, %v3707_v51  ;;  %vm3709_vm8 = vcmp.eq.s32.totalorder %v3704_v7, 2  ;;  %v9575_v51 = vld [vmem:[#allocation25_spill] sm:$0xff] }
 0x30c   : > { %v967_v17 = vadd.s32 536870912, %v966_v4  ;;  %v3711_v50 = vsel %vm3709_vm8, %v3710_v26, %v6777_v24  ;;  %v3803_v12 = vsel %vm6497_vm6, 0, %v3801_v38  ;;  %v2032_v3 = vsub.s32 4, %v9572_v9  ;;  %v9576_v24 = vld [vmem:[#allocation12_spill] sm:$0xff]  ;;  %v284_v38 = vpop.permute.xlu1 %283 }
 0x30d   : > { %vm9323_vm14 = vcmp.lt.s32.totalorder %v7890_v19, 0  ;;  %v1085_v60 = vor.u32 %v1084_v47, %v1083_v63  ;;  %v1088_v13 = vshll.u32 %v1087_v44, 23  ;;  %v3712_v33 = vsel %vm3705_vm0, %v3708_v11, %v3711_v50 }
 0x30e   : > { %v3807_v39 = vadd.s32 3, %v3803_v12  ;;  %v8197_v41 = vshrl.u32 %v967_v17, 30  ;;  %vm9574_vm3 = vweird.f32 %v9556_v40  ;;  %v3814_v49 = vxor.u32 2147483648, %v9575_v51  ;;  %v8205_v43 = vpop.eup %5343  ;;  %v9583_v17 = vld [vmem:[#allocation37_spill] sm:$0xff] }
 0x30f   : > { %v3713_v34 = vsel %vm9574_vm3, nan, %v3712_v33  ;;  %vm9577_vm1 = vcmp.lt.s32.totalorder %v9576_v24, 0  ;;  %v1089_v7 = vor.u32 4788187, %v1088_v13  ;;  %v1092_v46 = vcvt.s32.f32 %v1085_v60 }
 0x310   : > { %9573 = vst [vmem:[#allocation22_spill] sm:$0xff] %v8197_v41  ;;  %v2033_v26 = vsel %vm9577_vm1, %v2032_v3, %v9572_v9  ;;  %v3808_v18 = vand.u32 3, %v3807_v39  ;;  %v9579_v47 = vand.u32 2147483647, %v7890_v19  ;;  %v9580_v40 = vmov 0  ;;  %v9584_v9 = vld [vmem:[#allocation35_spill] sm:$0xff]  ;;  %v8223_v39 = vpop.permute.xlu0 %278 }
 0x311   : > { %v2035_v12 = vsel %vm6692_vm13, 0, %v2033_v26  ;;  %v969_v44 = vshll.u32 %v8197_v41, 30  ;;  %v2043_v3 = vxor.u32 2147483648, %v9583_v17  ;;  %v2046_v50 = vxor.u32 2147483648, %v9584_v9 }
 0x312   : > { %vm8211_vm6 = vcmp.le.f32.partialorder %v9579_v47, 0.7853982  ;;  %v2039_v11 = vadd.s32 3, %v2035_v12  ;;  %v1090_v32 = vand.u32 2147483647, %v1089_v7  ;;  %vm3809_vm0 = vcmp.lt.s32.totalorder %v3808_v18, 2 }
 0x313   : > { %v9581_v40 = vsel %vm8211_vm6, 4294967295, %v9580_v40  ;;  %vm3810_vm8 = vcmp.eq.s32.totalorder %v3808_v18, 0  ;;  %vm3813_vm3 = vcmp.eq.s32.totalorder %v3808_v18, 2  ;;  %v8219_v60 = vsub.s32 %v966_v4, %v969_v44  ;;  %v9585_v47 = vld [vmem:[#allocation14_spill] sm:$0xff]  ;;  %v594_v4 = vpop.permute.xlu1 %593 }
 0x314   : > { %9582 = vst [vmem:[#allocation11_spill] sm:$0xff] %v9581_v40  ;;  %v3812_v13 = vsel %vm3810_vm8, %v9575_v51, %v3811_v58  ;;  %v3815_v33 = vsel %vm3813_vm3, %v3814_v49, %v9568_v56  ;;  %v2040_v26 = vand.u32 3, %v2039_v11  ;;  %v1093_v63 = vmul.f32 %v1092_v46, %v1090_v32  ;;  %v9586_v46 = vld [vmem:[#allocation9_spill] sm:$0xff] }
 0x315   : > { %vm3806_vm13 = vweird.f32 %v9569_v61  ;;  %v3816_v12 = vsel %vm3809_vm0, %v3812_v13, %v3815_v33  ;;  %v2136_v7 = vsub.s32 4, %v9585_v47  ;;  %v972_v41 = vsub.s32 0, %v8219_v60  ;;  %v9590_v13 = vld [vmem:[#allocation32_spill] sm:$0xff] }
 0x316   : > { %v458_v18 = vmul.f32 %v7864_v55, %v359_v36  ;;  %v3817_v8 = vsel %vm3806_vm13, nan, %v3816_v12  ;;  %vm2042_vm1 = vcmp.eq.s32.totalorder %v2040_v26, 0  ;;  %5345 = vcosq.f32 %v8179_v45 }
 0x317   : > { %v4072_v58 = vpack.c.bf16 %v3817_v8, %v3713_v34  ;;  %v2044_v56 = vsel %vm2042_vm1, %v9584_v9, %v2043_v3  ;;  %vm2045_vm8 = vcmp.eq.s32.totalorder %v2040_v26, 2  ;;  %v2655_v61 = vsel %vm9323_vm14, %v2654_v29, %v8167_v22 }
 0x318   : > { %v4722_v51 = vmin.u32 %v972_v41, %v8219_v60  ;;  %v2047_v49 = vsel %vm2045_vm8, %v2046_v50, %v9583_v17  ;;  %vm9587_vm0 = vcmp.lt.s32.totalorder %v9586_v46, 0  ;;  %v1094_v44 = vxor.u32 2147483648, %v1093_v63  ;;  %v589_v17 = vpop.permute.xlu0 %588  ;;  %v9589_v50 = vld [vmem:[#allocation34_spill] sm:$0xff] }
 0x319   : > { %v2137_v36 = vsel %vm9587_vm0, %v2136_v7, %v9585_v47  ;;  %4881 = vmatprep.subr.bf16.mxu0 %v4072_v58  ;;  %4992 = vmatprep.subr.bf16.mxu1 %v4072_v58  ;;  %v443_v8 = vmul.f32 %v7864_v55, %v284_v38  ;;  %vm2041_vm3 = vcmp.lt.s32.totalorder %v2040_v26, 2  ;;  %v962_v22 = vadd.s32 %v8147_v10, %v8153_v53  ;;  %v514_v58 = vpop.permute.xlu1 %513 }
 0x31a   : > { %v2139_v11 = vsel %vm6665_vm15, 0, %v2137_v36  ;;  %v974_v29 = vclz %v4722_v51  ;;  %v2048_v41 = vsel %vm2041_vm3, %v2044_v56, %v2047_v49  ;;  %v2658_v9 = vsel %vm8211_vm6, %v7890_v19, %v2655_v61 }
 0x31b   : > { %v2143_v3 = vadd.s32 3, %v2139_v11  ;;  %v2147_v32 = vxor.u32 2147483648, %v9589_v50  ;;  %v2150_v33 = vxor.u32 2147483648, %v9590_v13  ;;  %v8250_v38 = vadd.f32 %v594_v4, %v8163_v35 }
 0x31c   : > { %v4723_v26 = vadd.s32 4294967294, %v974_v29  ;;  %vm2038_vm15 = vweird.f32 %v9576_v24  ;;  %vm2142_vm1 = vweird.f32 %v9586_v46  ;;  %vm9591_vm13 = vcmp.lt.s32.totalorder %v7893_v14, 0 }
 0x31d   : > { %v2144_v10 = vand.u32 3, %v2143_v3  ;;  %v1095_v53 = vsel %vm9591_vm13, %v1094_v44, %v1093_v63  ;;  %v2049_v12 = vsel %vm2038_vm15, nan, %v2048_v41  ;;  %v2469_v47 = vand.u32 2139095040, %v8250_v38 }
 0x31e   : > { %v8257_v7 = vadd.f32 %v589_v17, %v458_v18  ;;  %vm4724_vm8 = vcmp.lt.s32.totalorder %v4723_v26, 0  ;;  %v9326_v35 = vand.u32 2147483647, %v8250_v38  ;;  %v8262_v49 = vadd.f32 %v514_v58, %v443_v8 }
 0x31f   : > { %vm2146_vm0 = vcmp.eq.s32.totalorder %v2144_v10, 0  ;;  %vm2149_vm3 = vcmp.eq.s32.totalorder %v2144_v10, 2  ;;  %v977_v56 = vsel %vm4724_vm8, 0, %v4723_v26  ;;  %vm2145_vm14 = vcmp.lt.s32.totalorder %v2144_v10, 2 }
 0x320   : > { %v2148_v24 = vsel %vm2146_vm0, %v9590_v13, %v2147_v32  ;;  %v2151_v4 = vsel %vm2149_vm3, %v2150_v33, %v9589_v50  ;;  %v978_v61 = vsub.s32 32, %v977_v56  ;;  %v982_v51 = vsub.s32 4294967266, %v977_v56 }
 0x321   : > { %v2152_v63 = vsel %vm2145_vm14, %v2148_v24, %v2151_v4  ;;  %v979_v18 = vshll.u32 %v8219_v60, %v977_v56  ;;  %v2470_v44 = vshrl.u32 %v2469_v47, 23  ;;  %v9325_v34 = vand.u32 2147483647, %v8257_v7  ;;  %v509_v24 = vpop.permute.xlu0 %508 }
 0x322   : > { %v2153_v36 = vsel %vm2142_vm1, nan, %v2152_v63  ;;  %v980_v11 = vshrl.u32 %v962_v22, %v978_v61  ;;  %v983_v29 = vadd.s32 127, %v982_v51  ;;  %v2473_v3 = vand.u32 8388607, %v9326_v35 }
 0x323   : > { %v4064_v41 = vpack.c.bf16 %v2153_v36, %v2049_v12  ;;  %5347 = vsinq.f32 %v8179_v45  ;;  %v9592_v17 = vand.u32 2147483647, %v7893_v14  ;;  %v9593_v8 = vmov 0  ;;  %v8278_v50 = vpop.eup %5345 }
 0x324   : > { %v4781_v60 = vadd.s32 4294967169, %v2470_v44  ;;  %v2365_v46 = vand.u32 2139095040, %v8257_v7  ;;  %9596 = vst [vmem:[#allocation7_spill] sm:$0xff] %v8278_v50  ;;  %5349 = vcosq.f32 %v2658_v9  ;;  %v981_v32 = vor.u32 %v980_v11, %v979_v18 }
 0x325   : > { %vm8273_vm14 = vcmp.le.f32.partialorder %v9592_v17, 0.7853982  ;;  %v984_v13 = vshll.u32 %v983_v29, 23  ;;  %4882 = vmatpush3.bf16.msra.mxu0 %v4064_v41  ;;  %5000 = vmatpush3.bf16.msra.mxu1 %v4064_v41  ;;  %5351 = vsinq.f32 %v2658_v9  ;;  %v442_v45 = vmul.f32 %v7864_v55, %v8223_v39 }
 0x326   : > { %v9594_v8 = vsel %vm8273_vm14, 4294967295, %v9593_v8  ;;  %v1098_v22 = vsel %vm8273_vm14, %v7893_v14, %v1095_v53  ;;  %v2476_v33 = vadd.s32 1, %v4781_v60  ;;  %v2366_v26 = vshrl.u32 %v2365_v46, 23 }
 0x327   : > { %9595 = vst [vmem:[#allocation26_spill] sm:$0xff] %v9594_v8  ;;  %v985_v10 = vor.u32 4788187, %v984_v13  ;;  %v2474_v12 = vor.u32 8388608, %v2473_v3  ;;  %v8287_v47 = vand.u32 8388607, %v9325_v34  ;;  %5353 = vcosq.f32 %v1098_v22 }
 0x328   : > { %v805_v58 = vand.u32 2139095040, %v8262_v49  ;;  %vm2477_vm15 = vcmp.gt.s32.totalorder %v2476_v33, 0  ;;  %v4777_v53 = vadd.s32 4294967169, %v2366_v26  ;;  %v9324_v56 = vand.u32 2147483647, %v8262_v49 }
 0x329   : > { %v986_v9 = vand.u32 2147483647, %v985_v10  ;;  %v988_v4 = vcvt.s32.f32 %v981_v32  ;;  %v2478_v61 = vsel %vm2477_vm15, %v2476_v33, 0  ;;  %5355 = vsinq.f32 %v1098_v22 }
 0x32a   : > { %v806_v55 = vshrl.u32 %v805_v58, 23  ;;  %v2480_v39 = vand.u32 31, %v2478_v61  ;;  %v8291_v63 = vshll.u32 %v2474_v12, 8  ;;  %v2370_v18 = vor.u32 8388608, %v8287_v47 }
 0x32b   : > { %v989_v51 = vmul.f32 %v988_v4, %v986_v9  ;;  %v8294_v36 = vadd.f32 %v509_v24, %v442_v45  ;;  %v2479_v44 = vshrl.u32 %v2478_v61, 5  ;;  %v2372_v29 = vadd.s32 1, %v4777_v53 }
 0x32c   : > { %v2481_v11 = vsub.s32 32, %v2480_v39  ;;  %v8298_v41 = vand.u32 8388607, %v9324_v56  ;;  %v2483_v3 = vshll.u32 %v9364_v25, %v2480_v39  ;;  %v2486_v17 = vshll.u32 %v9369_v5, %v2480_v39 }
 0x32d   : > { %v2489_v60 = vshll.u32 %v9359_v30, %v2480_v39  ;;  %v4717_v46 = vadd.s32 4294967169, %v806_v55  ;;  %v990_v22 = vxor.u32 2147483648, %v989_v51  ;;  %vm9335_vm1 = vcmp.lt.s32.totalorder %v7935_v20, 0 }
 0x32e   : > { %v2484_v32 = vshrl.u32 %v9369_v5, %v2481_v11  ;;  %v2487_v13 = vshrl.u32 %v9359_v30, %v2481_v11  ;;  %v2490_v45 = vshrl.u32 %v9360_v27, %v2481_v11  ;;  %v2492_v33 = vshll.u32 %v9360_v27, %v2480_v39 }
 0x32f   : > { %v2493_v26 = vshrl.u32 %v9361_v48, %v2481_v11  ;;  %v2495_v10 = vshll.u32 %v9361_v48, %v2480_v39  ;;  %v2496_v12 = vshrl.u32 %v9362_v31, %v2481_v11  ;;  %v2482_v47 = vshrl.u32 %v9364_v25, %v2481_v11 }
 0x330   : > { %v2485_v58 = vor.u32 %v2484_v32, %v2483_v3  ;;  %v2488_v53 = vor.u32 %v2487_v13, %v2486_v17  ;;  %v2491_v24 = vor.u32 %v2490_v45, %v2489_v60  ;;  %v8312_v9 = vpop.eup %5347  ;;  %vm2498_vm13 = vcmp.lt.s32.totalorder %v2479_v44, 1 }
 0x331   : > { %9597 = vst [vmem:[#allocation20_spill] sm:$0xff] %v8312_v9  ;;  %v2494_v4 = vor.u32 %v2493_v26, %v2492_v33  ;;  %v2497_v61 = vor.u32 %v2496_v12, %v2495_v10  ;;  %vm2499_vm8 = vcmp.lt.s32.totalorder %v2479_v44, 2  ;;  %v8314_v55 = vpop.eup %5349  ;;  %vm2500_vm0 = vcmp.lt.s32.totalorder %v2479_v44, 3 }
 0x332   : > { %9598 = vst [vmem:[#allocation18_spill] sm:$0xff] %v8314_v55  ;;  %vm2501_vm3 = vcmp.lt.s32.totalorder %v2479_v44, 4  ;;  %v2502_v56 = vsel %vm2498_vm13, %v2482_v47, %v2485_v58  ;;  %v2506_v34 = vsel %vm2498_vm13, %v2485_v58, %v2488_v53  ;;  %v8316_v39 = vpop.eup %5351  ;;  %v2510_v11 = vsel %vm2498_vm13, %v2488_v53, %v2491_v24 }
 0x333   : > { %9599 = vst [vmem:[#allocation25_spill] sm:$0xff] %v8316_v39  ;;  %v2503_v35 = vsel %vm2501_vm3, %v2491_v24, 2102212464  ;;  %v2507_v8 = vsel %vm2501_vm3, %v2494_v4, 920167782  ;;  %vm2373_vm15 = vcmp.gt.s32.totalorder %v2372_v29, 0  ;;  %v991_v44 = vsel %vm9335_vm1, %v990_v22, %v989_v51 }
 0x334   : > { %v2511_v3 = vsel %vm2501_vm3, %v2497_v61, 1326507024  ;;  %v2504_v17 = vsel %vm2500_vm0, %v2488_v53, %v2503_v35  ;;  %v2508_v60 = vsel %vm2500_vm0, %v2491_v24, %v2507_v8  ;;  %v8318_v13 = vpop.eup %5353  ;;  %v2374_v10 = vsel %vm2373_vm15, %v2372_v29, 0 }
 0x335   : > { %v2512_v32 = vsel %vm2500_vm0, %v2494_v4, %v2511_v3  ;;  %9600 = vst [vmem:[#allocation12_spill] sm:$0xff] %v8318_v13  ;;  %v2505_v45 = vsel %vm2499_vm8, %v2502_v56, %v2504_v17  ;;  %v2509_v33 = vsel %vm2499_vm8, %v2506_v34, %v2508_v60  ;;  %v2376_v8 = vand.u32 31, %v2374_v10 }
 0x336   : > { %v2513_v26 = vsel %vm2499_vm8, %v2510_v11, %v2512_v32  ;;  %v8328_v58 = vmul.u32.u64.low %v8291_v63, %v2509_v33  ;;  %v8329_v61 = vmul.u32.u64.high %v8291_v63, %v2509_v33, %v8328_v58  ;;  %v8332_v35 = vpop.eup %5355  ;;  %v8334_v53 = vshll.u32 %v2370_v18, 8 }
 0x337   : > { %v8324_v12 = vmul.u32.u64.low %v8291_v63, %v2513_v26  ;;  %v8325_v47 = vmul.u32.u64.high %v8291_v63, %v2513_v26, %v8324_v12  ;;  %9601 = vst [vmem:[#allocation29_spill] sm:$0xff] %v8332_v35  ;;  %v810_v56 = vor.u32 8388608, %v8298_v41  ;;  %v2521_v29 = vmul.u32 %v8291_v63, %v2505_v45 }
 0x338   : > { %v2375_v24 = vshrl.u32 %v2374_v10, 5  ;;  %v812_v4 = vadd.s32 1, %v4717_v46  ;;  %v2377_v11 = vsub.s32 32, %v2376_v8  ;;  %v2379_v3 = vshll.u32 %v9364_v25, %v2376_v8 }
 0x339   : > { %v2382_v17 = vshll.u32 %v9369_v5, %v2376_v8  ;;  %v701_v60 = vand.u32 2139095040, %v8294_v36  ;;  %vm2523_vm13 = vc.u32 %v8325_v47, %v8328_v58  ;;  %v2524_v18 = vadd.s32 1, %v8329_v61 }
 0x33a   : > { %v2385_v41 = vshll.u32 %v9359_v30, %v2376_v8  ;;  %v2388_v51 = vshll.u32 %v9360_v27, %v2376_v8  ;;  %v2378_v63 = vshrl.u32 %v9364_v25, %v2377_v11  ;;  %v2380_v46 = vshrl.u32 %v9369_v5, %v2377_v11 }
 0x33b   : > { %v2383_v22 = vshrl.u32 %v9359_v30, %v2377_v11  ;;  %v2386_v32 = vshrl.u32 %v9360_v27, %v2377_v11  ;;  %v9602_v45 = vand.u32 2147483647, %v7935_v20  ;;  %v2525_v26 = vsel %vm2523_vm13, %v2524_v18, %v8329_v61 }
 0x33c   : > { %v2389_v10 = vshrl.u32 %v9361_v48, %v2377_v11  ;;  %v2391_v12 = vshll.u32 %v9361_v48, %v2376_v8  ;;  %v2392_v34 = vshrl.u32 %v9362_v31, %v2377_v11  ;;  %v2526_v13 = vadd.s32 %v2525_v26, %v2521_v29 }
 0x33d   : > { %vm8355_vm8 = vcmp.le.f32.partialorder %v9602_v45, 0.7853982  ;;  %v2381_v14 = vor.u32 %v2380_v46, %v2379_v3  ;;  %v2384_v35 = vor.u32 %v2383_v22, %v2382_v17  ;;  %v2387_v50 = vor.u32 %v2386_v32, %v2385_v41 }
 0x33e   : > { %v2390_v9 = vor.u32 %v2389_v10, %v2388_v51  ;;  %v2393_v55 = vor.u32 %v2392_v34, %v2391_v12  ;;  %vm2394_vm0 = vcmp.lt.s32.totalorder %v2375_v24, 1  ;;  %vm2395_vm3 = vcmp.lt.s32.totalorder %v2375_v24, 2 }
 0x33f   : > { %v2527_v45 = vadd.s32 536870912, %v2526_v13  ;;  %vm2396_vm15 = vcmp.lt.s32.totalorder %v2375_v24, 3  ;;  %vm2397_vm1 = vcmp.lt.s32.totalorder %v2375_v24, 4  ;;  %v2398_v39 = vsel %vm2394_vm0, %v2378_v63, %v2381_v14 }
 0x340   : > { %v2399_v40 = vsel %vm2397_vm1, %v2387_v50, 2102212464  ;;  %v2402_v61 = vsel %vm2394_vm0, %v2381_v14, %v2384_v35  ;;  %v2403_v18 = vsel %vm2397_vm1, %v2390_v9, 920167782  ;;  %v2406_v19 = vsel %vm2394_vm0, %v2384_v35, %v2387_v50 }
 0x341   : > { %v8363_v6 = vshrl.u32 %v2527_v45, 30  ;;  %v2400_v8 = vsel %vm2396_vm15, %v2384_v35, %v2399_v40  ;;  %v2404_v11 = vsel %vm2396_vm15, %v2387_v50, %v2403_v18  ;;  %v2407_v29 = vsel %vm2397_vm1, %v2393_v55, 1326507024  ;;  %v9605_v55 = vld [vmem:[#allocation21_spill] sm:$0xff] }
 0x342   : > { %v2401_v3 = vsel %vm2395_vm3, %v2398_v39, %v2400_v8  ;;  %v2405_v17 = vsel %vm2395_vm3, %v2402_v61, %v2404_v11  ;;  %v2408_v34 = vsel %vm2396_vm15, %v2390_v9, %v2407_v29  ;;  %vm813_vm13 = vcmp.gt.s32.totalorder %v812_v4, 0 }
 0x343   : > { %v2529_v41 = vshll.u32 %v8363_v6, 30  ;;  %v2409_v51 = vsel %vm2395_vm3, %v2406_v19, %v2408_v34  ;;  %v8370_v63 = vmul.u32.u64.low %v8334_v53, %v2405_v17  ;;  %v8371_v14 = vmul.u32.u64.high %v8334_v53, %v2405_v17, %v8370_v63 }
 0x344   : > { %v8375_v46 = vmul.u32.u64.low %v8334_v53, %v2409_v51  ;;  %v8376_v40 = vmul.u32.u64.high %v8334_v53, %v2409_v51, %v8375_v46  ;;  %v814_v50 = vsel %vm813_vm13, %v812_v4, 0  ;;  %v3488_v39 = vsub.s32 4, %v9605_v55 }
 0x345   : > { %v8382_v9 = vsel %vm8355_vm8, %v7935_v20, %v991_v44  ;;  %v8384_v35 = vsub.s32 %v2526_v13, %v2529_v41  ;;  %v816_v19 = vand.u32 31, %v814_v50  ;;  %v8386_v24 = vshll.u32 %v810_v56, 8 }
 0x346   : > { %v2522_v22 = vadd.s32 %v8328_v58, %v8325_v47  ;;  %v2417_v32 = vmul.u32 %v8334_v53, %v2401_v3  ;;  %v8391_v26 = vshrl.u32 %v814_v50, 5  ;;  %v9606_v4 = vand.u32 2147483647, %v8294_v36 }
 0x347   : > { %v2532_v12 = vsub.s32 0, %v8384_v35  ;;  %v2420_v44 = vadd.s32 1, %v8371_v14  ;;  %v817_v13 = vsub.s32 32, %v816_v19  ;;  %v702_v45 = vshrl.u32 %v701_v60, 23 }
 0x348   : > { %v8395_v10 = vand.u32 8388607, %v9606_v4  ;;  %vm2419_vm1 = vc.u32 %v8376_v40, %v8370_v63  ;;  %v819_v56 = vshll.u32 %v9364_v25, %v816_v19  ;;  %v822_v47 = vshll.u32 %v9369_v5, %v816_v19 }
 0x349   : > { %vm9607_vm0 = vcmp.lt.s32.totalorder %v6352_v62, 0  ;;  %v4782_v53 = vmin.u32 %v2532_v12, %v8384_v35  ;;  %v2421_v61 = vsel %vm2419_vm1, %v2420_v44, %v8371_v14  ;;  %v820_v18 = vshrl.u32 %v9369_v5, %v817_v13 }
 0x34a   : > { %v8406_v58 = vsel %vm9607_vm0, %v3488_v39, %v9605_v55  ;;  %v825_v60 = vshll.u32 %v9359_v30, %v816_v19  ;;  %v2422_v8 = vadd.s32 %v2421_v61, %v2417_v32  ;;  %v823_v11 = vshrl.u32 %v9359_v30, %v817_v13 }
 0x34b   : > { %v826_v29 = vshrl.u32 %v9360_v27, %v817_v13  ;;  %v828_v3 = vshll.u32 %v9360_v27, %v816_v19  ;;  %v2534_v17 = vclz %v4782_v53  ;;  %v821_v34 = vor.u32 %v820_v18, %v819_v56 }
 0x34c   : > { %v829_v41 = vshrl.u32 %v9361_v48, %v817_v13  ;;  %v831_v51 = vshll.u32 %v9361_v48, %v816_v19  ;;  %v2423_v46 = vadd.s32 536870912, %v2422_v8  ;;  %v824_v50 = vor.u32 %v823_v11, %v822_v47 }
 0x34d   : > { %v827_v14 = vor.u32 %v826_v29, %v825_v60  ;;  %v832_v55 = vshrl.u32 %v9362_v31, %v817_v13  ;;  %v4783_v39 = vadd.s32 4294967294, %v2534_v17  ;;  %v818_v32 = vshrl.u32 %v9364_v25, %v817_v13 }
 0x34e   : > { %v830_v4 = vor.u32 %v829_v41, %v828_v3  ;;  %vm834_vm3 = vcmp.lt.s32.totalorder %v8391_v26, 1  ;;  %v8420_v12 = vshrl.u32 %v2423_v46, 30  ;;  %vm835_vm15 = vcmp.lt.s32.totalorder %v8391_v26, 2 }
 0x34f   : > { %v833_v44 = vor.u32 %v832_v55, %v831_v51  ;;  %vm837_vm13 = vcmp.lt.s32.totalorder %v8391_v26, 4  ;;  %vm4784_vm1 = vcmp.lt.s32.totalorder %v4783_v39, 0  ;;  %vm836_vm0 = vcmp.lt.s32.totalorder %v8391_v26, 3 }
 0x350   : > { %v838_v19 = vsel %vm834_vm3, %v818_v32, %v821_v34  ;;  %v839_v56 = vsel %vm837_vm13, %v827_v14, 2102212464  ;;  %v2537_v13 = vsel %vm4784_vm1, 0, %v4783_v39  ;;  %v2425_v47 = vshll.u32 %v8420_v12, 30 }
 0x351   : > { %v842_v53 = vsel %vm834_vm3, %v821_v34, %v824_v50  ;;  %v843_v61 = vsel %vm837_vm13, %v830_v4, 920167782  ;;  %v2538_v18 = vsub.s32 32, %v2537_v13  ;;  %v2539_v60 = vshll.u32 %v8384_v35, %v2537_v13 }
 0x352   : > { %v2542_v11 = vsub.s32 4294967266, %v2537_v13  ;;  %v840_v29 = vsel %vm836_vm0, %v824_v50, %v839_v56  ;;  %v8437_v3 = vsub.s32 %v2422_v8, %v2425_v47  ;;  %v844_v17 = vsel %vm836_vm0, %v827_v14, %v843_v61 }
 0x353   : > { %v846_v41 = vsel %vm834_vm3, %v824_v50, %v827_v14  ;;  %v847_v34 = vsel %vm837_vm13, %v833_v44, 1326507024  ;;  %v2540_v51 = vshrl.u32 %v2522_v22, %v2538_v18  ;;  %v845_v35 = vsel %vm835_vm15, %v842_v53, %v844_v17 }
 0x354   : > { %v2543_v46 = vadd.s32 127, %v2542_v11  ;;  %v848_v55 = vsel %vm836_vm0, %v830_v4, %v847_v34  ;;  %v2428_v8 = vsub.s32 0, %v8437_v3  ;;  %5357 = vcosq.f32 %v8382_v9  ;;  %v9609_v34 = vld [vmem:[#allocation48_spill] sm:$0xff] }
 0x355   : > { %v849_v39 = vsel %vm835_vm15, %v846_v41, %v848_v55  ;;  %v8453_v32 = vmul.u32.u64.low %v8386_v24, %v845_v35  ;;  %v8454_v56 = vmul.u32.u64.high %v8386_v24, %v845_v35, %v8453_v32  ;;  %v2541_v50 = vor.u32 %v2540_v51, %v2539_v60  ;;  %v9610_v55 = vld [vmem:[#allocation19_spill] sm:$0xff] }
 0x356   : > { %v2544_v14 = vshll.u32 %v2543_v46, 23  ;;  %v8457_v22 = vmul.u32.u64.low %v8386_v24, %v849_v39  ;;  %v8458_v44 = vmul.u32.u64.high %v8386_v24, %v849_v39, %v8457_v22  ;;  %v4778_v13 = vmin.u32 %v2428_v8, %v8437_v3  ;;  %v5203_v39 = vld [vmem:[%s9124_s3 + $0x4] ss:$8 sps:$4 sm:$0xff]  }
 0x357   : > { %v841_v4 = vsel %vm835_vm15, %v838_v19, %v840_v29  ;;  %v4713_v47 = vadd.s32 4294967169, %v702_v45  ;;  %5359 = vsinq.f32 %v8382_v9  ;;  %vm9341_vm3 = vcmp.lt.s32.totalorder %v8250_v38, 0  ;;  %4458 = vmatprep.mubr.bf16.mxu0 %v5203_v39 }
 0x358   : > { %v2545_v53 = vor.u32 4788187, %v2544_v14  ;;  %v706_v61 = vor.u32 8388608, %v8395_v10  ;;  %v3491_v60 = vsel %vm6916_vm10, 0, %v8406_v58  ;;  %v2430_v11 = vclz %v4778_v13 }
 0x359   : > { %v860_v17 = vadd.s32 1, %v8454_v56  ;;  %v708_v41 = vadd.s32 1, %v4713_v47  ;;  %v2548_v19 = vcvt.s32.f32 %v2541_v50  ;;  %v857_v45 = vmul.u32 %v8386_v24, %v841_v4  ;;  %v9611_v4 = vld [vmem:[#allocation46_spill] sm:$0xff] }
 0x35a   : > { %v2546_v26 = vand.u32 2147483647, %v2545_v53  ;;  %vm859_vm15 = vc.u32 %v8458_v44, %v8453_v32  ;;  %v4779_v9 = vadd.s32 4294967294, %v2430_v11  ;;  %v3495_v10 = vadd.s32 3, %v3491_v60  ;;  %v5206_v53 = vld [vmem:[%s9124_s3 + $0x84] ss:$8 sps:$4 sm:$0xff]  }
 0x35b   : > { %v861_v29 = vsel %vm859_vm15, %v860_v17, %v8454_v56  ;;  %vm709_vm13 = vcmp.gt.s32.totalorder %v708_v41, 0  ;;  %v3592_v8 = vsub.s32 4, %v9610_v55  ;;  %v2418_v50 = vadd.s32 %v8370_v63, %v8376_v40  ;;  %4522 = vmatprep.mubr.bf16.mxu1 %v5206_v53 }
 0x35c   : > { %v2549_v46 = vmul.f32 %v2548_v19, %v2546_v26  ;;  %v862_v35 = vadd.s32 %v861_v29, %v857_v45  ;;  %v710_v58 = vsel %vm709_vm13, %v708_v41, 0  ;;  %vm4780_vm10 = vcmp.lt.s32.totalorder %v4779_v9, 0  ;;  %v9612_v41 = vld [vmem:[#allocation15_spill] sm:$0xff] }
 0x35d   : > { %v712_v24 = vand.u32 31, %v710_v58  ;;  %v8481_v14 = vshll.u32 %v706_v61, 8  ;;  %v2433_v56 = vsel %vm4780_vm10, 0, %v4779_v9  ;;  %v8488_v11 = vadd.s32 %v8453_v32, %v8458_v44 }
 0x35e   : > { %v2550_v22 = vxor.u32 2147483648, %v2549_v46  ;;  %v863_v13 = vadd.s32 536870912, %v862_v35  ;;  %v2434_v18 = vsub.s32 32, %v2433_v56  ;;  %v2438_v60 = vsub.s32 4294967266, %v2433_v56 }
 0x35f   : > { %v713_v63 = vsub.s32 32, %v712_v24  ;;  %v711_v61 = vshrl.u32 %v710_v58, 5  ;;  %v8492_v17 = vand.u32 3, %v3495_v10  ;;  %vm9613_vm1 = vcmp.lt.s32.totalorder %v9612_v41, 0 }
 0x360   : > { %v8490_v40 = vshrl.u32 %v863_v13, 30  ;;  %v8497_v26 = vsel %vm9613_vm1, %v3592_v8, %v9610_v55  ;;  %v2551_v19 = vsel %vm9341_vm3, %v2550_v22, %v2549_v46  ;;  %v2435_v45 = vshll.u32 %v8437_v3, %v2433_v56 }
 0x361   : > { %v2436_v9 = vshrl.u32 %v2418_v50, %v2434_v18  ;;  %v2439_v32 = vadd.s32 127, %v2438_v60  ;;  %v9614_v44 = vand.u32 2147483647, %v8250_v38  ;;  %v9615_v29 = vmov 0  ;;  %v8514_v22 = vpop.eup %5357 }
 0x362   : > { %v865_v10 = vshll.u32 %v8490_v40, 30  ;;  %v715_v58 = vshll.u32 %v9364_v25, %v712_v24  ;;  %v716_v55 = vshrl.u32 %v9369_v5, %v713_v63  ;;  %v719_v8 = vshrl.u32 %v9359_v30, %v713_v63 }
 0x363   : > { %vm8504_vm0 = vcmp.le.f32.partialorder %v9614_v44, 0.7853982  ;;  %v2437_v39 = vor.u32 %v2436_v9, %v2435_v45  ;;  %v2440_v46 = vshll.u32 %v2439_v32, 23  ;;  %v714_v3 = vshrl.u32 %v9364_v25, %v713_v63 }
 0x364   : > { %v9616_v29 = vsel %vm8504_vm0, 4294967295, %v9615_v29  ;;  %v718_v50 = vshll.u32 %v9369_v5, %v712_v24  ;;  %v8516_v56 = vsub.s32 %v862_v35, %v865_v10  ;;  %v717_v13 = vor.u32 %v716_v55, %v715_v58  ;;  %v8520_v60 = vpop.eup %5359 }
 0x365   : > { %v721_v53 = vshll.u32 %v9359_v30, %v712_v24  ;;  %v722_v18 = vshrl.u32 %v9360_v27, %v713_v63  ;;  %v2441_v44 = vor.u32 4788187, %v2440_v46  ;;  %v724_v45 = vshll.u32 %v9360_v27, %v712_v24 }
 0x366   : > { %v720_v47 = vor.u32 %v719_v8, %v718_v50  ;;  %v725_v9 = vshrl.u32 %v9361_v48, %v713_v63  ;;  %v868_v25 = vsub.s32 0, %v8516_v56  ;;  %v727_v32 = vshll.u32 %v9361_v48, %v712_v24 }
 0x367   : > { %v723_v5 = vor.u32 %v722_v18, %v721_v53  ;;  %v728_v35 = vshrl.u32 %v9362_v31, %v713_v63  ;;  %v2442_v10 = vand.u32 2147483647, %v2441_v44  ;;  %v2444_v58 = vcvt.s32.f32 %v2437_v39 }
 0x368   : > { %v726_v30 = vor.u32 %v725_v9, %v724_v45  ;;  %vm730_vm15 = vcmp.lt.s32.totalorder %v711_v61, 1  ;;  %v4718_v55 = vmin.u32 %v868_v25, %v8516_v56  ;;  %vm732_vm10 = vcmp.lt.s32.totalorder %v711_v61, 3 }
 0x369   : > { %v729_v8 = vor.u32 %v728_v35, %v727_v32  ;;  %vm733_vm1 = vcmp.lt.s32.totalorder %v711_v61, 4  ;;  %v2445_v27 = vmul.f32 %v2444_v58, %v2442_v10  ;;  %v734_v46 = vsel %vm730_vm15, %v714_v3, %v717_v13 }
 0x36a   : > { %v735_v50 = vsel %vm733_vm1, %v723_v5, 2102212464  ;;  %v738_v51 = vsel %vm730_vm15, %v717_v13, %v720_v47  ;;  %v870_v53 = vclz %v4718_v55  ;;  %v739_v24 = vsel %vm733_vm1, %v726_v30, 920167782 }
 0x36b   : > { %v736_v48 = vsel %vm732_vm10, %v720_v47, %v735_v50  ;;  %v742_v31 = vsel %vm730_vm15, %v720_v47, %v723_v5  ;;  %v2554_v63 = vsel %vm8504_vm0, %v8250_v38, %v2551_v19  ;;  %vm731_vm3 = vcmp.lt.s32.totalorder %v711_v61, 2 }
 0x36c   : > { %v740_v39 = vsel %vm732_vm10, %v723_v5, %v739_v24  ;;  %v743_v18 = vsel %vm733_vm1, %v729_v8, 1326507024  ;;  %v9617_v44 = vand.u32 2147483647, %v8257_v7  ;;  %v9618_v45 = vmov 0 }
 0x36d   : > { %v4719_v3 = vadd.s32 4294967294, %v870_v53  ;;  %v737_v13 = vsel %vm731_vm3, %v734_v46, %v736_v48  ;;  %v741_v9 = vsel %vm731_vm3, %v738_v51, %v740_v39  ;;  %v744_v25 = vsel %vm732_vm10, %v726_v30, %v743_v18 }
 0x36e   : > { %vm8536_vm13 = vcmp.le.f32.partialorder %v9617_v44, 0.7853982  ;;  %v2446_v47 = vxor.u32 2147483648, %v2445_v27  ;;  %v745_v32 = vsel %vm731_vm3, %v742_v31, %v744_v25  ;;  %vm3497_vm0 = vcmp.lt.s32.totalorder %v8492_v17, 2  ;;  %v9625_v25 = vld [vmem:[#allocation44_spill] sm:$0xff] }
 0x36f   : > { %v9619_v45 = vsel %vm8536_vm13, 4294967295, %v9618_v45  ;;  %v8542_v35 = vmul.u32.u64.low %v8481_v14, %v741_v9  ;;  %v8543_v19 = vmul.u32.u64.high %v8481_v14, %v741_v9, %v8542_v35  ;;  %vm4720_vm1 = vcmp.lt.s32.totalorder %v4719_v3, 0  ;;  %v9624_v9 = vld [vmem:[#allocation45_spill] sm:$0xff] }
 0x370   : > { %v8548_v5 = vmul.u32.u64.low %v8481_v14, %v745_v32  ;;  %v8549_v10 = vmul.u32.u64.high %v8481_v14, %v745_v32, %v8548_v5  ;;  %5361 = vcosq.f32 %v2554_v63  ;;  %v873_v51 = vsel %vm4720_vm1, 0, %v4719_v3  ;;  %v9626_v32 = vld [vmem:[#allocation30_spill] sm:$0xff] }
 0x371   : > { %v753_v61 = vmul.u32 %v8481_v14, %v737_v13  ;;  %vm3498_vm3 = vcmp.eq.s32.totalorder %v8492_v17, 0  ;;  %v874_v58 = vsub.s32 32, %v873_v51  ;;  %v878_v30 = vsub.s32 4294967266, %v873_v51 }
 0x372   : > { %v9620_v55 = vxor.u32 2147483648, %v9609_v34  ;;  %vm3501_vm10 = vcmp.eq.s32.totalorder %v8492_v17, 2  ;;  %vm9621_vm15 = vcmp.lt.s32.totalorder %v8257_v7, 0  ;;  %v756_v50 = vadd.s32 1, %v8543_v19 }
 0x373   : > { %v2447_v46 = vsel %vm9621_vm15, %v2446_v47, %v2445_v27  ;;  %v9622_v53 = vxor.u32 2147483648, %v9611_v4  ;;  %v3595_v24 = vsel %vm6784_vm11, 0, %v8497_v26  ;;  %v875_v31 = vshll.u32 %v8516_v56, %v873_v51 }
 0x374   : > { %v3500_v8 = vsel %vm3498_vm3, %v9611_v4, %v9620_v55  ;;  %v876_v39 = vshrl.u32 %v8488_v11, %v874_v58  ;;  %v879_v18 = vadd.s32 127, %v878_v30  ;;  %vm755_vm1 = vc.u32 %v8549_v10, %v8542_v35 }
 0x375   : > { %v3503_v48 = vsel %vm3501_vm10, %v9622_v53, %v9609_v34  ;;  %5363 = vsinq.f32 %v2554_v63  ;;  %v757_v27 = vsel %vm755_vm1, %v756_v50, %v8543_v19  ;;  %v3599_v4 = vadd.s32 3, %v3595_v24  ;;  %v9630_v53 = vld [vmem:[#allocation23_spill] sm:$0xff] }
 0x376   : > { %v3504_v44 = vsel %vm3497_vm0, %v3500_v8, %v3503_v48  ;;  %v877_v34 = vor.u32 %v876_v39, %v875_v31  ;;  %v880_v3 = vshll.u32 %v879_v18, 23  ;;  %v758_v13 = vadd.s32 %v757_v27, %v753_v61  ;;  %v9631_v27 = vld [vmem:[#allocation58_spill] sm:$0xff] }
 0x377   : > { %v3603_v26 = vxor.u32 2147483648, %v9624_v9  ;;  %v2450_v11 = vsel %vm8536_vm13, %v8257_v7, %v2447_v46  ;;  %v3600_v56 = vand.u32 3, %v3599_v4  ;;  %v3606_v47 = vxor.u32 2147483648, %v9625_v25  ;;  %v9632_v4 = vld [vmem:[#allocation17_spill] sm:$0xff]  ;;  %v9639_v46 = vld [vmem:[#allocation28_spill] sm:$0xff] }
 0x378   : > { %v1824_v63 = vsub.s32 4, %v9626_v32  ;;  %v881_v5 = vor.u32 4788187, %v880_v3  ;;  %v884_v19 = vcvt.s32.f32 %v877_v34  ;;  %v759_v51 = vadd.s32 536870912, %v758_v13 }
 0x379   : > { %vm9627_vm11 = vweird.f32 %v6352_v62  ;;  %vm3601_vm0 = vcmp.lt.s32.totalorder %v3600_v56, 2  ;;  %vm3602_vm15 = vcmp.eq.s32.totalorder %v3600_v56, 0  ;;  %vm3605_vm3 = vcmp.eq.s32.totalorder %v3600_v56, 2 }
 0x37a   : > { %v3505_v17 = vsel %vm9627_vm11, nan, %v3504_v44  ;;  %vm9628_vm10 = vcmp.lt.s32.totalorder %v6543_v21, 0  ;;  %v882_v58 = vand.u32 2147483647, %v881_v5  ;;  %v8585_v30 = vshrl.u32 %v759_v51, 30  ;;  %v9636_v5 = vld [vmem:[#allocation38_spill] sm:$0xff] }
 0x37b   : > { %v1825_v61 = vsel %vm9628_vm10, %v1824_v63, %v9626_v32  ;;  %v3604_v55 = vsel %vm3602_vm15, %v9625_v25, %v3603_v26  ;;  %v3607_v8 = vsel %vm3605_vm3, %v3606_v47, %v9624_v9  ;;  %vm9344_vm1 = vcmp.lt.s32.totalorder %v8262_v49, 0  ;;  %v9634_v26 = vld [vmem:[#allocation57_spill] sm:$0xff]  ;;  %v9645_v25 = vld [vmem:[#allocation36_spill] sm:$0xff] }
 0x37c   : > { %vm3598_vm13 = vweird.f32 %v9612_v41  ;;  %v3608_v62 = vsel %vm3601_vm0, %v3604_v55, %v3607_v8  ;;  %v1827_v50 = vsel %vm7031_vm4, 0, %v1825_v61  ;;  %v1928_v48 = vsub.s32 4, %v9630_v53  ;;  %v9638_v8 = vld [vmem:[#allocation49_spill] sm:$0xff] }
 0x37d   : > { %v885_v14 = vmul.f32 %v884_v19, %v882_v58  ;;  %v761_v24 = vshll.u32 %v8585_v30, 30  ;;  %v3609_v31 = vsel %vm3598_vm13, nan, %v3608_v62  ;;  %v1831_v39 = vadd.s32 3, %v1827_v50  ;;  %v8599_v41 = vpop.eup %5361 }
 0x37e   : > { %5365 = vcosq.f32 %v2450_v11  ;;  %v4071_v18 = vpack.c.bf16 %v3609_v31, %v3505_v17  ;;  %v1835_v44 = vxor.u32 2147483648, %v9631_v27  ;;  %vm9633_vm11 = vcmp.lt.s32.totalorder %v9632_v4, 0 }
 0x37f   : > { %v1929_v34 = vsel %vm9633_vm11, %v1928_v48, %v9630_v53  ;;  %v8601_v3 = vsub.s32 %v758_v13, %v761_v24  ;;  %v1832_v9 = vand.u32 3, %v1831_v39  ;;  %v1838_v56 = vxor.u32 2147483648, %v9634_v26  ;;  %v9637_v13 = vld [vmem:[#allocation53_spill] sm:$0xff] }
 0x380   : > { %v1931_v47 = vsel %vm6937_vm12, 0, %v1929_v34  ;;  %5367 = vsinq.f32 %v2450_v11  ;;  %v754_v32 = vadd.s32 %v8542_v35, %v8549_v10  ;;  %4883 = vmatprep.subr.bf16.mxu0 %v4071_v18  ;;  %4993 = vmatprep.subr.bf16.mxu1 %v4071_v18  ;;  %v3280_v19 = vsub.s32 4, %v9636_v5 }
 0x381   : > { %v1935_v63 = vadd.s32 3, %v1931_v47  ;;  %v886_v51 = vxor.u32 2147483648, %v885_v14  ;;  %v764_v17 = vsub.s32 0, %v8601_v3  ;;  %vm1834_vm4 = vcmp.eq.s32.totalorder %v1832_v9, 0 }
 0x382   : > { %v1939_v61 = vxor.u32 2147483648, %v9637_v13  ;;  %v1836_v58 = vsel %vm1834_vm4, %v9634_v26, %v1835_v44  ;;  %vm1837_vm13 = vcmp.eq.s32.totalorder %v1832_v9, 2  ;;  %v1942_v11 = vxor.u32 2147483648, %v9638_v8  ;;  %v8613_v62 = vpop.eup %5363 }
 0x383   : > { %v1936_v55 = vand.u32 3, %v1935_v63  ;;  %v4714_v35 = vmin.u32 %v764_v17, %v8601_v3  ;;  %vm1833_vm12 = vcmp.lt.s32.totalorder %v1832_v9, 2  ;;  %v1839_v10 = vsel %vm1837_vm13, %v1838_v56, %v9631_v27 }
 0x384   : > { %vm9640_vm0 = vcmp.lt.s32.totalorder %v9639_v46, 0  ;;  %vm1830_vm15 = vweird.f32 %v6543_v21  ;;  %v1840_v53 = vsel %vm1833_vm12, %v1836_v58, %v1839_v10  ;;  %vm1934_vm3 = vweird.f32 %v9632_v4  ;;  %v9648_v58 = vld [vmem:[#allocation27_spill] sm:$0xff] }
 0x385   : > { %v3281_v50 = vsel %vm9640_vm0, %v3280_v19, %v9636_v5  ;;  %vm1938_vm10 = vcmp.eq.s32.totalorder %v1936_v55, 0  ;;  %v9641_v48 = vand.u32 2147483647, %v8262_v49  ;;  %v9642_v24 = vmov 0  ;;  %v9646_v5 = vld [vmem:[#allocation63_spill] sm:$0xff] }
 0x386   : > { %v887_v31 = vsel %vm9344_vm1, %v886_v51, %v885_v14  ;;  %v766_v39 = vclz %v4714_v35  ;;  %v1940_v18 = vsel %vm1938_vm10, %v9638_v8, %v1939_v61  ;;  %vm1941_vm4 = vcmp.eq.s32.totalorder %v1936_v55, 2  ;;  %v9647_v51 = vld [vmem:[#allocation60_spill] sm:$0xff]  ;;  %v9652_v10 = vld [vmem:[#allocation59_spill] sm:$0xff] }
 0x387   : > { %vm8624_vm11 = vcmp.le.f32.partialorder %v9641_v48, 0.7853982  ;;  %v1841_v27 = vsel %vm1830_vm15, nan, %v1840_v53  ;;  %vm1937_vm13 = vcmp.lt.s32.totalorder %v1936_v55, 2  ;;  %v1943_v21 = vsel %vm1941_vm4, %v1942_v11, %v9637_v13  ;;  %v9650_v11 = vld [vmem:[#allocation52_spill] sm:$0xff] }
 0x388   : > { %v9643_v24 = vsel %vm8624_vm11, 4294967295, %v9642_v24  ;;  %v3283_v34 = vsel %vm7124_vm2, 0, %v3281_v50  ;;  %v4715_v9 = vadd.s32 4294967294, %v766_v39  ;;  %v1944_v26 = vsel %vm1937_vm13, %v1940_v18, %v1943_v21  ;;  %v9653_v50 = vld [vmem:[#allocation50_spill] sm:$0xff] }
 0x389   : > { %vm3286_vm12 = vweird.f32 %v9639_v46  ;;  %v3287_v56 = vadd.s32 3, %v3283_v34  ;;  %v3384_v47 = vsub.s32 4, %v9645_v25  ;;  %v1945_v14 = vsel %vm1934_vm3, nan, %v1944_v26 }
 0x38a   : > { %v3291_v63 = vxor.u32 2147483648, %v7352_v23  ;;  %v3294_v19 = vxor.u32 2147483648, %v9646_v5  ;;  %v3395_v17 = vxor.u32 2147483648, %v9647_v51  ;;  %vm4716_vm0 = vcmp.lt.s32.totalorder %v4715_v9, 0 }
 0x38b   : > { %v4063_v13 = vpack.c.bf16 %v1945_v14, %v1841_v27  ;;  %v3288_v61 = vand.u32 3, %v3287_v56  ;;  %vm9649_vm2 = vcmp.lt.s32.totalorder %v9648_v58, 0  ;;  %v769_v8 = vsel %vm4716_vm0, 0, %v4715_v9  ;;  %v8648_v48 = vpop.eup %5365 }
 0x38c   : > { %v3385_v55 = vsel %vm9649_vm2, %v3384_v47, %v9645_v25  ;;  %vm9651_vm15 = vnez %v9650_v11  ;;  %v3398_v4 = vxor.u32 2147483648, %v9652_v10  ;;  %v1616_v53 = vsub.s32 4, %v9653_v50 }
 0x38d   : > { %v3387_v35 = vsel %vm9651_vm15, 0, %v3385_v55  ;;  %v770_v39 = vsub.s32 32, %v769_v8  ;;  %v771_v18 = vshll.u32 %v8601_v3, %v769_v8  ;;  %v774_v21 = vsub.s32 4294967266, %v769_v8  ;;  %4884 = vmatpush3.bf16.msra.mxu0 %v4063_v13  ;;  %5001 = vmatpush3.bf16.msra.mxu1 %v4063_v13  ;;  %v8654_v34 = vpop.eup %5367  ;;  %v9655_v13 = vld [vmem:[#allocation66_spill] sm:$0xff] }
 0x38e   : > { %vm3289_vm3 = vcmp.lt.s32.totalorder %v3288_v61, 2  ;;  %vm3290_vm10 = vcmp.eq.s32.totalorder %v3288_v61, 0  ;;  %vm3293_vm4 = vcmp.eq.s32.totalorder %v3288_v61, 2  ;;  %v3391_v27 = vadd.s32 3, %v3387_v35 }
 0x38f   : > { %vm9654_vm13 = vcmp.lt.s32.totalorder %v6923_v1, 0  ;;  %v772_v9 = vshrl.u32 %v754_v32, %v770_v39  ;;  %v775_v26 = vadd.s32 127, %v774_v21  ;;  %v3292_v56 = vsel %vm3290_vm10, %v9646_v5, %v3291_v63 }
 0x390   : > { %v1617_v44 = vsel %vm9654_vm13, %v1616_v53, %v9653_v50  ;;  %v3295_v25 = vsel %vm3293_vm4, %v3294_v19, %v7352_v23  ;;  %v890_v3 = vsel %vm8624_vm11, %v8262_v49, %v887_v31  ;;  %v3392_v14 = vand.u32 3, %v3391_v27  ;;  %v9660_v50 = vld [vmem:[#allocation71_spill] sm:$0xff] }
 0x391   : > { %v3296_v47 = vsel %vm3289_vm3, %v3292_v56, %v3295_v25  ;;  %vm9656_vm0 = vnez %v9655_v13  ;;  %v773_v55 = vor.u32 %v772_v9, %v771_v18  ;;  %v776_v8 = vshll.u32 %v775_v26, 23  ;;  %v9661_v18 = vld [vmem:[#allocation42_spill] sm:$0xff] }
 0x392   : > { %v1619_v61 = vsel %vm9656_vm0, 0, %v1617_v44  ;;  %v1627_v35 = vxor.u32 2147483648, %v7471_v28  ;;  %vm9345_vm2 = vcmp.lt.s32.totalorder %v8294_v36, 0  ;;  %v3297_v32 = vsel %vm3286_vm12, nan, %v3296_v47  ;;  %v9664_v25 = vld [vmem:[#allocation62_spill] sm:$0xff] }
 0x393   : > { %v1623_v11 = vadd.s32 3, %v1619_v61  ;;  %vm3393_vm15 = vcmp.lt.s32.totalorder %v3392_v14, 2  ;;  %vm3394_vm10 = vcmp.eq.s32.totalorder %v3392_v14, 0  ;;  %vm3397_vm4 = vcmp.eq.s32.totalorder %v3392_v14, 2  ;;  %v9666_v14 = vld [vmem:[#allocation61_spill] sm:$0xff] }
 0x394   : > { %v9657_v23 = vand.u32 2147483647, %v8294_v36  ;;  %v777_v63 = vor.u32 4788187, %v776_v8  ;;  %v3396_v5 = vsel %vm3394_vm10, %v9652_v10, %v3395_v17  ;;  %v3399_v19 = vsel %vm3397_vm4, %v3398_v4, %v9647_v51  ;;  %v9662_v10 = vld [vmem:[#allocation31_spill] sm:$0xff] }
 0x395   : > { %v1630_v53 = vxor.u32 2147483648, %v9660_v50  ;;  %vm3390_vm13 = vweird.f32 %v9648_v58  ;;  %v3400_v46 = vsel %vm3393_vm15, %v3396_v5, %v3399_v19  ;;  %v1624_v39 = vand.u32 3, %v1623_v11  ;;  %v9668_v11 = vld [vmem:[#allocation69_spill] sm:$0xff] }
 0x396   : > { %vm8669_vm3 = vcmp.le.f32.partialorder %v9657_v23, 0.7853982  ;;  %v1720_v21 = vsub.s32 4, %v9661_v18  ;;  %5369 = vcosq.f32 %v890_v3  ;;  %v778_v27 = vand.u32 2147483647, %v777_v63  ;;  %v9671_v23 = vld [vmem:[#allocation55_spill] sm:$0xff] }
 0x397   : > { %v780_v44 = vcvt.s32.f32 %v773_v55  ;;  %v3401_v9 = vsel %vm3390_vm13, nan, %v3400_v46  ;;  %vm1625_vm12 = vcmp.lt.s32.totalorder %v1624_v39, 2  ;;  %vm1626_vm0 = vcmp.eq.s32.totalorder %v1624_v39, 0 }
 0x398   : > { %v4070_v26 = vpack.c.bf16 %v3401_v9, %v3297_v32  ;;  %vm1629_vm1 = vcmp.eq.s32.totalorder %v1624_v39, 2  ;;  %v1628_v17 = vsel %vm1626_vm0, %v9660_v50, %v1627_v35  ;;  %vm9663_vm10 = vcmp.lt.s32.totalorder %v9662_v10, 0  ;;  %v9676_v9 = vld [vmem:[#allocation79_spill] sm:$0xff] }
 0x399   : > { %v781_v56 = vmul.f32 %v780_v44, %v778_v27  ;;  %v1631_v51 = vsel %vm1629_vm1, %v1630_v53, %v7471_v28  ;;  %v1721_v58 = vsel %vm9663_vm10, %v1720_v21, %v9661_v18  ;;  %5371 = vsinq.f32 %v890_v3  ;;  %v9667_v28 = vld [vmem:[#allocation70_spill] sm:$0xff]  ;;  %v9669_v3 = vld [vmem:[#allocation43_spill] sm:$0xff]  ;;  %v9672_v53 = vld [vmem:[#allocation72_spill] sm:$0xff] }
 0x39a   : > { %4885 = vmatprep.subr.bf16.mxu0 %v4070_v26  ;;  %4994 = vmatprep.subr.bf16.mxu1 %v4070_v26  ;;  %v1632_v4 = vsel %vm1625_vm12, %v1628_v17, %v1631_v51  ;;  %vm9665_vm15 = vnez %v9664_v25  ;;  %v3072_v13 = vsub.s32 4, %v9666_v14  ;;  %vm1622_vm4 = vweird.f32 %v6923_v1  ;;  %v9674_v21 = vld [vmem:[#allocation41_spill] sm:$0xff] }
 0x39b   : > { %v1723_v47 = vsel %vm9665_vm15, 0, %v1721_v58  ;;  %v782_v61 = vxor.u32 2147483648, %v781_v56  ;;  %vm1726_vm13 = vweird.f32 %v9662_v10  ;;  %v1731_v8 = vxor.u32 2147483648, %v9667_v28 }
 0x39c   : > { %v1727_v55 = vadd.s32 3, %v1723_v47  ;;  %v1734_v35 = vxor.u32 2147483648, %v9668_v11  ;;  %vm9670_vm1 = vcmp.lt.s32.totalorder %v9669_v3, 0  ;;  %v3176_v63 = vsub.s32 4, %v9671_v23  ;;  %v9679_v47 = vld [vmem:[#allocation68_spill] sm:$0xff] }
 0x39d   : > { %v3073_v32 = vsel %vm9670_vm1, %v3072_v13, %v9666_v14  ;;  %v783_v5 = vsel %vm9345_vm2, %v782_v61, %v781_v56  ;;  %v1633_v19 = vsel %vm1622_vm4, nan, %v1632_v4  ;;  %vm9673_vm12 = vnez %v9672_v53  ;;  %v9677_v4 = vld [vmem:[#allocation67_spill] sm:$0xff] }
 0x39e   : > { %v1728_v50 = vand.u32 3, %v1727_v55  ;;  %v3075_v1 = vsel %vm9673_vm12, 0, %v3073_v32  ;;  %v786_v46 = vsel %vm8669_vm3, %v8294_v36, %v783_v5  ;;  %v3083_v18 = vxor.u32 2147483648, %v7612_v16  ;;  %v9680_v32 = vld [vmem:[#allocation75_spill] sm:$0xff] }
 0x39f   : > { %v3079_v39 = vadd.s32 3, %v3075_v1  ;;  %vm9675_vm10 = vcmp.lt.s32.totalorder %v9674_v21, 0  ;;  %v3086_v44 = vxor.u32 2147483648, %v7601_v37  ;;  %v3187_v26 = vxor.u32 2147483648, %v9676_v9 }
 0x3a0   : > { %v3177_v27 = vsel %vm9675_vm10, %v3176_v63, %v9671_v23  ;;  %vm1730_vm15 = vcmp.eq.s32.totalorder %v1728_v50, 0  ;;  %vm1733_vm1 = vcmp.eq.s32.totalorder %v1728_v50, 2  ;;  %vm1729_vm4 = vcmp.lt.s32.totalorder %v1728_v50, 2  ;;  %v9681_v63 = vld [vmem:[#allocation56_spill] sm:$0xff] }
 0x3a1   : > { %v1732_v56 = vsel %vm1730_vm15, %v9668_v11, %v1731_v8  ;;  %v1735_v17 = vsel %vm1733_vm1, %v1734_v35, %v9667_v28  ;;  %v3080_v51 = vand.u32 3, %v3079_v39  ;;  %5373 = vcosq.f32 %v786_v46  ;;  %v9683_v50 = vld [vmem:[#allocation80_spill] sm:$0xff] }
 0x3a2   : > { %v1736_v58 = vsel %vm1729_vm4, %v1732_v56, %v1735_v17  ;;  %vm9678_vm12 = vnez %v9677_v4  ;;  %vm3182_vm2 = vweird.f32 %v9674_v21  ;;  %v1408_v14 = vsub.s32 4, %v9679_v47 }
 0x3a3   : > { %v3179_v25 = vsel %vm9678_vm12, 0, %v3177_v27  ;;  %v1737_v13 = vsel %vm1726_vm13, nan, %v1736_v58  ;;  %vm3081_vm10 = vcmp.lt.s32.totalorder %v3080_v51, 2  ;;  %vm3082_vm0 = vcmp.eq.s32.totalorder %v3080_v51, 0  ;;  %v8718_v11 = vpop.eup %5369  ;;  %v9689_v58 = vld [vmem:[#allocation77_spill] sm:$0xff] }
 0x3a4   : > { %vm3085_vm11 = vcmp.eq.s32.totalorder %v3080_v51, 2  ;;  %v4062_v61 = vpack.c.bf16 %v1737_v13, %v1633_v19  ;;  %v3084_v55 = vsel %vm3082_vm0, %v7601_v37, %v3083_v18  ;;  %v3183_v8 = vadd.s32 3, %v3179_v25  ;;  %v9691_v13 = vld [vmem:[#allocation78_spill] sm:$0xff] }
 0x3a5   : > { %v3087_v28 = vsel %vm3085_vm11, %v3086_v44, %v7612_v16  ;;  %5375 = vsinq.f32 %v786_v46  ;;  %v3190_v23 = vxor.u32 2147483648, %v9680_v32  ;;  %vm9682_vm15 = vcmp.lt.s32.totalorder %v9681_v63, 0  ;;  %v9685_v16 = vld [vmem:[#allocation65_spill] sm:$0xff]  ;;  %v9687_v44 = vld [vmem:[#allocation51_spill] sm:$0xff] }
 0x3a6   : > { %v3088_v35 = vsel %vm3081_vm10, %v3084_v55, %v3087_v28  ;;  %v1409_v10 = vsel %vm9682_vm15, %v1408_v14, %v9679_v47  ;;  %4886 = vmatpush3.bf16.msra.mxu0 %v4062_v61  ;;  %5002 = vmatpush3.bf16.msra.mxu1 %v4062_v61  ;;  %v3184_v5 = vand.u32 3, %v3183_v8  ;;  %vm9684_vm13 = vnez %v9683_v50  ;;  %v8732_v27 = vpop.eup %5371 }
 0x3a7   : > { %v1411_v19 = vsel %vm9684_vm13, 0, %v1409_v10  ;;  %v1419_v37 = vxor.u32 2147483648, %v7855_v59  ;;  %v1512_v53 = vsub.s32 4, %v9685_v16  ;;  %vm9686_vm11 = vweird.f32 %v9669_v3  ;;  %v9694_v10 = vld [vmem:[#allocation74_spill] sm:$0xff] }
 0x3a8   : > { %v3089_v1 = vsel %vm9686_vm11, nan, %v3088_v35  ;;  %v1415_v46 = vadd.s32 3, %v1411_v19  ;;  %v1422_v39 = vxor.u32 2147483648, %v7835_v42  ;;  %v1523_v18 = vxor.u32 2147483648, %v7706_v54 }
 0x3a9   : > { %vm3185_vm0 = vcmp.lt.s32.totalorder %v3184_v5, 2  ;;  %vm3186_vm1 = vcmp.eq.s32.totalorder %v3184_v5, 0  ;;  %vm3189_vm4 = vcmp.eq.s32.totalorder %v3184_v5, 2  ;;  %vm9688_vm12 = vcmp.lt.s32.totalorder %v9687_v44, 0 }
 0x3aa   : > { %v1513_v56 = vsel %vm9688_vm12, %v1512_v53, %v9685_v16  ;;  %v3188_v17 = vsel %vm3186_vm1, %v9680_v32, %v3187_v26  ;;  %v3191_v51 = vsel %vm3189_vm4, %v3190_v23, %v9676_v9  ;;  %v1416_v3 = vand.u32 3, %v1415_v46 }
 0x3ab   : > { %vm9690_vm10 = vnez %v9689_v58  ;;  %v3192_v25 = vsel %vm3185_vm0, %v3188_v17, %v3191_v51  ;;  %v1526_v14 = vxor.u32 2147483648, %v7703_v2  ;;  %v2864_v61 = vsub.s32 4, %v9691_v13  ;;  %v9700_v51 = vld [vmem:[#allocation82_spill] sm:$0xff] }
 0x3ac   : > { %v1515_v4 = vsel %vm9690_vm10, 0, %v1513_v56  ;;  %v3193_v55 = vsel %vm3182_vm2, nan, %v3192_v25  ;;  %vm1417_vm15 = vcmp.lt.s32.totalorder %v1416_v3, 2  ;;  %vm1418_vm13 = vcmp.eq.s32.totalorder %v1416_v3, 0  ;;  %v9703_v25 = vld [vmem:[#allocation16_spill] sm:$0xff] }
 0x3ad   : > { %v1519_v47 = vadd.s32 3, %v1515_v4  ;;  %vm1421_vm11 = vcmp.eq.s32.totalorder %v1416_v3, 2  ;;  %v4069_v28 = vpack.c.bf16 %v3193_v55, %v3089_v1  ;;  %v1420_v26 = vsel %vm1418_vm13, %v7835_v42, %v1419_v37  ;;  %v9695_v37 = vld [vmem:[#allocation89_spill] sm:$0xff]  ;;  %v9696_v1 = vld [vmem:[#allocation83_spill] sm:$0xff] }
 0x3ae   : > { %v1423_v9 = vsel %vm1421_vm11, %v1422_v39, %v7855_v59  ;;  %vm1414_vm1 = vweird.f32 %v9681_v63  ;;  %vm1518_vm0 = vweird.f32 %v9687_v44  ;;  %vm9692_vm4 = vcmp.lt.s32.totalorder %v7325_v57, 0  ;;  %v8752_v23 = vpop.eup %5373  ;;  %v9699_v39 = vld [vmem:[#allocation5_spill] sm:$0xff]  ;;  %v9702_v44 = vld [vmem:[#allocation10_spill] sm:$0xff] }
 0x3af   : > { %v1520_v8 = vand.u32 3, %v1519_v47  ;;  %v1424_v35 = vsel %vm1417_vm15, %v1420_v26, %v1423_v9  ;;  %v2865_v32 = vsel %vm9692_vm4, %v2864_v61, %v9691_v13  ;;  %4887 = vmatprep.subr.bf16.mxu0 %v4069_v28  ;;  %4995 = vmatprep.subr.bf16.mxu1 %v4069_v28  ;;  %vm9693_vm15 = vnez %v9520_v52  ;;  %v9716_v61 = vld [vmem:[#allocation25_spill] sm:$0xff] }
 0x3b0   : > { %v1425_v21 = vsel %vm1414_vm1, nan, %v1424_v35  ;;  %v2867_v63 = vsel %vm9693_vm15, 0, %v2865_v32  ;;  %v2968_v5 = vsub.s32 4, %v9694_v10  ;;  %vm2870_vm13 = vweird.f32 %v7325_v57 }
 0x3b1   : > { %vm1521_vm2 = vcmp.lt.s32.totalorder %v1520_v8, 2  ;;  %vm1522_vm12 = vcmp.eq.s32.totalorder %v1520_v8, 0  ;;  %vm1525_vm10 = vcmp.eq.s32.totalorder %v1520_v8, 2  ;;  %v2871_v19 = vadd.s32 3, %v2867_v63 }
 0x3b2   : > { %v1524_v42 = vsel %vm1522_vm12, %v7703_v2, %v1523_v18  ;;  %v1527_v59 = vsel %vm1525_vm10, %v1526_v14, %v7706_v54  ;;  %v2875_v16 = vxor.u32 2147483648, %v9695_v37  ;;  %v2878_v46 = vxor.u32 2147483648, %v9696_v1  ;;  %v9697_v2 = vld [vmem:[#allocation64_spill] sm:$0xff]  ;;  %v8768_v18 = vpop.eup %5375 }
 0x3b3   : > { %v1528_v50 = vsel %vm1521_vm2, %v1524_v42, %v1527_v59  ;;  %vm9698_vm11 = vcmp.lt.s32.totalorder %v9697_v2, 0  ;;  %v1200_v52 = vsub.s32 4, %v9699_v39  ;;  %v2872_v17 = vand.u32 3, %v2871_v19  ;;  %v9704_v14 = vld [vmem:[#allocation76_spill] sm:$0xff]  ;;  %v9707_v42 = vld [vmem:[#allocation81_spill] sm:$0xff] }
 0x3b4   : > { %v1529_v53 = vsel %vm1518_vm0, nan, %v1528_v50  ;;  %v2969_v54 = vsel %vm9698_vm11, %v2968_v5, %v9694_v10  ;;  %vm9701_vm1 = vnez %v9700_v51  ;;  %vm2974_vm4 = vweird.f32 %v9697_v2  ;;  %v9708_v19 = vld [vmem:[#allocation73_spill] sm:$0xff]  ;;  %v9711_v51 = vld [vmem:[#allocation90_spill] sm:$0xff] }
 0x3b5   : > { %v4061_v56 = vpack.c.bf16 %v1529_v53, %v1425_v21  ;;  %v2971_v3 = vsel %vm9701_vm1, 0, %v2969_v54  ;;  %v2979_v4 = vxor.u32 2147483648, %v9702_v44  ;;  %v2982_v47 = vxor.u32 2147483648, %v9703_v25 }
 0x3b6   : > { %v2975_v58 = vadd.s32 3, %v2971_v3  ;;  %vm9705_vm0 = vcmp.lt.s32.totalorder %v9704_v14, 0  ;;  %vm2873_vm2 = vcmp.lt.s32.totalorder %v2872_v17, 2  ;;  %vm2874_vm12 = vcmp.eq.s32.totalorder %v2872_v17, 0 }
 0x3b7   : > { %v1201_v13 = vsel %vm9705_vm0, %v1200_v52, %v9699_v39  ;;  %4888 = vmatpush3.bf16.msra.mxu0 %v4061_v56  ;;  %5003 = vmatpush3.bf16.msra.mxu1 %v4061_v56  ;;  %vm2877_vm10 = vcmp.eq.s32.totalorder %v2872_v17, 2  ;;  %v2876_v28 = vsel %vm2874_vm12, %v9696_v1, %v2875_v16  ;;  %v1211_v32 = vxor.u32 2147483648, %v8205_v43 }
 0x3b8   : > { %v1203_v55 = vsel %vm7975_vm5, 0, %v1201_v13  ;;  %v2879_v26 = vsel %vm2877_vm10, %v2878_v46, %v9695_v37  ;;  %v2976_v9 = vand.u32 3, %v2975_v58  ;;  %v1214_v21 = vxor.u32 2147483648, %v8127_v0  ;;  %v9712_v58 = vld [vmem:[#allocation8_spill] sm:$0xff] }
 0x3b9   : > { %v1207_v8 = vadd.s32 3, %v1203_v55  ;;  %v2880_v35 = vsel %vm2873_vm2, %v2876_v28, %v2879_v26  ;;  %v1304_v59 = vsub.s32 4, %v9707_v42  ;;  %vm9709_vm5 = vcmp.lt.s32.totalorder %v9708_v19, 0  ;;  %v9717_v28 = vld [vmem:[#allocation87_spill] sm:$0xff] }
 0x3ba   : > { %v2881_v63 = vsel %vm2870_vm13, nan, %v2880_v35  ;;  %vm2977_vm15 = vcmp.lt.s32.totalorder %v2976_v9, 2  ;;  %vm2978_vm11 = vcmp.eq.s32.totalorder %v2976_v9, 0  ;;  %vm2981_vm1 = vcmp.eq.s32.totalorder %v2976_v9, 2 }
 0x3bb   : > { %v2980_v10 = vsel %vm2978_vm11, %v9703_v25, %v2979_v4  ;;  %v2983_v5 = vsel %vm2981_vm1, %v2982_v47, %v9702_v44  ;;  %v1208_v50 = vand.u32 3, %v1207_v8  ;;  %v1305_v37 = vsel %vm9709_vm5, %v1304_v59, %v9707_v42  ;;  %v9713_v4 = vld [vmem:[#allocation84_spill] sm:$0xff]  ;;  %v9727_v47 = vld [vmem:[#allocation29_spill] sm:$0xff] }
 0x3bc   : > { %v2984_v16 = vsel %vm2977_vm15, %v2980_v10, %v2983_v5  ;;  %vm1206_vm0 = vweird.f32 %v9704_v14  ;;  %v1307_v1 = vsel %vm7964_vm7, 0, %v1305_v37  ;;  %v2656_v57 = vsub.s32 4, %v8047_v15  ;;  %v9722_v10 = vld [vmem:[#allocation22_spill] sm:$0xff] }
 0x3bd   : > { %v2985_v46 = vsel %vm2974_vm4, nan, %v2984_v16  ;;  %vm1209_vm13 = vcmp.lt.s32.totalorder %v1208_v50, 2  ;;  %vm1210_vm2 = vcmp.eq.s32.totalorder %v1208_v50, 0  ;;  %vm1213_vm12 = vcmp.eq.s32.totalorder %v1208_v50, 2 }
 0x3be   : > { %v4068_v54 = vpack.c.bf16 %v2985_v46, %v2881_v63  ;;  %v1212_v39 = vsel %vm1210_vm2, %v8127_v0, %v1211_v32  ;;  %v1215_v52 = vsel %vm1213_vm12, %v1214_v21, %v8205_v43  ;;  %v1311_v56 = vadd.s32 3, %v1307_v1  ;;  %v9719_v21 = vld [vmem:[#allocation6_spill] sm:$0xff]  ;;  %v9723_v46 = vld [vmem:[#allocation20_spill] sm:$0xff] }
 0x3bf   : > { %v1216_v17 = vsel %vm1209_vm13, %v1212_v39, %v1215_v52  ;;  %v1315_v3 = vxor.u32 2147483648, %v9711_v51  ;;  %v1318_v44 = vxor.u32 2147483648, %v9712_v58  ;;  %vm9714_vm7 = vcmp.lt.s32.totalorder %v9713_v4, 0  ;;  %v9724_v39 = vld [vmem:[#allocation7_spill] sm:$0xff] }
 0x3c0   : > { %v2657_v25 = vsel %vm9714_vm7, %v2656_v57, %v8047_v15  ;;  %4889 = vmatprep.subr.bf16.mxu0 %v4068_v54  ;;  %4996 = vmatprep.subr.bf16.mxu1 %v4068_v54  ;;  %vm1310_vm4 = vweird.f32 %v9708_v19  ;;  %v1312_v2 = vand.u32 3, %v1311_v56  ;;  %vm2662_vm10 = vweird.f32 %v9713_v4  ;;  %v9718_v15 = vld [vmem:[#allocation18_spill] sm:$0xff] }
 0x3c1   : > { %v2659_v0 = vsel %vm8211_vm6, 0, %v2657_v25  ;;  %v1217_v43 = vsel %vm1206_vm0, nan, %v1216_v17  ;;  %v2667_v55 = vxor.u32 2147483648, %v9716_v61  ;;  %v2760_v26 = vsub.s32 4, %v9717_v28 }
 0x3c2   : > { %v2663_v13 = vadd.s32 3, %v2659_v0  ;;  %vm1313_vm15 = vcmp.lt.s32.totalorder %v1312_v2, 2  ;;  %vm1314_vm11 = vcmp.eq.s32.totalorder %v1312_v2, 0  ;;  %vm1317_vm1 = vcmp.eq.s32.totalorder %v1312_v2, 2 }
 0x3c3   : > { %v2670_v9 = vxor.u32 2147483648, %v9718_v15  ;;  %v1316_v8 = vsel %vm1314_vm11, %v9712_v58, %v1315_v3  ;;  %v1319_v35 = vsel %vm1317_vm1, %v1318_v44, %v9711_v51  ;;  %vm9720_vm6 = vcmp.lt.s32.totalorder %v9719_v21, 0  ;;  %v9726_v3 = vld [vmem:[#allocation13_spill] sm:$0xff] }
 0x3c4   : > { %v2664_v32 = vand.u32 3, %v2663_v13  ;;  %v2761_v14 = vsel %vm9720_vm6, %v2760_v26, %v9717_v28  ;;  %v1320_v42 = vsel %vm1313_vm15, %v1316_v8, %v1319_v35  ;;  %vm2766_vm5 = vweird.f32 %v9719_v21 }
 0x3c5   : > { %v2763_v63 = vsel %vm8120_vm9, 0, %v2761_v14  ;;  %v992_v5 = vsub.s32 4, %v9722_v10  ;;  %v1321_v50 = vsel %vm1310_vm4, nan, %v1320_v42  ;;  %v2771_v54 = vxor.u32 2147483648, %v9723_v46 }
 0x3c6   : > { %vm2665_vm0 = vcmp.lt.s32.totalorder %v2664_v32, 2  ;;  %vm2666_vm13 = vcmp.eq.s32.totalorder %v2664_v32, 0  ;;  %vm2669_vm2 = vcmp.eq.s32.totalorder %v2664_v32, 2  ;;  %v4060_v37 = vpack.c.bf16 %v1321_v50, %v1217_v43  ;;  %v9728_v43 = vld [vmem:[#allocation85_spill] sm:$0xff] }
 0x3c7   : > { %v2668_v16 = vsel %vm2666_vm13, %v9718_v15, %v2667_v55  ;;  %v2671_v53 = vsel %vm2669_vm2, %v2670_v9, %v9716_v61  ;;  %v2767_v1 = vadd.s32 3, %v2763_v63  ;;  %v2774_v52 = vxor.u32 2147483648, %v9724_v39  ;;  %v9731_v9 = vld [vmem:[#allocation12_spill] sm:$0xff] }
 0x3c8   : > { %v2672_v57 = vsel %vm2665_vm0, %v2668_v16, %v2671_v53  ;;  %vm9725_vm9 = vcmp.lt.s32.totalorder %v7935_v20, 0  ;;  %4890 = vmatpush3.bf16.msra.mxu0 %v4060_v37  ;;  %5004 = vmatpush3.bf16.msra.mxu1 %v4060_v37  ;;  %v1003_v51 = vxor.u32 2147483648, %v8520_v60  ;;  %v1096_v58 = vsub.s32 4, %v9726_v3 }
 0x3c9   : > { %v993_v56 = vsel %vm9725_vm9, %v992_v5, %v9722_v10  ;;  %v2768_v19 = vand.u32 3, %v2767_v1  ;;  %v2673_v44 = vsel %vm2662_vm10, nan, %v2672_v57  ;;  %v1006_v2 = vxor.u32 2147483648, %v8514_v22 }
 0x3ca   : > { %v995_v17 = vsel %vm8355_vm8, 0, %v993_v56  ;;  %v1107_v0 = vxor.u32 2147483648, %v9727_v47  ;;  %vm9729_vm15 = vcmp.lt.s32.totalorder %v9728_v43, 0  ;;  %v1110_v8 = vxor.u32 2147483648, %v9731_v9 }
 0x3cb   : > { %v999_v25 = vadd.s32 3, %v995_v17  ;;  %vm2769_vm12 = vcmp.lt.s32.totalorder %v2768_v19, 2  ;;  %vm2770_vm7 = vcmp.eq.s32.totalorder %v2768_v19, 0  ;;  %vm2773_vm4 = vcmp.eq.s32.totalorder %v2768_v19, 2 }
 0x3cc   : > { %v1097_v33 = vsel %vm9729_vm15, %v1096_v58, %v9726_v3  ;;  %v2772_v13 = vsel %vm2770_vm7, %v9724_v39, %v2771_v54  ;;  %v2775_v61 = vsel %vm2773_vm4, %v2774_v52, %v9723_v46  ;;  %v2448_v35 = vsub.s32 4, %v8420_v12 }
 0x3cd   : > { %v1000_v55 = vand.u32 3, %v999_v25  ;;  %v1099_v4 = vsel %vm8273_vm14, 0, %v1097_v33  ;;  %v2776_v26 = vsel %vm2769_vm12, %v2772_v13, %v2775_v61  ;;  %vm998_vm14 = vweird.f32 %v7935_v20 }
 0x3ce   : > { %v1103_v15 = vadd.s32 3, %v1099_v4  ;;  %v2777_v32 = vsel %vm2766_vm5, nan, %v2776_v26  ;;  %vm9732_vm1 = vcmp.lt.s32.totalorder %v8257_v7, 0  ;;  %vm9733_vm13 = vnez %v9619_v45 }
 0x3cf   : > { %vm1001_vm8 = vcmp.lt.s32.totalorder %v1000_v55, 2  ;;  %vm1002_vm10 = vcmp.eq.s32.totalorder %v1000_v55, 0  ;;  %vm1005_vm11 = vcmp.eq.s32.totalorder %v1000_v55, 2  ;;  %v4067_v14 = vpack.c.bf16 %v2777_v32, %v2673_v44  ;;  %v5215_v32 = vld [vmem:[%s9124_s3 + $0xa4] ss:$8 sps:$4 sm:$0xff]  }
 0x3d0   : > { %v1004_v42 = vsel %vm1002_vm10, %v8514_v22, %v1003_v51  ;;  %v1007_v59 = vsel %vm1005_vm11, %v1006_v2, %v8520_v60  ;;  %v1104_v63 = vand.u32 3, %v1103_v15  ;;  %v2449_v5 = vsel %vm9732_vm1, %v2448_v35, %v8420_v12  ;;  %v5213_v35 = vld [vmem:[%s9124_s3 + $0x24] ss:$8 sps:$4 sm:$0xff]  }
 0x3d1   : > { %v1008_v10 = vsel %vm1001_vm8, %v1004_v42, %v1007_v59  ;;  %4891 = vmatprep.subr.bf16.mxu0 %v4067_v14  ;;  %4997 = vmatprep.subr.bf16.mxu1 %v4067_v14  ;;  %v2451_v60 = vsel %vm9733_vm13, 0, %v2449_v5  ;;  %v2552_v20 = vsub.s32 4, %v8363_v6  ;;  %vm1102_vm2 = vweird.f32 %v9728_v43  ;;  %v5217_v14 = vld [vmem:[%s9124_s3 + $0x20] ss:$8 sps:$4 sm:$0xff]   ;;  %v5219_v59 = vld [vmem:[%s9124_s3 + $0x34] ss:$8 sps:$4 sm:$0xff]  }
 0x3d2   : > { %v1009_v21 = vsel %vm998_vm14, nan, %v1008_v10  ;;  %vm1105_vm6 = vcmp.lt.s32.totalorder %v1104_v63, 2  ;;  %vm1106_vm5 = vcmp.eq.s32.totalorder %v1104_v63, 0  ;;  %vm1109_vm0 = vcmp.eq.s32.totalorder %v1104_v63, 2  ;;  %v5218_v42 = vld [vmem:[%s9124_s3 + $0xa0] ss:$8 sps:$4 sm:$0xff]  }
 0x3d3   : > { %v1108_v50 = vsel %vm1106_vm5, %v9731_v9, %v1107_v0  ;;  %v1111_v22 = vsel %vm1109_vm0, %v1110_v8, %v9727_v47  ;;  %v2455_v16 = vadd.s32 3, %v2451_v60  ;;  %v2459_v12 = vxor.u32 2147483648, %v8654_v34  ;;  %v5201_v9 = vld [vmem:[%s9124_s3] ss:$8 sps:$4 sm:$0xff]   ;;  %v5212_v8 = vld [vmem:[%s9124_s3 + $0x90] ss:$8 sps:$4 sm:$0xff]  }
 0x3d4   : > { %v1112_v37 = vsel %vm1105_vm6, %v1108_v50, %v1111_v22  ;;  %v2462_v1 = vxor.u32 2147483648, %v8648_v48  ;;  %vm9734_vm9 = vcmp.lt.s32.totalorder %v8250_v38, 0  ;;  %v784_v46 = vsub.s32 4, %v8585_v30  ;;  %v5221_v63 = vld [vmem:[%s9124_s3 + $0xb4] ss:$8 sps:$4 sm:$0xff]  }
 0x3d5   : > { %v1113_v53 = vsel %vm1102_vm2, nan, %v1112_v37  ;;  %v2553_v57 = vsel %vm9734_vm9, %v2552_v20, %v8363_v6  ;;  %vm2454_vm12 = vweird.f32 %v8257_v7  ;;  %v2456_v45 = vand.u32 3, %v2455_v16  ;;  %v5223_v10 = vld [vmem:[%s9124_s3 + $0x30] ss:$8 sps:$4 sm:$0xff]   ;;  %v5227_v50 = vld [vmem:[%s9124_s3 + $0xc4] ss:$8 sps:$4 sm:$0xff]  }
 0x3d6   : > { %v4059_v54 = vpack.c.bf16 %v1113_v53, %v1009_v21  ;;  %vm9735_vm7 = vnez %v9616_v29  ;;  %v2563_v56 = vxor.u32 2147483648, %v8613_v62  ;;  %v2566_v19 = vxor.u32 2147483648, %v8599_v41  ;;  %v5224_v5 = vld [vmem:[%s9124_s3 + $0xb0] ss:$8 sps:$4 sm:$0xff]   ;;  %v5225_v21 = vld [vmem:[%s9124_s3 + $0x44] ss:$8 sps:$4 sm:$0xff]  }
 0x3d7   : > { %v2555_v39 = vsel %vm9735_vm7, 0, %v2553_v57  ;;  %vm9736_vm4 = vcmp.lt.s32.totalorder %v8294_v36, 0  ;;  %vm2457_vm15 = vcmp.lt.s32.totalorder %v2456_v45, 2  ;;  %vm2458_vm8 = vcmp.eq.s32.totalorder %v2456_v45, 0  ;;  %v5229_v22 = vld [vmem:[%s9124_s3 + $0x40] ss:$8 sps:$4 sm:$0xff]  }
 0x3d8   : > { %v2559_v52 = vadd.s32 3, %v2555_v39  ;;  %v785_v17 = vsel %vm9736_vm4, %v784_v46, %v8585_v30  ;;  %4892 = vmatpush3.bf16.msra.mxu0 %v4059_v54  ;;  %5005 = vmatpush3.bf16.msra.mxu1 %v4059_v54  ;;  %vm2461_vm10 = vcmp.eq.s32.totalorder %v2456_v45, 2  ;;  %v2460_v29 = vsel %vm2458_vm8, %v8648_v48, %v2459_v12  ;;  %v5230_v60 = vld [vmem:[%s9124_s3 + $0xc0] ss:$8 sps:$4 sm:$0xff]   ;;  %v5231_v20 = vld [vmem:[%s9124_s3 + $0x54] ss:$8 sps:$4 sm:$0xff]  }
 0x3d9   : > { %v787_v6 = vsel %vm8669_vm3, 0, %v785_v17  ;;  %v2463_v51 = vsel %vm2461_vm10, %v2462_v1, %v8654_v34  ;;  %v795_v25 = vxor.u32 2147483648, %v8768_v18  ;;  %v798_v2 = vxor.u32 2147483648, %v8752_v23  ;;  %v5233_v37 = vld [vmem:[%s9124_s3 + $0xd4] ss:$8 sps:$4 sm:$0xff]  }
 0x3da   : > { %v2560_v3 = vand.u32 3, %v2559_v52  ;;  %v791_v58 = vadd.s32 3, %v787_v6  ;;  %v2464_v44 = vsel %vm2457_vm15, %v2460_v29, %v2463_v51  ;;  %v888_v30 = vsub.s32 4, %v8490_v40  ;;  %v5235_v16 = vld [vmem:[%s9124_s3 + $0x50] ss:$8 sps:$4 sm:$0xff]  }
 0x3db   : > { %v2465_v47 = vsel %vm2454_vm12, nan, %v2464_v44  ;;  %vm9737_vm3 = vcmp.lt.s32.totalorder %v8262_v49, 0  ;;  %vm2558_vm6 = vweird.f32 %v8250_v38  ;;  %vm9738_vm5 = vnez %v9643_v24  ;;  %v5236_v12 = vld [vmem:[%s9124_s3 + $0xd0] ss:$8 sps:$4 sm:$0xff]   ;;  %v5237_v53 = vld [vmem:[%s9124_s3 + $0x64] ss:$8 sps:$4 sm:$0xff]  }
 0x3dc   : > { %vm2561_vm11 = vcmp.lt.s32.totalorder %v2560_v3, 2  ;;  %vm2562_vm14 = vcmp.eq.s32.totalorder %v2560_v3, 0  ;;  %vm2565_vm1 = vcmp.eq.s32.totalorder %v2560_v3, 2  ;;  %v792_v34 = vand.u32 3, %v791_v58  ;;  %v5239_v1 = vld [vmem:[%s9124_s3 + $0xe4] ss:$8 sps:$4 sm:$0xff]  }
 0x3dd   : > { %v2564_v31 = vsel %vm2562_vm14, %v8599_v41, %v2563_v56  ;;  %v2567_v48 = vsel %vm2565_vm1, %v2566_v19, %v8613_v62  ;;  %v889_v0 = vsel %vm9737_vm3, %v888_v30, %v8490_v40  ;;  %v899_v55 = vxor.u32 2147483648, %v8732_v27  ;;  %v5241_v57 = vld [vmem:[%s9124_s3 + $0x60] ss:$8 sps:$4 sm:$0xff]   ;;  %v5243_v54 = vld [vmem:[%s9124_s3 + $0x74] ss:$8 sps:$4 sm:$0xff]   ;;  %v4109_v56 = vpop.permute.xlu0 %4108  ;;  %v4114_v19 = vpop.permute.xlu1 %4113 }
 0x3de   : > { %v2568_v43 = vsel %vm2561_vm11, %v2564_v31, %v2567_v48  ;;  %v891_v33 = vsel %vm9738_vm5, 0, %v889_v0  ;;  %vm794_vm0 = vcmp.eq.s32.totalorder %v792_v34, 0  ;;  %vm797_vm13 = vcmp.eq.s32.totalorder %v792_v34, 2  ;;  %v5242_v46 = vld [vmem:[%s9124_s3 + $0xe0] ss:$8 sps:$4 sm:$0xff]  }
 0x3df   : > { %v2569_v7 = vsel %vm2558_vm6, nan, %v2568_v43  ;;  %v796_v61 = vsel %vm794_vm0, %v8752_v23, %v795_v25  ;;  %v799_v41 = vsel %vm797_vm13, %v798_v2, %v8768_v18  ;;  %v895_v62 = vadd.s32 3, %v891_v33  ;;  %v5245_v45 = vld [vmem:[%s9124_s3 + $0xf4] ss:$8 sps:$4 sm:$0xff]   ;;  %v5247_v39 = vld [vmem:[%s9124_s3 + $0x70] ss:$8 sps:$4 sm:$0xff]  }
 0x3e0   : > { %v4066_v13 = vpack.c.bf16 %v2569_v7, %v2465_v47  ;;  %vm793_vm2 = vcmp.lt.s32.totalorder %v792_v34, 2  ;;  %v902_v40 = vxor.u32 2147483648, %v8718_v11  ;;  %vm790_vm9 = vweird.f32 %v8294_v36  ;;  %v5204_v36 = vld [vmem:[%s9124_s3 + $0x80] ss:$8 sps:$4 sm:$0xff]   ;;  %v5248_v52 = vld [vmem:[%s9124_s3 + $0xf0] ss:$8 sps:$4 sm:$0xff]  }
 0x3e1   : > { %v800_v38 = vsel %vm793_vm2, %v796_v61, %v799_v41  ;;  %v896_v28 = vand.u32 3, %v895_v62  ;;  %vm894_vm15 = vweird.f32 %v8262_v49  ;;  %v5209_v49 = vld [vmem:[%s9124_s3 + $0x94] ss:$8 sps:$4 sm:$0xff]   ;;  %v4119_v17 = vpop.permute.xlu0 %4118  ;;  %v4124_v6 = vpop.permute.xlu1 %4123 }
 0x3e2   : > { %4893 = vmatprep.subr.bf16.mxu0 %v4066_v13  ;;  %4998 = vmatprep.subr.bf16.mxu1 %v4066_v13  ;;  %v801_v24 = vsel %vm790_vm9, nan, %v800_v38 }
 0x3e3   : > { %vm898_vm12 = vcmp.eq.s32.totalorder %v896_v28, 0  ;;  %vm901_vm7 = vcmp.eq.s32.totalorder %v896_v28, 2  ;;  %vm897_vm4 = vcmp.lt.s32.totalorder %v896_v28, 2 }
 0x3e4   : > { %v900_v23 = vsel %vm898_vm12, %v8718_v11, %v899_v55  ;;  %v903_v18 = vsel %vm901_vm7, %v902_v40, %v8732_v27  ;;  %v5207_v11 = vld [vmem:[%s9124_s3 + $0x14] ss:$8 sps:$4 sm:$0xff]   ;;  %v5211_v27 = vld [vmem:[%s9124_s3 + $0x10] ss:$8 sps:$4 sm:$0xff]  }
 0x3e5   : > { %v904_v4 = vsel %vm897_vm4, %v900_v23, %v903_v18  ;;  %v8992_v29 = vpop.permute.xlu0 %4128  ;;  %v8994_v51 = vpop.permute.xlu1 %4133 }
 0x3e6   : > { %v905_v26 = vsel %vm894_vm15, nan, %v904_v4 }
 0x3e7   : > { %v4058_v15 = vpack.c.bf16 %v905_v26, %v801_v24 }
 0x3e9   : > { %4894 = vmatpush3.bf16.msra.mxu0 %v4058_v15  ;;  %5006 = vmatpush3.bf16.msra.mxu1 %v4058_v15  ;;  %v8996_v3 = vpop.permute.xlu0 %4138  ;;  %v8998_v58 = vpop.permute.xlu1 %4143 }
 0x3ec   : > { %4459 = vmatmul.mubr.bf16.vlgmr.msra.gmra.mxu0 %v5201_v9  ;;  %4523 = vmatmul.mubr.bf16.vlgmr.msra.gmra.mxu1 %v5204_v36 }
 0x3ed   : > { %4466 = vmatprep.mubr.bf16.mxu0 %v5207_v11  ;;  %4530 = vmatprep.mubr.bf16.mxu1 %v5209_v49  ;;  %v9000_v44 = vpop.permute.xlu0 %4148  ;;  %v9002_v25 = vpop.permute.xlu1 %4153 }
 0x3f1   : > { %v9004_v2 = vpop.permute.xlu0 %4158  ;;  %v9006_v30 = vpop.permute.xlu1 %4163 }
 0x3f4   : > { %4467 = vmatmul.mubr.bf16.gmra.mxu0 %v5211_v27  ;;  %4531 = vmatmul.mubr.bf16.gmra.mxu1 %v5212_v8 }
 0x3f5   : > { %4474 = vmatprep.mubr.bf16.mxu0 %v5213_v35  ;;  %4538 = vmatprep.mubr.bf16.mxu1 %v5215_v32  ;;  %v9008_v47 = vpop.permute.xlu0 %4168  ;;  %v9010_v31 = vpop.permute.xlu1 %4173 }
 0x3f9   : > { %v9012_v48 = vpop.permute.xlu0 %4178  ;;  %v9015_v43 = vpop.permute.xlu1 %4183 }
 0x3fc   : > { %4475 = vmatmul.mubr.bf16.gmra.mxu0 %v5217_v14  ;;  %4539 = vmatmul.mubr.bf16.gmra.mxu1 %v5218_v42 }
 0x3fd   : > { %4482 = vmatprep.mubr.bf16.mxu0 %v5219_v59  ;;  %4546 = vmatprep.mubr.bf16.mxu1 %v5221_v63  ;;  %v4189_v13 = vpop.permute.xlu0 %4188  ;;  %v4194_v23 = vpop.permute.xlu1 %4193 }
 0x401   : > { %v4199_v27 = vpop.permute.xlu0 %4198 }
 0x404   : > { %4483 = vmatmul.mubr.bf16.gmra.mxu0 %v5223_v10  ;;  %4547 = vmatmul.mubr.bf16.gmra.mxu1 %v5224_v5  ;;  %v4204_v5 = vpop.permute.xlu1 %4203 }
 0x405   : > { %4490 = vmatprep.mubr.bf16.mxu0 %v5225_v21  ;;  %4554 = vmatprep.mubr.bf16.mxu1 %v5227_v50 }
 0x40c   : > { %4491 = vmatmul.mubr.bf16.gmra.mxu0 %v5229_v22  ;;  %4555 = vmatmul.mubr.bf16.gmra.mxu1 %v5230_v60 }
 0x40d   : > { %4498 = vmatprep.mubr.bf16.mxu0 %v5231_v20  ;;  %4562 = vmatprep.mubr.bf16.mxu1 %v5233_v37 }
 0x414   : > { %4499 = vmatmul.mubr.bf16.gmra.mxu0 %v5235_v16  ;;  %4563 = vmatmul.mubr.bf16.gmra.mxu1 %v5236_v12 }
 0x415   : > { %4506 = vmatprep.mubr.bf16.mxu0 %v5237_v53  ;;  %4570 = vmatprep.mubr.bf16.mxu1 %v5239_v1  ;;  %v4209_v53 = vpop.permute.xlu0 %4208 }
 0x41c   : > { %4507 = vmatmul.mubr.bf16.gmra.mxu0 %v5241_v57  ;;  %4571 = vmatmul.mubr.bf16.gmra.mxu1 %v5242_v46 }
 0x41d   : > { %4514 = vmatprep.mubr.bf16.mxu0 %v5243_v54  ;;  %4578 = vmatprep.mubr.bf16.mxu1 %v5245_v45 }
 0x424   : > { %4515 = vmatmul.mubr.bf16.gmra.mxu0 %v5247_v39  ;;  %4579 = vmatmul.mubr.bf16.gmra.mxu1 %v5248_v52 }
 0x4ac   : > { %v4895_v34 = vpop.f32.mrf.mxu0  ;;  %v4943_v0 = vpop.f32.mrf.mxu1 }
 0x4ae   : > { %v4896_v33 = vpop.f32.mrf.mxu0  ;;  %v4944_v7 = vpop.f32.mrf.mxu1 }
 0x4af   : > { %v4897_v61 = vadd.f32 %v4896_v33, %v4895_v34  ;;  %v4945_v41 = vadd.f32 %v4944_v7, %v4943_v0 }
 0x4b0   : > { %v4898_v62 = vpop.f32.mrf.mxu0  ;;  %v4946_v55 = vpop.f32.mrf.mxu1 }
 0x4b1   : > { %v4461_v40 = vadd.f32 %v4897_v61, %v4109_v56  ;;  %v4525_v38 = vadd.f32 %v4945_v41, %v4189_v13 }
 0x4b2   : > { %v4899_v28 = vpop.f32.mrf.mxu0  ;;  %v4947_v24 = vpop.f32.mrf.mxu1 }
 0x4b3   : > { %4587 = vst [vmem:[%s9019_s17] sm:$0xff] %v4461_v40  ;;  %4603 = vst [vmem:[%s9019_s17 + $0x80] sm:$0xff] %v4525_v38  ;;  %v4900_v18 = vadd.f32 %v4899_v28, %v4898_v62  ;;  %v4948_v4 = vadd.f32 %v4947_v24, %v4946_v55 }
 0x4b4   : > { %v4901_v26 = vpop.f32.mrf.mxu0  ;;  %v4949_v15 = vpop.f32.mrf.mxu1 }
 0x4b5   : > { %v4464_v9 = vadd.f32 %v4900_v18, %v4114_v19  ;;  %v4528_v36 = vadd.f32 %v4948_v4, %v4194_v23  ;;  %v4214_v19 = vpop.permute.xlu1 %4213 }
 0x4b6   : > { %v4902_v11 = vpop.f32.mrf.mxu0  ;;  %v4950_v49 = vpop.f32.mrf.mxu1 }
 0x4b7   : > { %4588 = vst [vmem:[%s9019_s17 + $0x8] sm:$0xff] %v4464_v9  ;;  %4604 = vst [vmem:[%s9019_s17 + $0x88] sm:$0xff] %v4528_v36  ;;  %v4903_v8 = vadd.f32 %v4902_v11, %v4901_v26  ;;  %v4951_v35 = vadd.f32 %v4950_v49, %v4949_v15 }
 0x4b8   : > { %v4904_v32 = vpop.f32.mrf.mxu0  ;;  %v4952_v14 = vpop.f32.mrf.mxu1 }
 0x4b9   : > { %v4469_v42 = vadd.f32 %v4903_v8, %v4119_v17  ;;  %v4533_v59 = vadd.f32 %v4951_v35, %v4199_v27 }
 0x4ba   : > { %v4905_v63 = vpop.f32.mrf.mxu0  ;;  %v4953_v10 = vpop.f32.mrf.mxu1 }
 0x4bb   : > { %4589 = vst [vmem:[%s9019_s17 + $0x10] sm:$0xff] %v4469_v42  ;;  %4605 = vst [vmem:[%s9019_s17 + $0x90] sm:$0xff] %v4533_v59  ;;  %v4906_v21 = vadd.f32 %v4905_v63, %v4904_v32  ;;  %v4954_v50 = vadd.f32 %v4953_v10, %v4952_v14 }
 0x4bc   : > { %v4907_v22 = vpop.f32.mrf.mxu0  ;;  %v4955_v60 = vpop.f32.mrf.mxu1 }
 0x4bd   : > { %v4472_v20 = vadd.f32 %v4906_v21, %v4124_v6  ;;  %v4536_v37 = vadd.f32 %v4954_v50, %v4204_v5 }
 0x4be   : > { %v4908_v16 = vpop.f32.mrf.mxu0  ;;  %v4956_v12 = vpop.f32.mrf.mxu1 }
 0x4bf   : > { %4590 = vst [vmem:[%s9019_s17 + $0x18] sm:$0xff] %v4472_v20  ;;  %4606 = vst [vmem:[%s9019_s17 + $0x98] sm:$0xff] %v4536_v37  ;;  %v4909_v1 = vadd.f32 %v4908_v16, %v4907_v22  ;;  %v4957_v57 = vadd.f32 %v4956_v12, %v4955_v60 }
 0x4c0   : > { %v4910_v46 = vpop.f32.mrf.mxu0  ;;  %v4958_v54 = vpop.f32.mrf.mxu1 }
 0x4c1   : > { %v4477_v45 = vadd.f32 %v4909_v1, %v8992_v29  ;;  %v4541_v39 = vadd.f32 %v4957_v57, %v4209_v53  ;;  %v4219_v29 = vpop.permute.xlu0 %4218 }
 0x4c2   : > { %v4911_v52 = vpop.f32.mrf.mxu0  ;;  %v4959_v56 = vpop.f32.mrf.mxu1 }
 0x4c3   : > { %4591 = vst [vmem:[%s9019_s17 + $0x20] sm:$0xff] %v4477_v45  ;;  %4607 = vst [vmem:[%s9019_s17 + $0xa0] sm:$0xff] %v4541_v39  ;;  %v4912_v17 = vadd.f32 %v4911_v52, %v4910_v46  ;;  %v4960_v6 = vadd.f32 %v4959_v56, %v4958_v54 }
 0x4c4   : > { %v4913_v34 = vpop.f32.mrf.mxu0  ;;  %v4961_v0 = vpop.f32.mrf.mxu1 }
 0x4c5   : > { %v4480_v33 = vadd.f32 %v4912_v17, %v8994_v51  ;;  %v4544_v7 = vadd.f32 %v4960_v6, %v4214_v19  ;;  %v4224_v51 = vpop.permute.xlu1 %4223 }
 0x4c6   : > { %v4914_v13 = vpop.f32.mrf.mxu0  ;;  %v4962_v61 = vpop.f32.mrf.mxu1 }
 0x4c7   : > { %4592 = vst [vmem:[%s9019_s17 + $0x28] sm:$0xff] %v4480_v33  ;;  %4608 = vst [vmem:[%s9019_s17 + $0xa8] sm:$0xff] %v4544_v7  ;;  %v4915_v41 = vadd.f32 %v4914_v13, %v4913_v34  ;;  %v4963_v62 = vadd.f32 %v4962_v61, %v4961_v0 }
 0x4c8   : > { %v4916_v55 = vpop.f32.mrf.mxu0  ;;  %v4964_v40 = vpop.f32.mrf.mxu1 }
 0x4c9   : > { %v4485_v38 = vadd.f32 %v4915_v41, %v8996_v3  ;;  %v4549_v28 = vadd.f32 %v4963_v62, %v4219_v29  ;;  %v4229_v3 = vpop.permute.xlu0 %4228 }
 0x4ca   : > { %v4917_v24 = vpop.f32.mrf.mxu0  ;;  %v4965_v23 = vpop.f32.mrf.mxu1 }
 0x4cb   : > { %4593 = vst [vmem:[%s9019_s17 + $0x30] sm:$0xff] %v4485_v38  ;;  %4609 = vst [vmem:[%s9019_s17 + $0xb0] sm:$0xff] %v4549_v28  ;;  %v4918_v18 = vadd.f32 %v4917_v24, %v4916_v55  ;;  %v4966_v4 = vadd.f32 %v4965_v23, %v4964_v40 }
 0x4cc   : > { %v4919_v26 = vpop.f32.mrf.mxu0  ;;  %v4967_v15 = vpop.f32.mrf.mxu1 }
 0x4cd   : > { %v4488_v9 = vadd.f32 %v4918_v18, %v8998_v58  ;;  %v4552_v36 = vadd.f32 %v4966_v4, %v4224_v51  ;;  %v4234_v58 = vpop.permute.xlu1 %4233 }
 0x4ce   : > { %v4920_v11 = vpop.f32.mrf.mxu0  ;;  %v4968_v49 = vpop.f32.mrf.mxu1 }
 0x4cf   : > { %4594 = vst [vmem:[%s9019_s17 + $0x38] sm:$0xff] %v4488_v9  ;;  %4610 = vst [vmem:[%s9019_s17 + $0xb8] sm:$0xff] %v4552_v36  ;;  %v4921_v27 = vadd.f32 %v4920_v11, %v4919_v26  ;;  %v4969_v8 = vadd.f32 %v4968_v49, %v4967_v15 }
 0x4d0   : > { %v4922_v35 = vpop.f32.mrf.mxu0  ;;  %v4970_v32 = vpop.f32.mrf.mxu1 }
 0x4d1   : > { %v4493_v14 = vadd.f32 %v4921_v27, %v9000_v44  ;;  %v4557_v42 = vadd.f32 %v4969_v8, %v4229_v3  ;;  %v4239_v44 = vpop.permute.xlu0 %4238 }
 0x4d2   : > { %v4923_v59 = vpop.f32.mrf.mxu0  ;;  %v4971_v63 = vpop.f32.mrf.mxu1 }
 0x4d3   : > { %4595 = vst [vmem:[%s9019_s17 + $0x40] sm:$0xff] %v4493_v14  ;;  %4611 = vst [vmem:[%s9019_s17 + $0xc0] sm:$0xff] %v4557_v42  ;;  %v4924_v10 = vadd.f32 %v4923_v59, %v4922_v35  ;;  %v4972_v5 = vadd.f32 %v4971_v63, %v4970_v32 }
 0x4d4   : > { %v4925_v21 = vpop.f32.mrf.mxu0  ;;  %v4973_v50 = vpop.f32.mrf.mxu1 }
 0x4d5   : > { %v4496_v22 = vadd.f32 %v4924_v10, %v9002_v25  ;;  %v4560_v60 = vadd.f32 %v4972_v5, %v4234_v58  ;;  %v4244_v25 = vpop.permute.xlu1 %4243 }
 0x4d6   : > { %v4926_v20 = vpop.f32.mrf.mxu0  ;;  %v4974_v37 = vpop.f32.mrf.mxu1 }
 0x4d7   : > { %4596 = vst [vmem:[%s9019_s17 + $0x48] sm:$0xff] %v4496_v22  ;;  %4612 = vst [vmem:[%s9019_s17 + $0xc8] sm:$0xff] %v4560_v60  ;;  %v4927_v16 = vadd.f32 %v4926_v20, %v4925_v21  ;;  %v4975_v12 = vadd.f32 %v4974_v37, %v4973_v50 }
 0x4d8   : > { %v4928_v53 = vpop.f32.mrf.mxu0  ;;  %v4976_v1 = vpop.f32.mrf.mxu1 }
 0x4d9   : > { %v4501_v57 = vadd.f32 %v4927_v16, %v9004_v2  ;;  %v4565_v46 = vadd.f32 %v4975_v12, %v4239_v44  ;;  %v4249_v2 = vpop.permute.xlu0 %4248 }
 0x4da   : > { %v4929_v54 = vpop.f32.mrf.mxu0  ;;  %v4977_v45 = vpop.f32.mrf.mxu1 }
 0x4db   : > { %4597 = vst [vmem:[%s9019_s17 + $0x50] sm:$0xff] %v4501_v57  ;;  %4613 = vst [vmem:[%s9019_s17 + $0xd0] sm:$0xff] %v4565_v46  ;;  %v4930_v39 = vadd.f32 %v4929_v54, %v4928_v53  ;;  %v4978_v52 = vadd.f32 %v4977_v45, %v4976_v1 }
 0x4dc   : > { %v4931_v56 = vpop.f32.mrf.mxu0  ;;  %v4979_v19 = vpop.f32.mrf.mxu1 }
 0x4dd   : > { %v4504_v17 = vadd.f32 %v4930_v39, %v9006_v30  ;;  %v4568_v6 = vadd.f32 %v4978_v52, %v4244_v25  ;;  %v4254_v30 = vpop.permute.xlu1 %4253  ;;  %v4259_v4 = vpop.permute.xlu0 %4258 }
 0x4de   : > { %v4932_v34 = vpop.f32.mrf.mxu0  ;;  %v4980_v0 = vpop.f32.mrf.mxu1 }
 0x4df   : > { %4598 = vst [vmem:[%s9019_s17 + $0x58] sm:$0xff] %v4504_v17  ;;  %4614 = vst [vmem:[%s9019_s17 + $0xd8] sm:$0xff] %v4568_v6  ;;  %v4933_v33 = vadd.f32 %v4932_v34, %v4931_v56  ;;  %v4981_v7 = vadd.f32 %v4980_v0, %v4979_v19 }
 0x4e0   : > { %v4934_v13 = vpop.f32.mrf.mxu0  ;;  %v4982_v61 = vpop.f32.mrf.mxu1 }
 0x4e1   : > { %v4509_v29 = vadd.f32 %v4933_v33, %v9008_v47  ;;  %v4573_v41 = vadd.f32 %v4981_v7, %v4249_v2  ;;  %v4264_v35 = vpop.permute.xlu1 %4263 }
 0x4e2   : > { %v4935_v62 = vpop.f32.mrf.mxu0  ;;  %v4983_v55 = vpop.f32.mrf.mxu1 }
 0x4e3   : > { %4599 = vst [vmem:[%s9019_s17 + $0x60] sm:$0xff] %v4509_v29  ;;  %4615 = vst [vmem:[%s9019_s17 + $0xe0] sm:$0xff] %v4573_v41  ;;  %v4936_v40 = vadd.f32 %v4935_v62, %v4934_v13  ;;  %v4984_v38 = vadd.f32 %v4983_v55, %v4982_v61 }
 0x4e4   : > { %v4937_v28 = vpop.f32.mrf.mxu0  ;;  %v4985_v24 = vpop.f32.mrf.mxu1 }
 0x4e5   : > { %v4512_v23 = vadd.f32 %v4936_v40, %v9010_v31  ;;  %v4576_v51 = vadd.f32 %v4984_v38, %v4254_v30 }
 0x4e6   : > { %v4938_v18 = vpop.f32.mrf.mxu0  ;;  %v4986_v47 = vpop.f32.mrf.mxu1 }
 0x4e7   : > { %4600 = vst [vmem:[%s9019_s17 + $0x68] sm:$0xff] %v4512_v23  ;;  %4616 = vst [vmem:[%s9019_s17 + $0xe8] sm:$0xff] %v4576_v51  ;;  %v4939_v26 = vadd.f32 %v4938_v18, %v4937_v28  ;;  %v4987_v15 = vadd.f32 %v4986_v47, %v4985_v24 }
 0x4e8   : > { %v4940_v9 = vpop.f32.mrf.mxu0  ;;  %v4988_v36 = vpop.f32.mrf.mxu1 }
 0x4e9   : > { %v4517_v11 = vadd.f32 %v4939_v26, %v9012_v48  ;;  %v4581_v49 = vadd.f32 %v4987_v15, %v4259_v4 }
 0x4ea   : > { %v4941_v31 = vpop.f32.mrf.mxu0  ;;  %v4989_v3 = vpop.f32.mrf.mxu1 }
 0x4eb   : > { %4601 = vst [vmem:[%s9019_s17 + $0x70] sm:$0xff] %v4517_v11  ;;  %4617 = vst [vmem:[%s9019_s17 + $0xf0] sm:$0xff] %v4581_v49  ;;  %v4942_v27 = vadd.f32 %v4941_v31, %v4940_v9  ;;  %v4990_v8 = vadd.f32 %v4989_v3, %v4988_v36 }
 0x4ed   : > { %v4520_v48 = vadd.f32 %v4942_v27, %v9015_v43  ;;  %v4584_v32 = vadd.f32 %v4990_v8, %v4264_v35 }
 0x4ef   : > { %4602 = vst [vmem:[%s9019_s17 + $0x78] sm:$0xff] %v4520_v48  ;;  %4618 = vst [vmem:[%s9019_s17 + $0xf8] sm:$0xff] %v4584_v32 }
 0x4f0   : > { %5394 = shalt.err (!%p5391_p5)
}
 0x4f1   : > { %s5395_s12 = scalar_lea.hbm %s9067_s8, 4096  ;;  %s5399_s15 = scalar_lea.hbm %s9126_s5, 8192 }
 0x4f2   : > { %p5396_p6 = scmp.ne.s32.totalorder %s9067_s8, %s5395_s12  ;;  %p5400_p10 = scmp.lt.s32.totalorder %s9067_s8, %s9126_s5 }
 0x4f3   : > { %p5401_p11 = scmp.lt.s32.totalorder %s5399_s15, %s5395_s12 }
 0x4f4   : > { %p5397_p7 = pnand %p5396_p6, %p5539_p4 }
 0x4f5   : > { %p5402_p12 = por %p5401_p11, %p5400_p10 }
 0x4f6   : > { %p5398_p9 = pneg %p5397_p7 }
 0x4f8   : > { %p5403_p13 = pnand %p5402_p12, %p5398_p9 }
 0x4fa   : > { %5406 = shalt.err (!%p5403_p13)
}
 0x4fb   : > { %s5467_s25 = smov 128   ;;  %s5468_s29 = smov 8  }
 0x4fc   : > { %5135 = dma.vmem_to_hbm [thread:$0]  (%p5539_p4), %s9069_s27, 4096, %s9067_s8, %s9076_s21, %s5467_s25, %s5467_s25, %s5468_s29  }
 0x4fd PF: > { %p5141_p0 = scmp.ge.s32.totalorder %s5457_s23, 2  ;;  %s4649_s7 = sand.u32 1, %s5437_s18  }
 0x4fe   : > { %s4650_s9 = scalar_lea.sflag [#allocation3], %s4649_s7 }
 0x4ff   : > { %p5138_p1 = pnand %p5141_p0, %p5546_p8 }
 0x501   : > { %p5139_p2 = pneg %p5138_p1 }
 0x503   : > { %5432 = dma.done.wait (%p5139_p2), %s4650_s9, 4096  }
 0x504   : > { %5434 = vsyncadd (%p5139_p2), %s4650_s9, 4294963200  ;;  %s18_s23 = sadd.s32 1, %s5457_s23   ;;  %s9739_s18 = smov %s5441_s19 }
 0x505   : > { %p15_p3 = scmp.ge.s32.totalorder %s18_s23, 4   ;;  %s9740_s19 = smov %s5445_s20 }
 0x506   : > { %s9741_s20 = smov %s5552_s6  ;;  %s9742_s21 = smov %s5453_s22 }
 0x507   : > { %s9743_s22 = smov %s9745_s26  ;;  %17 = sbr.rel (!%p15_p3) target bundleno = 4 (0x4), region = 75 }
 0x50c   :  { %4655 = vsyncpa [#allocation3], 1 }
 0x50d   :  { %4657 = vsyncpa [#allocation3 + $0x1], 1 }

</bundles_post_ra>
